<compile_context>
chip_gen: v7x
topology: tpu7x:2x2x1
jax: 0.10.0
libtpu: 0.0.40
codegen_flags: <defaults>
</compile_context>

<pallas_src>
import functools

import jax
import jax.numpy as jnp
from jax.experimental import pallas as pl
from jax.experimental.pallas import tpu as pltpu

NEG_SLOPE = 0.01   # default negative_slope of F.leaky_relu / LeakyReLU()
BN_EPS = 1e-5      # default eps of BatchNorm1d
LANE = 128


def _round_up(v, m):
    return (v + m - 1) // m * m


def _leaky_relu(x):
    return jnp.where(x > 0, x, NEG_SLOPE * x)


def _pick_vmem_limit_bytes():
    """Physical VMEM minus ~16 MiB headroom, capped at 100 MiB.

    v7x (64 MiB/TC) -> ~48 MiB; v5e/v6e (128 MiB) -> 100 MiB.  Falls back to a
    conservative 48 MiB when the hardware query is unavailable (interpret mode).
    """
    try:
        cap = int(pltpu.get_tpu_info().vmem_capacity_bytes)
    except Exception:
        cap = 0
    if cap <= 0:
        return 48 * 1024 * 1024
    return max(32 * 1024 * 1024, min(cap - 16 * 1024 * 1024, 100 * 1024 * 1024))


# ---------------------------------------------------------------------------
# Fused kernel: grid iterates over graph layers; activations stay in VMEM scratch.
# ---------------------------------------------------------------------------
def _gcore_kernel(x_ref, m_ref, w_ref, vec_ref, gum_ref, pool_ref, wd_ref, bd_ref,
                  out_ref, nc_ref, gc_ref,           # outputs
                  h_ref,                             # VMEM scratch (resident acts)
                  *, n_real, emb, tau):
    layer = pl.program_id(0)
    n_layers = pl.num_programs(0)

    # Load padded node features once; afterwards activations live in VMEM scratch.
    @pl.when(layer == 0)
    def _():
        h_ref[...] = x_ref[...]

    row = jax.lax.broadcasted_iota(jnp.int32, h_ref.shape, 0)
    row_valid = row < n_real

    # --- GIN aggregation: ((1+eps) I + A) @ h, eps = 0.  bf16 MXU operands, f32 acc.
    agg = jnp.dot(m_ref[...], h_ref[...].astype(jnp.bfloat16),
                  preferred_element_type=jnp.float32)

    # --- Internal MLP: Linear -> LeakyReLU -> Linear.
    #     Per-layer params arrive as two coalesced tiles: w_ref [2, Dp, Dp] (bf16) and
    #     vec_ref [4, Dp] (b1, b2, gamma, beta) in f32.
    b1 = vec_ref[0:1, :]
    b2 = vec_ref[1:2, :]
    gamma = vec_ref[2:3, :]
    beta = vec_ref[3:4, :]

    h = jnp.dot(agg.astype(jnp.bfloat16), w_ref[0],
                preferred_element_type=jnp.float32) + b1
    h = _leaky_relu(h)
    h = jnp.dot(h.astype(jnp.bfloat16), w_ref[1],
                preferred_element_type=jnp.float32) + b2

    # --- BatchNorm1d (training-mode batch statistics, biased variance), one pass:
    #     mean = E[x], var = E[x^2] - mean^2; padded rows excluded from the stats.
    inv_n = 1.0 / n_real
    hm = jnp.where(row_valid, h, 0.0)
    s1 = jnp.sum(hm, axis=0, keepdims=True)
    s2 = jnp.sum(hm * hm, axis=0, keepdims=True)
    mean = s1 * inv_n
    var = jnp.maximum(s2 * inv_n - mean * mean, 0.0)
    y = (h - mean) * jax.lax.rsqrt(var + BN_EPS) * gamma + beta

    # LeakyReLU after every graph layer except the last.
    y = jnp.where(layer < n_layers - 1, _leaky_relu(y), y)
    # Keep padded rows exactly zero so they never pollute later layers.
    y = jnp.where(row_valid, y, 0.0)
    h_ref[...] = y

    # ------------------------------------------------------------------ head
    @pl.when(layer == n_layers - 1)
    def _():
        # Hard Gumbel-Softmax forward value = one-hot(argmax((y + g) / tau)).
        # Softmax is monotone -> dead compute, skipped; padded lanes cannot win.
        z = (y + gum_ref[...]) * (1.0 / tau)
        col = jax.lax.broadcasted_iota(jnp.int32, z.shape, 1)
        lane_valid = col < emb
        z = jnp.where(lane_valid, z, -jnp.inf)

        zmax = jnp.max(z, axis=-1, keepdims=True)
        is_max = (z >= zmax) & lane_valid
        first_idx = jnp.min(jnp.where(is_max, col, z.shape[-1]),
                            axis=-1, keepdims=True)     # torch.argmax tie-break
        hard = (col == first_idx).astype(jnp.float32)
        nc_ref[...] = hard

        # global_add_pool = P @ hard, then the dense classifier (tiny -> exact f32).
        gc = jnp.dot(pool_ref[...], hard, preferred_element_type=jnp.float32)
        gc_ref[...] = gc
        out_ref[...] = (jnp.dot(gc, wd_ref[...], preferred_element_type=jnp.float32)
                        + bd_ref[...])


# ---------------------------------------------------------------------------
# Full GCoRe forward: layout plumbing (padding, stacking, dense adjacency) in JAX,
# the entire hot path in a single fused pallas_call.
# ---------------------------------------------------------------------------
def gcore_forward(params, x, edge_index, batch, num_graphs, temperature, noise_key):
    n_real, in_features = x.shape
    layers = params["layers"]
    num_graph_layers = len(layers)
    emb = layers[0]["w1"].shape[1]
    n_classes = params["w_dense"].shape[1]

    dp = max(_round_up(in_features, LANE), _round_up(emb, LANE))   # feature lanes
    cp = _round_up(n_classes, LANE)                                # class lanes
    np_ = _round_up(n_real, LANE)                                  # node rows (lane-dense contraction)
    g = num_graphs
    f32 = jnp.float32

    # Dense M = I + A with A[dst, src] = 1 (GIN sum aggregation, eps = 0), zero-padded
    # and stored in bf16 (small integer entries are exact in bf16).
    src, dst = edge_index[0], edge_index[1]
    adj = jnp.zeros((n_real, n_real), f32).at[dst, src].add(1.0)
    m_real = adj + jnp.eye(n_real, dtype=f32)
    m = jnp.zeros((np_, np_), f32).at[:n_real, :n_real].set(m_real).astype(jnp.bfloat16)

    # One-hot pooling matrix P [G, Np]; padded node columns are zero.
    pool_real = (batch[None, :] == jnp.arange(g)[:, None]).astype(f32)
    pool = jnp.zeros((g, np_), f32).at[:, :n_real].set(pool_real)

    # Node features padded to lane-dense [Np, Dp].
    xp = jnp.zeros((np_, dp), f32).at[:n_real, :in_features].set(x.astype(f32))

    def pad2(w):
        a, b = w.shape
        return jnp.zeros((dp, dp), f32).at[:a, :b].set(w)

    def pad_row(v):
        return jnp.zeros((dp,), f32).at[:v.shape[-1]].set(v.reshape(-1))

    # Per-layer params coalesced into two streamed tensors (2 DMAs / grid step).
    ws = jnp.stack([jnp.stack([pad2(lp["w1"]), pad2(lp["w2"])]) for lp in layers]
                   ).astype(jnp.bfloat16)                                # [L, 2, Dp, Dp]
    vecs = jnp.stack([jnp.stack([pad_row(lp["b1"]), pad_row(lp["b2"]),
                                 pad_row(lp["gamma"]), pad_row(lp["beta"])])
                      for lp in layers])                                 # [L, 4, Dp]

    wd = jnp.zeros((dp, cp), f32).at[:emb, :n_classes].set(params["w_dense"])
    bd = jnp.zeros((1, cp), f32).at[:, :n_classes].set(params["b_dense"].reshape(1, -1))

    # Gumbel(0,1) noise generated in the wrapper (pltpu.prng_* has no CPU/interpret
    # lowering); not bit-identical to torch's RNG stream, distributionally equivalent.
    gum = jax.random.gumbel(noise_key, (np_, dp), f32)

    kernel = functools.partial(_gcore_kernel, n_real=n_real, emb=emb,
                               tau=float(temperature))

    def build_and_call(single_buffer_consts):
        def const_spec(shape):
            zeros = (0,) * len(shape)
            if single_buffer_consts:
                # Grid-invariant operand: fetched once, no double buffer.
                return pl.BlockSpec(shape, lambda *_: zeros,
                                    pipeline_mode=pl.Buffered(1))
            return pl.BlockSpec(shape, lambda *_: zeros)

        def layer_spec(shape):
            zeros = (0,) * (len(shape) - 1)
            return pl.BlockSpec(shape, lambda l: (l,) + zeros)   # streamed / pipelined

        grid_spec = pltpu.PrefetchScalarGridSpec(
            num_scalar_prefetch=0,
            grid=(num_graph_layers,),
            in_specs=[
                const_spec((np_, dp)),            # x (layer-0 input)
                const_spec((np_, np_)),           # M = I + A (bf16)
                layer_spec((None, 2, dp, dp)),    # [w1; w2][l]              (bf16)
                layer_spec((None, 4, dp)),        # [b1; b2; gamma; beta][l] (f32)
                const_spec((np_, dp)),            # Gumbel noise
                const_spec((g, np_)),             # pooling one-hots
                const_spec((dp, cp)),             # dense W
                const_spec((1, cp)),              # dense b
            ],
            out_specs=(
                pl.BlockSpec((g, cp), lambda l: (0, 0)),     # logits   (padded lanes)
                pl.BlockSpec((np_, dp), lambda l: (0, 0)),   # node_concepts (padded)
                pl.BlockSpec((g, dp), lambda l: (0, 0)),     # graph_concepts (padded)
            ),
            scratch_shapes=[pltpu.VMEM((np_, dp), f32)],     # resident activations h
        )
        return pl.pallas_call(
            kernel,
            out_shape=(
                jax.ShapeDtypeStruct((g, cp), f32),
                jax.ShapeDtypeStruct((np_, dp), f32),
                jax.ShapeDtypeStruct((g, dp), f32),
            ),
            grid_spec=grid_spec,
            compiler_params=pltpu.CompilerParams(
                dimension_semantics=("arbitrary",),          # layers are sequential
                vmem_limit_bytes=_pick_vmem_limit_bytes(),
            ),
        )(xp, m, ws, vecs, gum, pool, wd, bd)

    try:
        out_p, nc_p, gc_p = build_and_call(True)
    except Exception:
        # Fallback for JAX builds without BlockSpec(pipeline_mode=pl.Buffered(1)).
        out_p, nc_p, gc_p = build_and_call(False)

    out = out_p[:, :n_classes]
    node_concepts = nc_p[:n_real, :emb]
    graph_concepts = gc_p[:, :emb]
    return out, node_concepts, graph_concepts


def init_params(key, in_features, emb_size, n_classes, n_layers):
    params = {"layers": []}
    in_size = in_features
    for _ in range(n_layers - 1):
        key, k1, k2 = jax.random.split(key, 3)
        params["layers"].append({
            "w1": 0.1 * jax.random.normal(k1, (in_size, emb_size), jnp.float32),
            "b1": jnp.zeros((emb_size,), jnp.float32),
            "w2": 0.1 * jax.random.normal(k2, (emb_size, emb_size), jnp.float32),
            "b2": jnp.zeros((emb_size,), jnp.float32),
            "gamma": jnp.ones((emb_size,), jnp.float32),   # BatchNorm affine defaults
            "beta": jnp.zeros((emb_size,), jnp.float32),
        })
        in_size = emb_size
    key, kd = jax.random.split(key)
    params["w_dense"] = 0.1 * jax.random.normal(kd, (emb_size, n_classes), jnp.float32)
    params["b_dense"] = jnp.zeros((n_classes,), jnp.float32)
    return params


if __name__ == "__main__":
    # Small problem: 2 graphs x 8 nodes each, bidirectional ring topology per graph.
    in_features, emb_size, n_classes, n_layers = 4, 32, 3, 4
    temperature = 1.0
    nodes_per_graph, num_graphs = 8, 2
    n_nodes = nodes_per_graph * num_graphs

    key = jax.random.PRNGKey(0)
    key, kx, knoise = jax.random.split(key, 3)
    x = jax.random.normal(kx, (n_nodes, in_features), jnp.float32)

    src_list, dst_list = [], []
    for gi in range(num_graphs):
        base = gi * nodes_per_graph
        for i in range(nodes_per_graph):
            a = base + i
            b = base + (i + 1) % nodes_per_graph
            src_list += [a, b]
            dst_list += [b, a]
    edge_index = jnp.array([src_list, dst_list], dtype=jnp.int32)
    batch = jnp.repeat(jnp.arange(num_graphs, dtype=jnp.int32), nodes_per_graph)

    params = init_params(key, in_features, emb_size, n_classes, n_layers)

    out, node_concepts, graph_concepts = gcore_forward(
        params, x, edge_index, batch, num_graphs, temperature, knoise)

    jax.block_until_ready((out, node_concepts, graph_concepts))
    assert out.shape == (num_graphs, n_classes)
    assert node_concepts.shape == (n_nodes, emb_size)
    assert graph_concepts.shape == (num_graphs, emb_size)
    # node_concepts rows are exact one-hot vectors; pooled counts sum to nodes/graph.
    assert bool(jnp.all(jnp.sum(node_concepts, axis=-1) == 1.0))
    assert bool(jnp.all(jnp.sum(graph_concepts, axis=-1) == float(nodes_per_graph)))
    print("KERNEL_OK")
</pallas_src>

<mosaic_0001>
module attributes {stable_mosaic.version = 11 : i64} {
  func.func @_gcore_kernel(%arg0: i32, %arg1: memref<128x128xf32, #tpu.memory_space<vmem>>, %arg2: memref<128x128xbf16, #tpu.memory_space<vmem>>, %arg3: memref<1x2x128x128xbf16, #tpu.memory_space<vmem>>, %arg4: memref<1x4x128xf32, #tpu.memory_space<vmem>>, %arg5: memref<128x128xf32, #tpu.memory_space<vmem>>, %arg6: memref<2x128xf32, #tpu.memory_space<vmem>>, %arg7: memref<128x128xf32, #tpu.memory_space<vmem>>, %arg8: memref<1x128xf32, #tpu.memory_space<vmem>>, %arg9: memref<2x128xf32, #tpu.memory_space<vmem>>, %arg10: memref<128x128xf32, #tpu.memory_space<vmem>>, %arg11: memref<2x128xf32, #tpu.memory_space<vmem>>, %arg12: memref<128x128xf32, #tpu.memory_space<vmem>>) attributes {dimension_semantics = [#tpu.dimension_semantics<arbitrary>], iteration_bounds = array<i64: 3>, scalar_prefetch = 0 : i64, scratch_operands = 1 : i64, tpu.core_type = #tpu.core_type<tc>, window_params = [{pipeline_mode = #tpu.pipeline_mode<synchronous>, transform_indices = @transform_0, window_bounds = array<i64: 128, 128>}, {pipeline_mode = #tpu.pipeline_mode<synchronous>, transform_indices = @transform_1, window_bounds = array<i64: 128, 128>}, {transform_indices = @transform_2, window_bounds = array<i64: 1, 2, 128, 128>}, {transform_indices = @transform_3, window_bounds = array<i64: 1, 4, 128>}, {pipeline_mode = #tpu.pipeline_mode<synchronous>, transform_indices = @transform_4, window_bounds = array<i64: 128, 128>}, {pipeline_mode = #tpu.pipeline_mode<synchronous>, transform_indices = @transform_5, window_bounds = array<i64: 2, 128>}, {pipeline_mode = #tpu.pipeline_mode<synchronous>, transform_indices = @transform_6, window_bounds = array<i64: 128, 128>}, {pipeline_mode = #tpu.pipeline_mode<synchronous>, transform_indices = @transform_7, window_bounds = array<i64: 1, 128>}, {pipeline_mode = #tpu.pipeline_mode<synchronous>, transform_indices = @transform_8, window_bounds = array<i64: 2, 128>}, {pipeline_mode = #tpu.pipeline_mode<synchronous>, transform_indices = @transform_9, window_bounds = array<i64: 128, 128>}, {pipeline_mode = #tpu.pipeline_mode<synchronous>, transform_indices = @transform_10, window_bounds = array<i64: 2, 128>}]} {
    %c0_i32 = arith.constant 0 : i32
    %0 = arith.cmpi eq, %arg0, %c0_i32 : i32
    %1 = arith.extui %0 : i1 to i32
    %c0_i32_0 = arith.constant 0 : i32
    %2 = arith.cmpi ne, %1, %c0_i32_0 : i32
    scf.if %2 {
      %c0_39 = arith.constant 0 : index
      %c0_40 = arith.constant 0 : index
      %74 = vector.load %arg1[%c0_39, %c0_40] : memref<128x128xf32, #tpu.memory_space<vmem>>, vector<128x128xf32>
      %c0_41 = arith.constant 0 : index
      %c0_42 = arith.constant 0 : index
      %75 = vector.load %arg12[%c0_41, %c0_42] : memref<128x128xf32, #tpu.memory_space<vmem>>, vector<128x128xf32>
      tpu.vector_store %arg12[%c0_41, %c0_42], %74 {strides = array<i32>} : memref<128x128xf32, #tpu.memory_space<vmem>>, vector<128x128xf32>,
    } else {
    }
    %3 = tpu.iota {dimensions = array<i32: 0>} : vector<128x128xi32>
    %c16_i32 = arith.constant 16 : i32
    %4 = vector.broadcast %c16_i32 : i32 to vector<128x128xi32>
    %5 = arith.cmpi slt, %3, %4 : vector<128x128xi32>
    %c0 = arith.constant 0 : index
    %c0_1 = arith.constant 0 : index
    %6 = vector.load %arg2[%c0, %c0_1] : memref<128x128xbf16, #tpu.memory_space<vmem>>, vector<128x128xbf16>
    %c0_2 = arith.constant 0 : index
    %c0_3 = arith.constant 0 : index
    %7 = vector.load %arg12[%c0_2, %c0_3] : memref<128x128xf32, #tpu.memory_space<vmem>>, vector<128x128xf32>
    %8 = arith.truncf %7 : vector<128x128xf32> to vector<128x128xbf16>
    %cst = arith.constant dense<0.000000e+00> : vector<128x128xf32>
    %9 = tpu.matmul %6, %8, %cst {dimension_numbers = #tpu.dot_dimension_numbers<[1], [0], [0], [1], [0, 0, 1, 1], [], []>} : vector<128x128xbf16>, vector<128x128xbf16>, vector<128x128xf32> -> vector<128x128xf32>
    %c0_4 = arith.constant 0 : index
    %c0_5 = arith.constant 0 : index
    %c0_6 = arith.constant 0 : index
    %10 = vector.load %arg4[%c0_4, %c0_5, %c0_6] : memref<1x4x128xf32, #tpu.memory_space<vmem>>, vector<1x1x128xf32>
    %11 = vector.shape_cast %10 : vector<1x1x128xf32> to vector<1x128xf32>
    %c0_7 = arith.constant 0 : index
    %c1 = arith.constant 1 : index
    %c0_8 = arith.constant 0 : index
    %12 = vector.load %arg4[%c0_7, %c1, %c0_8] : memref<1x4x128xf32, #tpu.memory_space<vmem>>, vector<1x1x128xf32>
    %13 = vector.shape_cast %12 : vector<1x1x128xf32> to vector<1x128xf32>
    %c0_9 = arith.constant 0 : index
    %c2 = arith.constant 2 : index
    %c0_10 = arith.constant 0 : index
    %14 = vector.load %arg4[%c0_9, %c2, %c0_10] : memref<1x4x128xf32, #tpu.memory_space<vmem>>, vector<1x1x128xf32>
    %15 = vector.shape_cast %14 : vector<1x1x128xf32> to vector<1x128xf32>
    %c0_11 = arith.constant 0 : index
    %c3 = arith.constant 3 : index
    %c0_12 = arith.constant 0 : index
    %16 = vector.load %arg4[%c0_11, %c3, %c0_12] : memref<1x4x128xf32, #tpu.memory_space<vmem>>, vector<1x1x128xf32>
    %17 = vector.shape_cast %16 : vector<1x1x128xf32> to vector<1x128xf32>
    %18 = arith.truncf %9 : vector<128x128xf32> to vector<128x128xbf16>
    %c0_13 = arith.constant 0 : index
    %c0_14 = arith.constant 0 : index
    %c0_15 = arith.constant 0 : index
    %c0_16 = arith.constant 0 : index
    %19 = vector.load %arg3[%c0_13, %c0_14, %c0_15, %c0_16] : memref<1x2x128x128xbf16, #tpu.memory_space<vmem>>, vector<1x1x128x128xbf16>
    %20 = vector.shape_cast %19 : vector<1x1x128x128xbf16> to vector<128x128xbf16>
    %cst_17 = arith.constant dense<0.000000e+00> : vector<128x128xf32>
    %21 = tpu.matmul %18, %20, %cst_17 {dimension_numbers = #tpu.dot_dimension_numbers<[1], [0], [0], [1], [0, 0, 1, 1], [], []>} : vector<128x128xbf16>, vector<128x128xbf16>, vector<128x128xf32> -> vector<128x128xf32>
    %22 = vector.broadcast %11 : vector<1x128xf32> to vector<128x128xf32>
    %23 = arith.addf %21, %22 : vector<128x128xf32>
    %cst_18 = arith.constant 0.000000e+00 : f32
    %24 = vector.broadcast %cst_18 : f32 to vector<128x128xf32>
    %25 = arith.cmpf ogt, %23, %24 : vector<128x128xf32>
    %cst_19 = arith.constant 0.00999999977 : f32
    %26 = vector.broadcast %cst_19 : f32 to vector<128x128xf32>
    %27 = arith.mulf %26, %23 : vector<128x128xf32>
    %28 = arith.select %25, %23, %27 : vector<128x128xi1>, vector<128x128xf32>
    %29 = arith.truncf %28 : vector<128x128xf32> to vector<128x128xbf16>
    %c0_20 = arith.constant 0 : index
    %c1_21 = arith.constant 1 : index
    %c0_22 = arith.constant 0 : index
    %c0_23 = arith.constant 0 : index
    %30 = vector.load %arg3[%c0_20, %c1_21, %c0_22, %c0_23] : memref<1x2x128x128xbf16, #tpu.memory_space<vmem>>, vector<1x1x128x128xbf16>
    %31 = vector.shape_cast %30 : vector<1x1x128x128xbf16> to vector<128x128xbf16>
    %cst_24 = arith.constant dense<0.000000e+00> : vector<128x128xf32>
    %32 = tpu.matmul %29, %31, %cst_24 {dimension_numbers = #tpu.dot_dimension_numbers<[1], [0], [0], [1], [0, 0, 1, 1], [], []>} : vector<128x128xbf16>, vector<128x128xbf16>, vector<128x128xf32> -> vector<128x128xf32>
    %33 = vector.broadcast %13 : vector<1x128xf32> to vector<128x128xf32>
    %34 = arith.addf %32, %33 : vector<128x128xf32>
    %cst_25 = arith.constant 0.000000e+00 : f32
    %35 = vector.broadcast %cst_25 : f32 to vector<128x128xf32>
    %36 = arith.select %5, %34, %35 : vector<128x128xi1>, vector<128x128xf32>
    %cst_26 = arith.constant dense<0.000000e+00> : vector<128xf32>
    %37 = vector.multi_reduction <add>, %36, %cst_26 [0] : vector<128x128xf32> to vector<128xf32>
    %38 = vector.shape_cast %37 : vector<128xf32> to vector<1x128xf32>
    %39 = arith.mulf %36, %36 : vector<128x128xf32>
    %cst_27 = arith.constant dense<0.000000e+00> : vector<128xf32>
    %40 = vector.multi_reduction <add>, %39, %cst_27 [0] : vector<128x128xf32> to vector<128xf32>
    %41 = vector.shape_cast %40 : vector<128xf32> to vector<1x128xf32>
    %cst_28 = arith.constant 6.250000e-02 : f32
    %42 = vector.broadcast %cst_28 : f32 to vector<1x128xf32>
    %43 = arith.mulf %38, %42 : vector<1x128xf32>
    %cst_29 = arith.constant 6.250000e-02 : f32
    %44 = vector.broadcast %cst_29 : f32 to vector<1x128xf32>
    %45 = arith.mulf %41, %44 : vector<1x128xf32>
    %46 = arith.mulf %43, %43 : vector<1x128xf32>
    %47 = arith.subf %45, %46 : vector<1x128xf32>
    %cst_30 = arith.constant 0.000000e+00 : f32
    %48 = vector.broadcast %cst_30 : f32 to vector<1x128xf32>
    %49 = arith.maximumf %47, %48 : vector<1x128xf32>
    %50 = vector.broadcast %43 : vector<1x128xf32> to vector<128x128xf32>
    %51 = arith.subf %34, %50 : vector<128x128xf32>
    %cst_31 = arith.constant 9.99999974E-6 : f32
    %52 = vector.broadcast %cst_31 : f32 to vector<1x128xf32>
    %53 = arith.addf %49, %52 : vector<1x128xf32>
    %54 = math.rsqrt %53 : vector<1x128xf32>
    %55 = vector.broadcast %54 : vector<1x128xf32> to vector<128x128xf32>
    %56 = arith.mulf %51, %55 : vector<128x128xf32>
    %57 = vector.broadcast %15 : vector<1x128xf32> to vector<128x128xf32>
    %58 = arith.mulf %56, %57 : vector<128x128xf32>
    %59 = vector.broadcast %17 : vector<1x128xf32> to vector<128x128xf32>
    %60 = arith.addf %58, %59 : vector<128x128xf32>
    %c2_i32 = arith.constant 2 : i32
    %61 = arith.cmpi slt, %arg0, %c2_i32 : i32
    %cst_32 = arith.constant 0.000000e+00 : f32
    %62 = vector.broadcast %cst_32 : f32 to vector<128x128xf32>
    %63 = arith.cmpf ogt, %60, %62 : vector<128x128xf32>
    %cst_33 = arith.constant 0.00999999977 : f32
    %64 = vector.broadcast %cst_33 : f32 to vector<128x128xf32>
    %65 = arith.mulf %64, %60 : vector<128x128xf32>
    %66 = arith.select %63, %60, %65 : vector<128x128xi1>, vector<128x128xf32>
    %67 = arith.select %61, %66, %60 : vector<128x128xf32>
    %cst_34 = arith.constant 0.000000e+00 : f32
    %68 = vector.broadcast %cst_34 : f32 to vector<128x128xf32>
    %69 = arith.select %5, %67, %68 : vector<128x128xi1>, vector<128x128xf32>
    %c0_35 = arith.constant 0 : index
    %c0_36 = arith.constant 0 : index
    %70 = vector.load %arg12[%c0_35, %c0_36] : memref<128x128xf32, #tpu.memory_space<vmem>>, vector<128x128xf32>
    tpu.vector_store %arg12[%c0_35, %c0_36], %69 {strides = array<i32>} : memref<128x128xf32, #tpu.memory_space<vmem>>, vector<128x128xf32>,
    %c2_i32_37 = arith.constant 2 : i32
    %71 = arith.cmpi eq, %arg0, %c2_i32_37 : i32
    %72 = arith.extui %71 : i1 to i32
    %c0_i32_38 = arith.constant 0 : i32
    %73 = arith.cmpi ne, %72, %c0_i32_38 : i32
    scf.if %73 {
      %c0_39 = arith.constant 0 : index
      %c0_40 = arith.constant 0 : index
      %74 = vector.load %arg5[%c0_39, %c0_40] : memref<128x128xf32, #tpu.memory_space<vmem>>, vector<128x128xf32>
      %75 = arith.addf %69, %74 : vector<128x128xf32>
      %cst_41 = arith.constant 1.000000e+00 : f32
      %76 = vector.broadcast %cst_41 : f32 to vector<128x128xf32>
      %77 = arith.mulf %75, %76 : vector<128x128xf32>
      %78 = tpu.iota {dimensions = array<i32: 1>} : vector<128x128xi32>
      %c32_i32 = arith.constant 32 : i32
      %79 = vector.broadcast %c32_i32 : i32 to vector<128x128xi32>
      %80 = arith.cmpi slt, %78, %79 : vector<128x128xi32>
      %cst_42 = arith.constant 0xFF800000 : f32
      %81 = vector.broadcast %cst_42 : f32 to vector<128x128xf32>
      %82 = arith.select %80, %77, %81 : vector<128x128xi1>, vector<128x128xf32>
      %cst_43 = arith.constant dense<0xFF800000> : vector<128xf32>
      %83 = vector.multi_reduction <maximumf>, %82, %cst_43 [1] : vector<128x128xf32> to vector<128xf32>
      %84 = vector.shape_cast %83 : vector<128xf32> to vector<128x1xf32>
      %85 = vector.broadcast %84 : vector<128x1xf32> to vector<128x128xf32>
      %86 = arith.cmpf oge, %82, %85 : vector<128x128xf32>
      %87 = arith.andi %86, %80 : vector<128x128xi1>
      %c128_i32 = arith.constant 128 : i32
      %88 = vector.broadcast %c128_i32 : i32 to vector<128x128xi32>
      %89 = arith.select %87, %78, %88 : vector<128x128xi1>, vector<128x128xi32>
      %cst_44 = arith.constant dense<2147483647> : vector<128xi32>
      %90 = vector.multi_reduction <minsi>, %89, %cst_44 [1] : vector<128x128xi32> to vector<128xi32>
      %91 = vector.shape_cast %90 : vector<128xi32> to vector<128x1xi32>
      %92 = vector.broadcast %91 : vector<128x1xi32> to vector<128x128xi32>
      %93 = arith.cmpi eq, %78, %92 : vector<128x128xi32>
      %94 = arith.extui %93 : vector<128x128xi1> to vector<128x128xi32>
      %95 = arith.sitofp %94 : vector<128x128xi32> to vector<128x128xf32>
      %c0_45 = arith.constant 0 : index
      %c0_46 = arith.constant 0 : index
      %96 = vector.load %arg10[%c0_45, %c0_46] : memref<128x128xf32, #tpu.memory_space<vmem>>, vector<128x128xf32>
      tpu.vector_store %arg10[%c0_45, %c0_46], %95 {strides = array<i32>} : memref<128x128xf32, #tpu.memory_space<vmem>>, vector<128x128xf32>,
      %c0_47 = arith.constant 0 : index
      %c0_48 = arith.constant 0 : index
      %97 = vector.load %arg6[%c0_47, %c0_48] : memref<2x128xf32, #tpu.memory_space<vmem>>, vector<2x128xf32>
      %cst_49 = arith.constant dense<0.000000e+00> : vector<2x128xf32>
      %98 = tpu.matmul %97, %95, %cst_49 {dimension_numbers = #tpu.dot_dimension_numbers<[1], [0], [0], [1], [0, 0, 1, 1], [], []>} : vector<2x128xf32>, vector<128x128xf32>, vector<2x128xf32> -> vector<2x128xf32>
      %c0_50 = arith.constant 0 : index
      %c0_51 = arith.constant 0 : index
      %99 = vector.load %arg11[%c0_50, %c0_51] : memref<2x128xf32, #tpu.memory_space<vmem>>, vector<2x128xf32>
      tpu.vector_store %arg11[%c0_50, %c0_51], %98 {strides = array<i32>} : memref<2x128xf32, #tpu.memory_space<vmem>>, vector<2x128xf32>,
      %c0_52 = arith.constant 0 : index
      %c0_53 = arith.constant 0 : index
      %100 = vector.load %arg7[%c0_52, %c0_53] : memref<128x128xf32, #tpu.memory_space<vmem>>, vector<128x128xf32>
      %cst_54 = arith.constant dense<0.000000e+00> : vector<2x128xf32>
      %101 = tpu.matmul %98, %100, %cst_54 {dimension_numbers = #tpu.dot_dimension_numbers<[1], [0], [0], [1], [0, 0, 1, 1], [], []>} : vector<2x128xf32>, vector<128x128xf32>, vector<2x128xf32> -> vector<2x128xf32>
      %c0_55 = arith.constant 0 : index
      %c0_56 = arith.constant 0 : index
      %102 = vector.load %arg8[%c0_55, %c0_56] : memref<1x128xf32, #tpu.memory_space<vmem>>, vector<1x128xf32>
      %103 = vector.broadcast %102 : vector<1x128xf32> to vector<2x128xf32>
      %104 = arith.addf %101, %103 : vector<2x128xf32>
      %c0_57 = arith.constant 0 : index
      %c0_58 = arith.constant 0 : index
      %105 = vector.load %arg9[%c0_57, %c0_58] : memref<2x128xf32, #tpu.memory_space<vmem>>, vector<2x128xf32>
      tpu.vector_store %arg9[%c0_57, %c0_58], %104 {strides = array<i32>} : memref<2x128xf32, #tpu.memory_space<vmem>>, vector<2x128xf32>,
    } else {
    }
    return
  }
  func.func @transform_0(%arg0: i32) -> (i32, i32) {
    %c0_i32 = arith.constant 0 : i32
    %c0_i32_0 = arith.constant 0 : i32
    %c0_i32_1 = arith.constant 0 : i32
    return %c0_i32, %c0_i32_0 : i32, i32
  }
  func.func @transform_1(%arg0: i32) -> (i32, i32) {
    %c0_i32 = arith.constant 0 : i32
    %c0_i32_0 = arith.constant 0 : i32
    %c0_i32_1 = arith.constant 0 : i32
    return %c0_i32, %c0_i32_0 : i32, i32
  }
  func.func @transform_2(%arg0: i32) -> (i32, i32, i32, i32) {
    %c0_i32 = arith.constant 0 : i32
    %c0_i32_0 = arith.constant 0 : i32
    %c0_i32_1 = arith.constant 0 : i32
    %c0_i32_2 = arith.constant 0 : i32
    return %arg0, %c0_i32, %c0_i32_0, %c0_i32_1 : i32, i32, i32, i32
  }
  func.func @transform_3(%arg0: i32) -> (i32, i32, i32) {
    %c0_i32 = arith.constant 0 : i32
    %c0_i32_0 = arith.constant 0 : i32
    %c0_i32_1 = arith.constant 0 : i32
    return %arg0, %c0_i32, %c0_i32_0 : i32, i32, i32
  }
  func.func @transform_4(%arg0: i32) -> (i32, i32) {
    %c0_i32 = arith.constant 0 : i32
    %c0_i32_0 = arith.constant 0 : i32
    %c0_i32_1 = arith.constant 0 : i32
    return %c0_i32, %c0_i32_0 : i32, i32
  }
  func.func @transform_5(%arg0: i32) -> (i32, i32) {
    %c0_i32 = arith.constant 0 : i32
    %c0_i32_0 = arith.constant 0 : i32
    %c0_i32_1 = arith.constant 0 : i32
    return %c0_i32, %c0_i32_0 : i32, i32
  }
  func.func @transform_6(%arg0: i32) -> (i32, i32) {
    %c0_i32 = arith.constant 0 : i32
    %c0_i32_0 = arith.constant 0 : i32
    %c0_i32_1 = arith.constant 0 : i32
    return %c0_i32, %c0_i32_0 : i32, i32
  }
  func.func @transform_7(%arg0: i32) -> (i32, i32) {
    %c0_i32 = arith.constant 0 : i32
    %c0_i32_0 = arith.constant 0 : i32
    %c0_i32_1 = arith.constant 0 : i32
    return %c0_i32, %c0_i32_0 : i32, i32
  }
  func.func @transform_8(%arg0: i32) -> (i32, i32) {
    %c0_i32 = arith.constant 0 : i32
    %c0_i32_0 = arith.constant 0 : i32
    %c0_i32_1 = arith.constant 0 : i32
    return %c0_i32, %c0_i32_0 : i32, i32
  }
  func.func @transform_9(%arg0: i32) -> (i32, i32) {
    %c0_i32 = arith.constant 0 : i32
    %c0_i32_0 = arith.constant 0 : i32
    %c0_i32_1 = arith.constant 0 : i32
    return %c0_i32, %c0_i32_0 : i32, i32
  }
  func.func @transform_10(%arg0: i32) -> (i32, i32) {
    %c0_i32 = arith.constant 0 : i32
    %c0_i32_0 = arith.constant 0 : i32
    %c0_i32_1 = arith.constant 0 : i32
    return %c0_i32, %c0_i32_0 : i32, i32
  }
}

module attributes {stable_mosaic.version = 11 : i64} {
  func.func @_gcore_kernel(%arg0: i32, %arg1: memref<128x128xf32, #tpu.memory_space<vmem>>, %arg2: memref<128x128xbf16, #tpu.memory_space<vmem>>, %arg3: memref<1x2x128x128xbf16, #tpu.memory_space<vmem>>, %arg4: memref<1x4x128xf32, #tpu.memory_space<vmem>>, %arg5: memref<128x128xf32, #tpu.memory_space<vmem>>, %arg6: memref<2x128xf32, #tpu.memory_space<vmem>>, %arg7: memref<128x128xf32, #tpu.memory_space<vmem>>, %arg8: memref<1x128xf32, #tpu.memory_space<vmem>>, %arg9: memref<2x128xf32, #tpu.memory_space<vmem>>, %arg10: memref<128x128xf32, #tpu.memory_space<vmem>>, %arg11: memref<2x128xf32, #tpu.memory_space<vmem>>, %arg12: memref<128x128xf32, #tpu.memory_space<vmem>>) attributes {dimension_semantics = [#tpu.dimension_semantics<arbitrary>], iteration_bounds = array<i64: 3>, scalar_prefetch = 0 : i64, scratch_operands = 1 : i64, tpu.core_type = #tpu.core_type<tc>, window_params = [{pipeline_mode = #tpu.pipeline_mode<synchronous>, transform_indices = @transform_0, window_bounds = array<i64: 128, 128>}, {pipeline_mode = #tpu.pipeline_mode<synchronous>, transform_indices = @transform_1, window_bounds = array<i64: 128, 128>}, {transform_indices = @transform_2, window_bounds = array<i64: 1, 2, 128, 128>}, {transform_indices = @transform_3, window_bounds = array<i64: 1, 4, 128>}, {pipeline_mode = #tpu.pipeline_mode<synchronous>, transform_indices = @transform_4, window_bounds = array<i64: 128, 128>}, {pipeline_mode = #tpu.pipeline_mode<synchronous>, transform_indices = @transform_5, window_bounds = array<i64: 2, 128>}, {pipeline_mode = #tpu.pipeline_mode<synchronous>, transform_indices = @transform_6, window_bounds = array<i64: 128, 128>}, {pipeline_mode = #tpu.pipeline_mode<synchronous>, transform_indices = @transform_7, window_bounds = array<i64: 1, 128>}, {pipeline_mode = #tpu.pipeline_mode<synchronous>, transform_indices = @transform_8, window_bounds = array<i64: 2, 128>}, {pipeline_mode = #tpu.pipeline_mode<synchronous>, transform_indices = @transform_9, window_bounds = array<i64: 128, 128>}, {pipeline_mode = #tpu.pipeline_mode<synchronous>, transform_indices = @transform_10, window_bounds = array<i64: 2, 128>}]} {
    %c0_i32 = arith.constant 0 : i32
    %0 = arith.cmpi eq, %arg0, %c0_i32 : i32
    %1 = arith.extui %0 : i1 to i32
    %c0_i32_0 = arith.constant 0 : i32
    %2 = arith.cmpi ne, %1, %c0_i32_0 : i32
    scf.if %2 {
      %c0_39 = arith.constant 0 : index
      %c0_40 = arith.constant 0 : index
      %74 = vector.load %arg1[%c0_39, %c0_40] : memref<128x128xf32, #tpu.memory_space<vmem>>, vector<128x128xf32>
      %c0_41 = arith.constant 0 : index
      %c0_42 = arith.constant 0 : index
      %75 = vector.load %arg12[%c0_41, %c0_42] : memref<128x128xf32, #tpu.memory_space<vmem>>, vector<128x128xf32>
      tpu.vector_store %arg12[%c0_41, %c0_42], %74 {strides = array<i32>} : memref<128x128xf32, #tpu.memory_space<vmem>>, vector<128x128xf32>,
    } else {
    }
    %3 = tpu.iota {dimensions = array<i32: 0>} : vector<128x128xi32>
    %c16_i32 = arith.constant 16 : i32
    %4 = vector.broadcast %c16_i32 : i32 to vector<128x128xi32>
    %5 = arith.cmpi slt, %3, %4 : vector<128x128xi32>
    %c0 = arith.constant 0 : index
    %c0_1 = arith.constant 0 : index
    %6 = vector.load %arg2[%c0, %c0_1] : memref<128x128xbf16, #tpu.memory_space<vmem>>, vector<128x128xbf16>
    %c0_2 = arith.constant 0 : index
    %c0_3 = arith.constant 0 : index
    %7 = vector.load %arg12[%c0_2, %c0_3] : memref<128x128xf32, #tpu.memory_space<vmem>>, vector<128x128xf32>
    %8 = arith.truncf %7 : vector<128x128xf32> to vector<128x128xbf16>
    %cst = arith.constant dense<0.000000e+00> : vector<128x128xf32>
    %9 = tpu.matmul %6, %8, %cst {dimension_numbers = #tpu.dot_dimension_numbers<[1], [0], [0], [1], [0, 0, 1, 1], [], []>} : vector<128x128xbf16>, vector<128x128xbf16>, vector<128x128xf32> -> vector<128x128xf32>
    %c0_4 = arith.constant 0 : index
    %c0_5 = arith.constant 0 : index
    %c0_6 = arith.constant 0 : index
    %10 = vector.load %arg4[%c0_4, %c0_5, %c0_6] : memref<1x4x128xf32, #tpu.memory_space<vmem>>, vector<1x1x128xf32>
    %11 = vector.shape_cast %10 : vector<1x1x128xf32> to vector<1x128xf32>
    %c0_7 = arith.constant 0 : index
    %c1 = arith.constant 1 : index
    %c0_8 = arith.constant 0 : index
    %12 = vector.load %arg4[%c0_7, %c1, %c0_8] : memref<1x4x128xf32, #tpu.memory_space<vmem>>, vector<1x1x128xf32>
    %13 = vector.shape_cast %12 : vector<1x1x128xf32> to vector<1x128xf32>
    %c0_9 = arith.constant 0 : index
    %c2 = arith.constant 2 : index
    %c0_10 = arith.constant 0 : index
    %14 = vector.load %arg4[%c0_9, %c2, %c0_10] : memref<1x4x128xf32, #tpu.memory_space<vmem>>, vector<1x1x128xf32>
    %15 = vector.shape_cast %14 : vector<1x1x128xf32> to vector<1x128xf32>
    %c0_11 = arith.constant 0 : index
    %c3 = arith.constant 3 : index
    %c0_12 = arith.constant 0 : index
    %16 = vector.load %arg4[%c0_11, %c3, %c0_12] : memref<1x4x128xf32, #tpu.memory_space<vmem>>, vector<1x1x128xf32>
    %17 = vector.shape_cast %16 : vector<1x1x128xf32> to vector<1x128xf32>
    %18 = arith.truncf %9 : vector<128x128xf32> to vector<128x128xbf16>
    %c0_13 = arith.constant 0 : index
    %c0_14 = arith.constant 0 : index
    %c0_15 = arith.constant 0 : index
    %c0_16 = arith.constant 0 : index
    %19 = vector.load %arg3[%c0_13, %c0_14, %c0_15, %c0_16] : memref<1x2x128x128xbf16, #tpu.memory_space<vmem>>, vector<1x1x128x128xbf16>
    %20 = vector.shape_cast %19 : vector<1x1x128x128xbf16> to vector<128x128xbf16>
    %cst_17 = arith.constant dense<0.000000e+00> : vector<128x128xf32>
    %21 = tpu.matmul %18, %20, %cst_17 {dimension_numbers = #tpu.dot_dimension_numbers<[1], [0], [0], [1], [0, 0, 1, 1], [], []>} : vector<128x128xbf16>, vector<128x128xbf16>, vector<128x128xf32> -> vector<128x128xf32>
    %22 = vector.broadcast %11 : vector<1x128xf32> to vector<128x128xf32>
    %23 = arith.addf %21, %22 : vector<128x128xf32>
    %cst_18 = arith.constant 0.000000e+00 : f32
    %24 = vector.broadcast %cst_18 : f32 to vector<128x128xf32>
    %25 = arith.cmpf ogt, %23, %24 : vector<128x128xf32>
    %cst_19 = arith.constant 0.00999999977 : f32
    %26 = vector.broadcast %cst_19 : f32 to vector<128x128xf32>
    %27 = arith.mulf %26, %23 : vector<128x128xf32>
    %28 = arith.select %25, %23, %27 : vector<128x128xi1>, vector<128x128xf32>
    %29 = arith.truncf %28 : vector<128x128xf32> to vector<128x128xbf16>
    %c0_20 = arith.constant 0 : index
    %c1_21 = arith.constant 1 : index
    %c0_22 = arith.constant 0 : index
    %c0_23 = arith.constant 0 : index
    %30 = vector.load %arg3[%c0_20, %c1_21, %c0_22, %c0_23] : memref<1x2x128x128xbf16, #tpu.memory_space<vmem>>, vector<1x1x128x128xbf16>
    %31 = vector.shape_cast %30 : vector<1x1x128x128xbf16> to vector<128x128xbf16>
    %cst_24 = arith.constant dense<0.000000e+00> : vector<128x128xf32>
    %32 = tpu.matmul %29, %31, %cst_24 {dimension_numbers = #tpu.dot_dimension_numbers<[1], [0], [0], [1], [0, 0, 1, 1], [], []>} : vector<128x128xbf16>, vector<128x128xbf16>, vector<128x128xf32> -> vector<128x128xf32>
    %33 = vector.broadcast %13 : vector<1x128xf32> to vector<128x128xf32>
    %34 = arith.addf %32, %33 : vector<128x128xf32>
    %cst_25 = arith.constant 0.000000e+00 : f32
    %35 = vector.broadcast %cst_25 : f32 to vector<128x128xf32>
    %36 = arith.select %5, %34, %35 : vector<128x128xi1>, vector<128x128xf32>
    %cst_26 = arith.constant dense<0.000000e+00> : vector<128xf32>
    %37 = vector.multi_reduction <add>, %36, %cst_26 [0] : vector<128x128xf32> to vector<128xf32>
    %38 = vector.shape_cast %37 : vector<128xf32> to vector<1x128xf32>
    %39 = arith.mulf %36, %36 : vector<128x128xf32>
    %cst_27 = arith.constant dense<0.000000e+00> : vector<128xf32>
    %40 = vector.multi_reduction <add>, %39, %cst_27 [0] : vector<128x128xf32> to vector<128xf32>
    %41 = vector.shape_cast %40 : vector<128xf32> to vector<1x128xf32>
    %cst_28 = arith.constant 6.250000e-02 : f32
    %42 = vector.broadcast %cst_28 : f32 to vector<1x128xf32>
    %43 = arith.mulf %38, %42 : vector<1x128xf32>
    %cst_29 = arith.constant 6.250000e-02 : f32
    %44 = vector.broadcast %cst_29 : f32 to vector<1x128xf32>
    %45 = arith.mulf %41, %44 : vector<1x128xf32>
    %46 = arith.mulf %43, %43 : vector<1x128xf32>
    %47 = arith.subf %45, %46 : vector<1x128xf32>
    %cst_30 = arith.constant 0.000000e+00 : f32
    %48 = vector.broadcast %cst_30 : f32 to vector<1x128xf32>
    %49 = arith.maximumf %47, %48 : vector<1x128xf32>
    %50 = vector.broadcast %43 : vector<1x128xf32> to vector<128x128xf32>
    %51 = arith.subf %34, %50 : vector<128x128xf32>
    %cst_31 = arith.constant 9.99999974E-6 : f32
    %52 = vector.broadcast %cst_31 : f32 to vector<1x128xf32>
    %53 = arith.addf %49, %52 : vector<1x128xf32>
    %54 = math.rsqrt %53 : vector<1x128xf32>
    %55 = vector.broadcast %54 : vector<1x128xf32> to vector<128x128xf32>
    %56 = arith.mulf %51, %55 : vector<128x128xf32>
    %57 = vector.broadcast %15 : vector<1x128xf32> to vector<128x128xf32>
    %58 = arith.mulf %56, %57 : vector<128x128xf32>
    %59 = vector.broadcast %17 : vector<1x128xf32> to vector<128x128xf32>
    %60 = arith.addf %58, %59 : vector<128x128xf32>
    %c2_i32 = arith.constant 2 : i32
    %61 = arith.cmpi slt, %arg0, %c2_i32 : i32
    %cst_32 = arith.constant 0.000000e+00 : f32
    %62 = vector.broadcast %cst_32 : f32 to vector<128x128xf32>
    %63 = arith.cmpf ogt, %60, %62 : vector<128x128xf32>
    %cst_33 = arith.constant 0.00999999977 : f32
    %64 = vector.broadcast %cst_33 : f32 to vector<128x128xf32>
    %65 = arith.mulf %64, %60 : vector<128x128xf32>
    %66 = arith.select %63, %60, %65 : vector<128x128xi1>, vector<128x128xf32>
    %67 = arith.select %61, %66, %60 : vector<128x128xf32>
    %cst_34 = arith.constant 0.000000e+00 : f32
    %68 = vector.broadcast %cst_34 : f32 to vector<128x128xf32>
    %69 = arith.select %5, %67, %68 : vector<128x128xi1>, vector<128x128xf32>
    %c0_35 = arith.constant 0 : index
    %c0_36 = arith.constant 0 : index
    %70 = vector.load %arg12[%c0_35, %c0_36] : memref<128x128xf32, #tpu.memory_space<vmem>>, vector<128x128xf32>
    tpu.vector_store %arg12[%c0_35, %c0_36], %69 {strides = array<i32>} : memref<128x128xf32, #tpu.memory_space<vmem>>, vector<128x128xf32>,
    %c2_i32_37 = arith.constant 2 : i32
    %71 = arith.cmpi eq, %arg0, %c2_i32_37 : i32
    %72 = arith.extui %71 : i1 to i32
    %c0_i32_38 = arith.constant 0 : i32
    %73 = arith.cmpi ne, %72, %c0_i32_38 : i32
    scf.if %73 {
      %c0_39 = arith.constant 0 : index
      %c0_40 = arith.constant 0 : index
      %74 = vector.load %arg5[%c0_39, %c0_40] : memref<128x128xf32, #tpu.memory_space<vmem>>, vector<128x128xf32>
      %75 = arith.addf %69, %74 : vector<128x128xf32>
      %cst_41 = arith.constant 1.000000e+00 : f32
      %76 = vector.broadcast %cst_41 : f32 to vector<128x128xf32>
      %77 = arith.mulf %75, %76 : vector<128x128xf32>
      %78 = tpu.iota {dimensions = array<i32: 1>} : vector<128x128xi32>
      %c32_i32 = arith.constant 32 : i32
      %79 = vector.broadcast %c32_i32 : i32 to vector<128x128xi32>
      %80 = arith.cmpi slt, %78, %79 : vector<128x128xi32>
      %cst_42 = arith.constant 0xFF800000 : f32
      %81 = vector.broadcast %cst_42 : f32 to vector<128x128xf32>
      %82 = arith.select %80, %77, %81 : vector<128x128xi1>, vector<128x128xf32>
      %cst_43 = arith.constant dense<0xFF800000> : vector<128xf32>
      %83 = vector.multi_reduction <maximumf>, %82, %cst_43 [1] : vector<128x128xf32> to vector<128xf32>
      %84 = vector.shape_cast %83 : vector<128xf32> to vector<128x1xf32>
      %85 = vector.broadcast %84 : vector<128x1xf32> to vector<128x128xf32>
      %86 = arith.cmpf oge, %82, %85 : vector<128x128xf32>
      %87 = arith.andi %86, %80 : vector<128x128xi1>
      %c128_i32 = arith.constant 128 : i32
      %88 = vector.broadcast %c128_i32 : i32 to vector<128x128xi32>
      %89 = arith.select %87, %78, %88 : vector<128x128xi1>, vector<128x128xi32>
      %cst_44 = arith.constant dense<2147483647> : vector<128xi32>
      %90 = vector.multi_reduction <minsi>, %89, %cst_44 [1] : vector<128x128xi32> to vector<128xi32>
      %91 = vector.shape_cast %90 : vector<128xi32> to vector<128x1xi32>
      %92 = vector.broadcast %91 : vector<128x1xi32> to vector<128x128xi32>
      %93 = arith.cmpi eq, %78, %92 : vector<128x128xi32>
      %94 = arith.extui %93 : vector<128x128xi1> to vector<128x128xi32>
      %95 = arith.sitofp %94 : vector<128x128xi32> to vector<128x128xf32>
      %c0_45 = arith.constant 0 : index
      %c0_46 = arith.constant 0 : index
      %96 = vector.load %arg10[%c0_45, %c0_46] : memref<128x128xf32, #tpu.memory_space<vmem>>, vector<128x128xf32>
      tpu.vector_store %arg10[%c0_45, %c0_46], %95 {strides = array<i32>} : memref<128x128xf32, #tpu.memory_space<vmem>>, vector<128x128xf32>,
      %c0_47 = arith.constant 0 : index
      %c0_48 = arith.constant 0 : index
      %97 = vector.load %arg6[%c0_47, %c0_48] : memref<2x128xf32, #tpu.memory_space<vmem>>, vector<2x128xf32>
      %cst_49 = arith.constant dense<0.000000e+00> : vector<2x128xf32>
      %98 = tpu.matmul %97, %95, %cst_49 {dimension_numbers = #tpu.dot_dimension_numbers<[1], [0], [0], [1], [0, 0, 1, 1], [], []>} : vector<2x128xf32>, vector<128x128xf32>, vector<2x128xf32> -> vector<2x128xf32>
      %c0_50 = arith.constant 0 : index
      %c0_51 = arith.constant 0 : index
      %99 = vector.load %arg11[%c0_50, %c0_51] : memref<2x128xf32, #tpu.memory_space<vmem>>, vector<2x128xf32>
      tpu.vector_store %arg11[%c0_50, %c0_51], %98 {strides = array<i32>} : memref<2x128xf32, #tpu.memory_space<vmem>>, vector<2x128xf32>,
      %c0_52 = arith.constant 0 : index
      %c0_53 = arith.constant 0 : index
      %100 = vector.load %arg7[%c0_52, %c0_53] : memref<128x128xf32, #tpu.memory_space<vmem>>, vector<128x128xf32>
      %cst_54 = arith.constant dense<0.000000e+00> : vector<2x128xf32>
      %101 = tpu.matmul %98, %100, %cst_54 {dimension_numbers = #tpu.dot_dimension_numbers<[1], [0], [0], [1], [0, 0, 1, 1], [], []>} : vector<2x128xf32>, vector<128x128xf32>, vector<2x128xf32> -> vector<2x128xf32>
      %c0_55 = arith.constant 0 : index
      %c0_56 = arith.constant 0 : index
      %102 = vector.load %arg8[%c0_55, %c0_56] : memref<1x128xf32, #tpu.memory_space<vmem>>, vector<1x128xf32>
      %103 = vector.broadcast %102 : vector<1x128xf32> to vector<2x128xf32>
      %104 = arith.addf %101, %103 : vector<2x128xf32>
      %c0_57 = arith.constant 0 : index
      %c0_58 = arith.constant 0 : index
      %105 = vector.load %arg9[%c0_57, %c0_58] : memref<2x128xf32, #tpu.memory_space<vmem>>, vector<2x128xf32>
      tpu.vector_store %arg9[%c0_57, %c0_58], %104 {strides = array<i32>} : memref<2x128xf32, #tpu.memory_space<vmem>>, vector<2x128xf32>,
    } else {
    }
    return
  }
  func.func @transform_0(%arg0: i32) -> (i32, i32) {
    %c0_i32 = arith.constant 0 : i32
    %c0_i32_0 = arith.constant 0 : i32
    %c0_i32_1 = arith.constant 0 : i32
    return %c0_i32, %c0_i32_0 : i32, i32
  }
  func.func @transform_1(%arg0: i32) -> (i32, i32) {
    %c0_i32 = arith.constant 0 : i32
    %c0_i32_0 = arith.constant 0 : i32
    %c0_i32_1 = arith.constant 0 : i32
    return %c0_i32, %c0_i32_0 : i32, i32
  }
  func.func @transform_2(%arg0: i32) -> (i32, i32, i32, i32) {
    %c0_i32 = arith.constant 0 : i32
    %c0_i32_0 = arith.constant 0 : i32
    %c0_i32_1 = arith.constant 0 : i32
    %c0_i32_2 = arith.constant 0 : i32
    return %arg0, %c0_i32, %c0_i32_0, %c0_i32_1 : i32, i32, i32, i32
  }
  func.func @transform_3(%arg0: i32) -> (i32, i32, i32) {
    %c0_i32 = arith.constant 0 : i32
    %c0_i32_0 = arith.constant 0 : i32
    %c0_i32_1 = arith.constant 0 : i32
    return %arg0, %c0_i32, %c0_i32_0 : i32, i32, i32
  }
  func.func @transform_4(%arg0: i32) -> (i32, i32) {
    %c0_i32 = arith.constant 0 : i32
    %c0_i32_0 = arith.constant 0 : i32
    %c0_i32_1 = arith.constant 0 : i32
    return %c0_i32, %c0_i32_0 : i32, i32
  }
  func.func @transform_5(%arg0: i32) -> (i32, i32) {
    %c0_i32 = arith.constant 0 : i32
    %c0_i32_0 = arith.constant 0 : i32
    %c0_i32_1 = arith.constant 0 : i32
    return %c0_i32, %c0_i32_0 : i32, i32
  }
  func.func @transform_6(%arg0: i32) -> (i32, i32) {
    %c0_i32 = arith.constant 0 : i32
    %c0_i32_0 = arith.constant 0 : i32
    %c0_i32_1 = arith.constant 0 : i32
    return %c0_i32, %c0_i32_0 : i32, i32
  }
  func.func @transform_7(%arg0: i32) -> (i32, i32) {
    %c0_i32 = arith.constant 0 : i32
    %c0_i32_0 = arith.constant 0 : i32
    %c0_i32_1 = arith.constant 0 : i32
    return %c0_i32, %c0_i32_0 : i32, i32
  }
  func.func @transform_8(%arg0: i32) -> (i32, i32) {
    %c0_i32 = arith.constant 0 : i32
    %c0_i32_0 = arith.constant 0 : i32
    %c0_i32_1 = arith.constant 0 : i32
    return %c0_i32, %c0_i32_0 : i32, i32
  }
  func.func @transform_9(%arg0: i32) -> (i32, i32) {
    %c0_i32 = arith.constant 0 : i32
    %c0_i32_0 = arith.constant 0 : i32
    %c0_i32_1 = arith.constant 0 : i32
    return %c0_i32, %c0_i32_0 : i32, i32
  }
  func.func @transform_10(%arg0: i32) -> (i32, i32) {
    %c0_i32 = arith.constant 0 : i32
    %c0_i32_0 = arith.constant 0 : i32
    %c0_i32_1 = arith.constant 0 : i32
    return %c0_i32, %c0_i32_0 : i32, i32
  }
}

</mosaic_0001>

<bundles_post_ra>
// kernel: tpu_custom_call.1
= control target key start
LH: loop header
LB: loop body
LE: loop exit
PB: predicated region body
PF: predicated region fallthrough
CT: control target
= control target key end

     0   :  { %s3851_s0 = inlined_call_operand.hbm [shape: f32[128,128], index: 0, kind: input, shape index: {}]   ;;  %s3852_s1 = inlined_call_operand.hbm [shape: bf16[128,128], index: 1, kind: input, shape index: {}]   ;;  %s3853_s2 = inlined_call_operand.hbm [shape: bf16[3,2,128,128], index: 2, kind: input, shape index: {}]   ;;  %s3854_s3 = inlined_call_operand.hbm [shape: f32[3,4,128], index: 3, kind: input, shape index: {}]   ;;  %s3855_s4 = inlined_call_operand.hbm [shape: f32[128,128], index: 4, kind: input, shape index: {}]   ;;  %s3856_s5 = inlined_call_operand.vmem [shape: f32[2,128], index: 5, kind: input, shape index: {}]   ;;  %s3857_s6 = inlined_call_operand.hbm [shape: f32[128,128], index: 6, kind: input, shape index: {}]   ;;  %s3858_s7 = inlined_call_operand.vmem [shape: f32[1,128], index: 7, kind: input, shape index: {}]   ;;  %s3859_s8 = inlined_call_operand.hbm [shape: f32[2,128], index: 8, kind: output, shape index: {0}]   ;;  %s3860_s9 = inlined_call_operand.hbm [shape: f32[128,128], index: 9, kind: output, shape index: {1}]   ;;  %s3861_s10 = inlined_call_operand.hbm [shape: f32[2,128], index: 10, kind: output, shape index: {2}]  }
   0x1   :  { %3881 = sst [smem:[#allocation26_spill]] %s3851_s0 }
   0x2   :  { %3882 = sst [smem:[#allocation27_spill]] %s3852_s1 }
   0x3   :  { %3883 = sst [smem:[#allocation28_spill]] %s3853_s2 }
   0x4   :  { %3884 = sst [smem:[#allocation29_spill]] %s3859_s8 }
   0x5   :  { %3885 = sst [smem:[#allocation30_spill]] %s3861_s10 }
   0x6   :  { %16 = vsyncpa [#allocation4], 0 }
   0x7   :  { %17 = vsyncpa [#allocation7], 0 }
   0x8   :  { %18 = vsyncpa [#allocation12], 0 }
   0x9   :  { %19 = vsyncpa [#allocation5], 0 }
   0xa   :  { %20 = vsyncpa [#allocation15], 0  ;;  %s3055_s13 = smov 0   ;;  %s3057_s14 = smov 0  }
   0xb   :  { %s3059_s15 = smov 0   ;;  %s3061_s16 = smov 0  }
   0xc LB: > { %s3074_s17 = sadd.s32 4294967295, %s2978_s16   ;;  %p88_p0 = scmp.ne.s32.totalorder %s2970_s14, %s2966_s13  ;;  %s2978_s16 = sphi %s3061_s16, %s3918_s16   ;;  %s2974_s15 = sphi %s3059_s15, %s3922_s15   ;;  %s2970_s14 = sphi %s3057_s14, %s3921_s14   ;;  %s2966_s13 = sphi %s3055_s13, %s3920_s13  }
   0xd   : > { %p3862_p1 = scmp.eq.s32.totalorder %s3074_s17, 0  ;;  %p2109_p2 = scmp.ge.s32.totalorder %s2978_s16, 1 }
   0xe   : > { %p272_p3 = scmp.lt.s32.totalorder %s2978_s16, 4  ;;  %s2980_s20 = smov [#allocation3]  }
   0xf   : > { %p3083_p5 = por %p3862_p1, %p88_p0  ;;  %s284_s21 = sshll.u32 %s2980_s20, 4  ;;  %s285_s21 = int_to_ptr.vmem [resolvable:$true] %s284_s21 }
  0x10   : > { %p3087_p6 = pnand %p2109_p2, %p272_p3  ;;  %s2981_s23 = smov [#allocation6]  }
  0x11   : > { %s3886_s18 = scalar_select %p3083_p5, 1, 0 }
  0x12   : > { %s3887_s19 = scalar_select %p3087_p6, 1, 0 }
  0x13   : > { %p2559_p7 = pneg %p3087_p6  ;;  %s297_s24 = sshll.u32 %s2981_s23, 4  ;;  %s3099_s24 = int_to_ptr.vmem [resolvable:$true] %s297_s24 }
  0x14   : > { %s3889_s0 = sld [smem:[#allocation26_spill]] }
  0x15   : > { %p3095_p8 = pnand %p2559_p7, %p3862_p1 }
  0x17   : > { %s3888_s22 = scalar_select %p3095_p8, 1, 0 }
  0x18   : > { %p3109_p10 = pneg %p3095_p8 }
  0x1a   : > { %s2670_s27 = scalar_lea.hbm %s3889_s0, 2048 }
  0x1b   : > { %p2671_p9 = scmp.ne.s32.totalorder %s3889_s0, %s2670_s27  ;;  %p2677_p13 = scmp.lt.u32.totalorder %s2670_s27, %s3889_s0 }
  0x1d   : > { %p2673_p11 = pnand %p3109_p10, %p2671_p9 }
  0x1f   : > { %p2674_p12 = pneg %p2673_p11 }
  0x21   : > { %p2679_p0 = pnand %p2677_p13, %p2674_p12 }
  0x23   : > { %2682 = shalt.err (!%p2679_p0)
}
  0x24   : > { %s2683_s13 = scalar_lea.vmem %s285_s21, 2048  ;;  %p2691_p4 = scmp.lt.s32.totalorder %s285_s21, %s285_s21 }
  0x25   : > { %p2684_p2 = scmp.ne.s32.totalorder %s285_s21, %s2683_s13  ;;  %p2692_p1 = scmp.lt.s32.totalorder %s2683_s13, %s2683_s13 }
  0x27   : > { %p2686_p3 = pnand %p2684_p2, %p3109_p10  ;;  %p2693_p5 = por %p2692_p1, %p2691_p4 }
  0x29   : > { %p2687_p7 = pneg %p2686_p3 }
  0x2b   : > { %p2694_p6 = pnand %p2693_p5, %p2687_p7 }
  0x2d   : > { %2697 = shalt.err (!%p2694_p6)
}
  0x2e   : > { %s3866_s20 = smov 128   ;;  %s3868_s23 = smov 8  }
  0x2f   : > { %2562 = dma.hbm_to_vmem [thread:$0]  (!%p3095_p8), %s3889_s0, 2048, %s285_s21, [#allocation4], %s3866_s20, %s3866_s20, %s3868_s23  }
  0x30   : > { %s3891_s1 = sld [smem:[#allocation27_spill]] }
  0x36   : > { %s2698_s29 = scalar_lea.hbm %s3891_s1, 1024 }
  0x37   : > { %p2699_p1 = scmp.ne.s32.totalorder %s3891_s1, %s2698_s29  ;;  %p2705_p6 = scmp.lt.u32.totalorder %s2698_s29, %s3891_s1 }
  0x39   : > { %p2701_p4 = pnand %p2699_p1, %p3109_p10 }
  0x3b   : > { %p2702_p5 = pneg %p2701_p4 }
  0x3d   : > { %p2707_p9 = pnand %p2705_p6, %p2702_p5 }
  0x3f   : > { %2710 = shalt.err (!%p2707_p9)
}
  0x40   : > { %s2711_s21 = scalar_lea.vmem %s3099_s24, 1024  ;;  %p2719_p0 = scmp.lt.s32.totalorder %s3099_s24, %s3099_s24 }
  0x41   : > { %p2712_p11 = scmp.ne.s32.totalorder %s3099_s24, %s2711_s21  ;;  %p2720_p2 = scmp.lt.s32.totalorder %s2711_s21, %s2711_s21 }
  0x43   : > { %p2714_p12 = pnand %p2712_p11, %p3109_p10  ;;  %p2721_p3 = por %p2720_p2, %p2719_p0 }
  0x45   : > { %p2715_p13 = pneg %p2714_p12 }
  0x47   : > { %p2722_p7 = pnand %p2721_p3, %p2715_p13 }
  0x49   : > { %2725 = shalt.err (!%p2722_p7)
}
  0x4a   : > { %s3871_s25 = smov 64   ;;  %s3872_s10 = smov 4  }
  0x4b   : > { %2565 = dma.hbm_to_vmem [thread:$0]  (!%p3095_p8), %s3891_s1, 1024, %s3099_s24, [#allocation7], %s3871_s25, %s3871_s25, %s3872_s10  }
  0x4c   : > { %s3155_s28 = sadd.s32 1, %s2978_s16   ;;  %s75_s11 = sadd.s32 1, %s2974_s15 }
  0x4d   : > { %3892 = sst [smem:[#allocation24_spill]] %s3155_s28  ;;  %s72_s29 = ssub.s32 %s2978_s16, %s3155_s28 }
  0x4e   : > { %p73_p1 = scmp.eq.s32.totalorder %s72_s29, 0  ;;  %p82_p4 = scmp.ne.s32.totalorder %s2974_s15, %s2970_s14 }
  0x4f   : > { %p83_p5 = scmp.eq.s32.totalorder %s2978_s16, 0  ;;  %p2583_p9 = scmp.lt.s32.totalorder %s2978_s16, 3 }
  0x50   : > { %s3164_s12 = scalar_select %p73_p1, %s2974_s15, %s75_s11  }
  0x51   : > { %p84_p6 = por %p83_p5, %p82_p4  ;;  %s343_s13 = sand.u32 1, %s2978_s16  }
  0x52   : > { %3893 = sst [smem:[#allocation25_spill]] %s3164_s12  ;;  %s3870_s21 = sand.u32 1, %s2974_s15  }
  0x53   : > { %s2115_s20 = sshll.u32 %s3870_s21, 7  ;;  %s2214_s23 = sshll.u32 %s2978_s16, 11 }
  0x54   : > { %s3894_s2 = sld [smem:[#allocation28_spill]]  ;;  %s347_s27 = scalar_lea.vmem [#allocation8], %s2115_s20 }
  0x55   : > { %s354_s29 = sshll.u32 %s347_s27, 4  ;;  %p3179_p11 = pnand %p2583_p9, %p84_p6  ;;  %s3177_s29 = int_to_ptr.vmem [resolvable:$true] %s354_s29 }
  0x56   : > { %s2986_s21 = smov [#allocation10]   ;;  %s3185_s0 = scalar_lea.sflag [#allocation4], %s343_s13 }
  0x57   : > { %s3895_s11 = scalar_select %p3179_p11, 1, 0 }
  0x58   : > { %s3183_s25 = sshll.u32 %s2986_s21, 4  ;;  %p3877_p13 = pneg %p3179_p11  ;;  %s311_s25 = int_to_ptr.vmem [resolvable:$true] %s3183_s25 }
  0x5a   : > { %s3175_s24 = scalar_lea.hbm %s3894_s2, %s2214_s23  ;;  %s2731_s27 = scalar_lea.hbm %s3894_s2, 6144 }
  0x5b   : > { %s2726_s23 = scalar_lea.hbm %s3175_s24, 2048  ;;  %p2732_p3 = scmp.lt.u32.totalorder %s3175_s24, %s3894_s2 }
  0x5c   : > { %p2727_p12 = scmp.ne.s32.totalorder %s3175_s24, %s2726_s23  ;;  %p2733_p7 = scmp.lt.u32.totalorder %s2731_s27, %s2726_s23 }
  0x5d   : > { %p2735_p4 = scmp.lt.u32.totalorder %s2726_s23, %s3175_s24 }
  0x5e   : > { %p2729_p0 = pnand %p3877_p13, %p2727_p12  ;;  %p2734_p1 = por %p2733_p7, %p2732_p3 }
  0x60   : > { %p2730_p2 = pneg %p2729_p0  ;;  %p2736_p5 = por %p2735_p4, %p2734_p1 }
  0x62   : > { %p2737_p6 = pnand %p2736_p5, %p2730_p2 }
  0x64   : > { %2740 = shalt.err (!%p2737_p6)
}
  0x65   : > { %s2741_s13 = scalar_lea.vmem %s3177_s29, 2048  ;;  %s2987_s21 = smov [#allocation8]  }
  0x66   : > { %p2742_p9 = scmp.ne.s32.totalorder %s3177_s29, %s2741_s13  ;;  %s2746_s20 = sshll.u32 %s2987_s21, 4  ;;  %s2747_s20 = int_to_ptr.vmem [resolvable:$false] %s2746_s20 }
  0x67   : > { %s2748_s1 = scalar_lea.vmem %s2747_s20, 4096  ;;  %p2749_p8 = scmp.lt.s32.totalorder %s3177_s29, %s2747_s20 }
  0x68   : > { %p2744_p12 = pnand %p2742_p9, %p3877_p13  ;;  %p2750_p3 = scmp.lt.s32.totalorder %s2748_s1, %s2741_s13 }
  0x6a   : > { %p2745_p0 = pneg %p2744_p12  ;;  %p2751_p7 = por %p2750_p3, %p2749_p8 }
  0x6c   : > { %p2752_p1 = pnand %p2751_p7, %p2745_p0 }
  0x6e   : > { %2755 = shalt.err (!%p2752_p1)
}
  0x6f   : > { %s3896_s10 = smov 4   ;;  %s3897_s23 = smov 64  }
  0x70   : > { %2575 = dma.hbm_to_vmem [thread:$0]  (!%p3179_p11), %s3175_s24, 2048, %s3177_s29, %s3185_s0, %s3897_s23, %s3897_s23, %s3896_s10  }
  0x71   : > { %s2988_s26 = smov [#allocation11]   ;;  %s2756_s13 = scalar_lea.hbm %s3855_s4, 2048 }
  0x72   : > { %s326_s27 = sshll.u32 %s2988_s26, 4  ;;  %p2757_p8 = scmp.ne.s32.totalorder %s3855_s4, %s2756_s13  ;;  %s327_s27 = int_to_ptr.vmem [resolvable:$true] %s326_s27 }
  0x73   : > { %p2763_p5 = scmp.lt.u32.totalorder %s2756_s13, %s3855_s4 }
  0x74   : > { %p2759_p2 = pnand %p2757_p8, %p3109_p10 }
  0x76   : > { %p2760_p4 = pneg %p2759_p2 }
  0x78   : > { %p2765_p6 = pnand %p2763_p5, %p2760_p4 }
  0x7a   : > { %2768 = shalt.err (!%p2765_p6)
}
  0x7b   : > { %s2769_s24 = scalar_lea.vmem %s311_s25, 2048  ;;  %p2777_p3 = scmp.lt.s32.totalorder %s311_s25, %s311_s25 }
  0x7c   : > { %p2770_p9 = scmp.ne.s32.totalorder %s311_s25, %s2769_s24  ;;  %p2778_p7 = scmp.lt.s32.totalorder %s2769_s24, %s2769_s24 }
  0x7e   : > { %p2772_p12 = pnand %p2770_p9, %p3109_p10  ;;  %p2779_p1 = por %p2778_p7, %p2777_p3 }
  0x80   : > { %p2773_p0 = pneg %p2772_p12 }
  0x82   : > { %p2780_p13 = pnand %p2779_p1, %p2773_p0 }
  0x84   : > { %2783 = shalt.err (!%p2780_p13)
}
  0x85   : > { %p3898_p8 = scmp.ne.s32.totalorder %s3888_s22, 0  ;;  %s3899_s2 = smov 8  }
  0x86   : > { %s3900_s29 = smov 128   ;;  %s3901_s10 = sand.u32 1, %s2974_s15  }
  0x87   : > { %2568 = dma.hbm_to_vmem [thread:$0]  (!%p3898_p8), %s3855_s4, 2048, %s311_s25, [#allocation7], %s3900_s29, %s3900_s29, %s3899_s2  }
  0x88   : > { %s2118_s23 = sshll.u32 %s3901_s10, 2  ;;  %s2784_s20 = scalar_lea.hbm %s3857_s6, 2048 }
  0x89   : > { %p2785_p13 = scmp.ne.s32.totalorder %s3857_s6, %s2784_s20  ;;  %p2791_p5 = scmp.lt.u32.totalorder %s2784_s20, %s3857_s6 }
  0x8b   : > { %p2787_p2 = pnand %p2785_p13, %p3109_p10 }
  0x8d   : > { %p2788_p4 = pneg %p2787_p2 }
  0x8f   : > { %p2793_p6 = pnand %p2791_p5, %p2788_p4 }
  0x91   : > { %2796 = shalt.err (!%p2793_p6)
}
  0x92   : > { %s2797_s25 = scalar_lea.vmem %s327_s27, 2048  ;;  %p2805_p3 = scmp.lt.s32.totalorder %s327_s27, %s327_s27 }
  0x93   : > { %p2798_p9 = scmp.ne.s32.totalorder %s327_s27, %s2797_s25  ;;  %p2806_p7 = scmp.lt.s32.totalorder %s2797_s25, %s2797_s25 }
  0x95   : > { %p2800_p12 = pnand %p2798_p9, %p3109_p10  ;;  %p2807_p1 = por %p2806_p7, %p2805_p3 }
  0x97   : > { %p2801_p0 = pneg %p2800_p12 }
  0x99   : > { %p2808_p11 = pnand %p2807_p1, %p2801_p0 }
  0x9b   : > { %2811 = shalt.err (!%p2808_p11)
}
  0x9c   : > { %2571 = dma.hbm_to_vmem [thread:$0]  (!%p3898_p8), %s3857_s6, 2048, %s327_s27, [#allocation12], %s3900_s29, %s3900_s29, %s3899_s2  }
  0x9d   : > { %s2119_s12 = sshll.u32 %s2978_s16, 6  ;;  %s368_s22 = scalar_lea.vmem [#allocation9], %s2118_s23 }
  0x9e   : > { %s3265_s26 = scalar_lea.hbm %s3854_s3, %s2119_s12  ;;  %s375_s21 = sshll.u32 %s368_s22, 4  ;;  %s376_s21 = int_to_ptr.vmem [resolvable:$true] %s375_s21 }
  0x9f   : > { %s2812_s20 = scalar_lea.hbm %s3265_s26, 64  ;;  %p3902_p11 = scmp.ne.s32.totalorder %s3895_s11, 0 }
  0xa0   : > { %p2813_p10 = scmp.ne.s32.totalorder %s3265_s26, %s2812_s20  ;;  %s2817_s2 = scalar_lea.hbm %s3854_s3, 192 }
  0xa1   : > { %p3903_p13 = pneg %p3902_p11  ;;  %p2818_p8 = scmp.lt.u32.totalorder %s3265_s26, %s3854_s3 }
  0xa2   : > { %p2819_p5 = scmp.lt.u32.totalorder %s2817_s2, %s2812_s20  ;;  %p2821_p9 = scmp.lt.u32.totalorder %s2812_s20, %s3265_s26 }
  0xa3   : > { %p2815_p2 = pnand %p2813_p10, %p3903_p13 }
  0xa4   : > { %p2820_p6 = por %p2819_p5, %p2818_p8 }
  0xa5   : > { %p2816_p4 = pneg %p2815_p2 }
  0xa6   : > { %p2822_p12 = por %p2821_p9, %p2820_p6 }
  0xa8   : > { %p2823_p0 = pnand %p2822_p12, %p2816_p4 }
  0xaa   : > { %2826 = shalt.err (!%p2823_p0)
}
  0xab   : > { %s2827_s23 = scalar_lea.vmem %s376_s21, 64  ;;  %p3904_p7 = pmov %p3903_p13 }
  0xac   : > { %p2828_p3 = scmp.ne.s32.totalorder %s376_s21, %s2827_s23  ;;  %s2989_s1 = smov [#allocation9]  }
  0xad   : > { %s2832_s24 = sshll.u32 %s2989_s1, 4  ;;  %s2833_s24 = int_to_ptr.vmem [resolvable:$false] %s2832_s24 }
  0xae   : > { %p2830_p1 = pnand %p2828_p3, %p3904_p7  ;;  %s2834_s25 = scalar_lea.vmem %s2833_s24, 128 }
  0xaf   : > { %p2835_p13 = scmp.lt.s32.totalorder %s376_s21, %s2833_s24  ;;  %p2836_p2 = scmp.lt.s32.totalorder %s2834_s25, %s2827_s23 }
  0xb0   : > { %p2831_p10 = pneg %p2830_p1 }
  0xb1   : > { %p2837_p5 = por %p2836_p2, %p2835_p13 }
  0xb3   : > { %p2838_p8 = pnand %p2837_p5, %p2831_p10 }
  0xb5   : > { %2841 = shalt.err (!%p2838_p8)
}
  0xb6   : > { %2578 = dma.hbm_to_vmem [thread:$0]  (!%p3902_p11), %s3265_s26, 64, %s376_s21, %s3185_s0  }
  0xb7   : > { %p3905_p4 = scmp.ne.s32.totalorder %s3887_s19, 0 }
  0xb8   : > { %p3906_p6 = scmp.eq.s32.totalorder (!%p3905_p4), %s3074_s17, 0 }
  0xb9   : > { %384 = sbr.rel (%p3905_p4) target bundleno = 1945 (0x799), region = 52 }
  0xc0   : > { %2937 = dma.done.wait (%p3906_p6), [#allocation4], 2048   ;;  %p3907_p9 = pmov %p3906_p6 }
  0xc1   : > { %p3908_p12 = pmov %p3906_p6 }
  0xc2   : > { %2939 = vsyncadd (%p3907_p9), [#allocation4], 4294965248 }
  0xc3   : > { %2941 = dma.done.wait (%p3908_p12), [#allocation7], 1024   ;;  %p3909_p0 = pmov %p3906_p6 }
  0xc4   : > { %s394_s11 = sand.u32 1, %s3074_s17   ;;  %s396_s0 = sand.u32 1, %s2970_s14  }
  0xc5   : > { %2943 = vsyncadd (%p3909_p0), [#allocation7], 4294966272  ;;  %s2123_s8 = sshll.u32 %s396_s0, 7  ;;  %s395_s19 = scalar_lea.sflag [#allocation4], %s394_s11 }
  0xc6   : > { %s3299_s28 = scalar_lea.vmem [#allocation8], %s2123_s8  ;;  %p3910_p11 = scmp.ne.s32.totalorder %s3886_s18, 0 }
  0xc8   : > { %2945 = dma.done.wait (%p3910_p11), %s395_s19, 2112  }
  0xc9   : > { %2947 = vsyncadd (%p3910_p11), %s395_s19, 4294965184  ;;  %s2124_s12 = sshll.u32 %s396_s0, 2  ;;  %p3911_p3 = pmov %p3909_p0 }
  0xca   : > { %s3305_s30 = scalar_lea.vmem [#allocation9], %s2124_s12 }
  0xcb   : > { %2949 = dma.done.wait (%p3911_p3), [#allocation7], 2048   ;;  %p3912_p7 = pmov %p3909_p0 }
  0xcc   : > { %p3913_p1 = pmov %p3909_p0 }
  0xcd   : > { %2951 = vsyncadd (%p3912_p7), [#allocation7], 4294965248 }
  0xce   : > { %2953 = dma.done.wait (%p3913_p1), [#allocation12], 2048   ;;  %p3914_p10 = pmov %p3909_p0 }
  0xcf   : > { %p3915_p13 = scmp.ne.s32.totalorder %s3074_s17, 0 }
  0xd0   : > { %2955 = vsyncadd (%p3914_p10), [#allocation12], 4294965248  ;;  %v457_v0 = vld [vmem:[#allocation3] sm:$0xff] (!%p3915_p13)  ;;  %v458_v1 = vld [vmem:[#allocation3 + $0x8] sm:$0xff] (!%p3915_p13) }
  0xd1   : > { %456 = sbr.rel (%p3915_p13) target bundleno = 217 (0xd9), region = 80  ;;  %v459_v2 = vld [vmem:[#allocation3 + $0x10] sm:$0xff] (!%p3915_p13)  ;;  %473 = vst [vmem:[#allocation2] sm:$0xff] (!%p3915_p13), %v457_v0  ;;  %474 = vst [vmem:[#allocation2 + $0x8] sm:$0xff] (!%p3915_p13), %v458_v1  ;;  %v460_v3 = vld [vmem:[#allocation3 + $0x18] sm:$0xff] (!%p3915_p13) }
  0xd2   : > { %475 = vst [vmem:[#allocation2 + $0x10] sm:$0xff] (!%p3915_p13), %v459_v2  ;;  %v461_v4 = vld [vmem:[#allocation3 + $0x20] sm:$0xff] (!%p3915_p13)  ;;  %v462_v5 = vld [vmem:[#allocation3 + $0x28] sm:$0xff] (!%p3915_p13)  ;;  %476 = vst [vmem:[#allocation2 + $0x18] sm:$0xff] (!%p3915_p13), %v460_v3 }
  0xd3   : > { %477 = vst [vmem:[#allocation2 + $0x20] sm:$0xff] (!%p3915_p13), %v461_v4  ;;  %478 = vst [vmem:[#allocation2 + $0x28] sm:$0xff] (!%p3915_p13), %v462_v5  ;;  %v463_v6 = vld [vmem:[#allocation3 + $0x30] sm:$0xff] (!%p3915_p13)  ;;  %v464_v7 = vld [vmem:[#allocation3 + $0x38] sm:$0xff] (!%p3915_p13) }
  0xd4   : > { %v465_v8 = vld [vmem:[#allocation3 + $0x40] sm:$0xff] (!%p3915_p13)  ;;  %479 = vst [vmem:[#allocation2 + $0x30] sm:$0xff] (!%p3915_p13), %v463_v6  ;;  %480 = vst [vmem:[#allocation2 + $0x38] sm:$0xff] (!%p3915_p13), %v464_v7  ;;  %v466_v9 = vld [vmem:[#allocation3 + $0x48] sm:$0xff] (!%p3915_p13) }
  0xd5   : > { %481 = vst [vmem:[#allocation2 + $0x40] sm:$0xff] (!%p3915_p13), %v465_v8  ;;  %v467_v10 = vld [vmem:[#allocation3 + $0x50] sm:$0xff] (!%p3915_p13)  ;;  %v468_v11 = vld [vmem:[#allocation3 + $0x58] sm:$0xff] (!%p3915_p13)  ;;  %482 = vst [vmem:[#allocation2 + $0x48] sm:$0xff] (!%p3915_p13), %v466_v9 }
  0xd6   : > { %483 = vst [vmem:[#allocation2 + $0x50] sm:$0xff] (!%p3915_p13), %v467_v10  ;;  %484 = vst [vmem:[#allocation2 + $0x58] sm:$0xff] (!%p3915_p13), %v468_v11  ;;  %v469_v12 = vld [vmem:[#allocation3 + $0x60] sm:$0xff] (!%p3915_p13)  ;;  %v470_v13 = vld [vmem:[#allocation3 + $0x68] sm:$0xff] (!%p3915_p13) }
  0xd7   : > { %v471_v14 = vld [vmem:[#allocation3 + $0x70] sm:$0xff] (!%p3915_p13)  ;;  %485 = vst [vmem:[#allocation2 + $0x60] sm:$0xff] (!%p3915_p13), %v469_v12  ;;  %486 = vst [vmem:[#allocation2 + $0x68] sm:$0xff] (!%p3915_p13), %v470_v13  ;;  %v472_v15 = vld [vmem:[#allocation3 + $0x78] sm:$0xff] (!%p3915_p13) }
  0xd8   : > { %487 = vst [vmem:[#allocation2 + $0x70] sm:$0xff] %v471_v14  ;;  %488 = vst [vmem:[#allocation2 + $0x78] sm:$0xff] %v472_v15 }
  0xd9 PF: > { %v538_v16 = vld [vmem:[#allocation2] sm:$0xff]  ;;  %v539_v17 = vld [vmem:[#allocation2 + $0x8] sm:$0xff]  ;;  %v2990_v21 = vmov 0.0   ;;  %v2654_v42 = vld [vmem:[%s3299_s28 + $0x10] sm:$0xff]   ;;  %p1259_p2 = scmp.lt.s32.totalorder %s3074_s17, 2  ;;  %p2172_p5 = scmp.ne.s32.totalorder %s3074_s17, 2 }
  0xda   : > { %v540_v18 = vld [vmem:[#allocation2 + $0x10] sm:$0xff]  ;;  %v554_v19 = vpack.c.bf16 %v539_v17, %v538_v16  ;;  %v541_v20 = vld [vmem:[#allocation2 + $0x18] sm:$0xff]  ;;  %v2644_v36 = vld [vmem:[#allocation6] sm:$0xff]  }
  0xdb   : > { %1345 = vst [vmem:[#allocation2 + $0x10] sm:$0xff] %v2990_v21  ;;  %v542_v22 = vld [vmem:[#allocation2 + $0x20] sm:$0xff]  ;;  %v543_v23 = vld [vmem:[#allocation2 + $0x28] sm:$0xff]  ;;  %v555_v24 = vpack.c.bf16 %v541_v20, %v540_v18  ;;  %1346 = vst [vmem:[#allocation2 + $0x18] sm:$0xff] %v2990_v21  ;;  %2313 = vmatprep.mubr.bf16.mxu0 %v2644_v36  ;;  %s1308_s18 = scalar_select %p1259_p2, 1, 0 }
  0xdc   : > { %1347 = vst [vmem:[#allocation2 + $0x20] sm:$0xff] %v2990_v21  ;;  %1348 = vst [vmem:[#allocation2 + $0x28] sm:$0xff] %v2990_v21  ;;  %v544_v25 = vld [vmem:[#allocation2 + $0x30] sm:$0xff]  ;;  %v545_v26 = vld [vmem:[#allocation2 + $0x38] sm:$0xff]  ;;  %2297 = vmatprep.subr.bf16.mxu0 %v554_v19  ;;  %v556_v34 = vpack.c.bf16 %v543_v23, %v542_v22 }
  0xdd   : > { %v546_v27 = vld [vmem:[#allocation2 + $0x40] sm:$0xff]  ;;  %1349 = vst [vmem:[#allocation2 + $0x30] sm:$0xff] %v2990_v21  ;;  %1350 = vst [vmem:[#allocation2 + $0x38] sm:$0xff] %v2990_v21  ;;  %v547_v28 = vld [vmem:[#allocation2 + $0x48] sm:$0xff]  ;;  %2298 = vmatpush3.bf16.msra.mxu0 %v554_v19  ;;  %v557_v37 = vpack.c.bf16 %v545_v26, %v544_v25 }
  0xde   : > { %1351 = vst [vmem:[#allocation2 + $0x40] sm:$0xff] %v2990_v21  ;;  %v548_v29 = vld [vmem:[#allocation2 + $0x50] sm:$0xff]  ;;  %v549_v30 = vld [vmem:[#allocation2 + $0x58] sm:$0xff]  ;;  %1352 = vst [vmem:[#allocation2 + $0x48] sm:$0xff] %v2990_v21  ;;  %2299 = vmatprep.subr.bf16.mxu0 %v555_v24  ;;  %v558_v38 = vpack.c.bf16 %v547_v28, %v546_v27 }
  0xdf   : > { %1353 = vst [vmem:[#allocation2 + $0x50] sm:$0xff] %v2990_v21  ;;  %1354 = vst [vmem:[#allocation2 + $0x58] sm:$0xff] %v2990_v21  ;;  %v550_v31 = vld [vmem:[#allocation2 + $0x60] sm:$0xff]  ;;  %v551_v32 = vld [vmem:[#allocation2 + $0x68] sm:$0xff]  ;;  %v559_v41 = vpack.c.bf16 %v549_v30, %v548_v29 }
  0xe0   : > { %v552_v33 = vld [vmem:[#allocation2 + $0x70] sm:$0xff]  ;;  %1355 = vst [vmem:[#allocation2 + $0x60] sm:$0xff] %v2990_v21  ;;  %1356 = vst [vmem:[#allocation2 + $0x68] sm:$0xff] %v2990_v21  ;;  %v553_v35 = vld [vmem:[#allocation2 + $0x78] sm:$0xff]  ;;  %v560_v44 = vpack.c.bf16 %v551_v32, %v550_v31 }
  0xe1   : > { %1357 = vst [vmem:[#allocation2 + $0x70] sm:$0xff] %v2990_v21  ;;  %1358 = vst [vmem:[#allocation2 + $0x78] sm:$0xff] %v2990_v21  ;;  %2300 = vmatpush3.bf16.msra.mxu0 %v555_v24  ;;  %v2652_v39 = vld [vmem:[%s3299_s28] sm:$0xff]   ;;  %v2653_v40 = vld [vmem:[%s3299_s28 + $0x8] sm:$0xff]   ;;  %v561_v45 = vpack.c.bf16 %v553_v35, %v552_v33 }
  0xe2   : > { %2301 = vmatprep.subr.bf16.mxu0 %v556_v34  ;;  %2329 = vmatprep.subr.bf16.mxu1 %v2652_v39  ;;  %v2655_v43 = vld [vmem:[%s3299_s28 + $0x18] sm:$0xff]   ;;  %v2656_v46 = vld [vmem:[%s3299_s28 + $0x20] sm:$0xff]   ;;  %v2657_v47 = vld [vmem:[%s3299_s28 + $0x28] sm:$0xff]  }
  0xe3   : > { %2330 = vmatpush3.bf16.msra.mxu1 %v2652_v39  ;;  %v2645_v48 = vld [vmem:[#allocation6 + $0x8] sm:$0xff]   ;;  %v2646_v49 = vld [vmem:[#allocation6 + $0x10] sm:$0xff]   ;;  %v2647_v51 = vld [vmem:[#allocation6 + $0x18] sm:$0xff]  }
  0xe4   : > { %2331 = vmatprep.subr.bf16.mxu1 %v2653_v40  ;;  %v2658_v50 = vld [vmem:[%s3299_s28 + $0x30] sm:$0xff]   ;;  %v2648_v52 = vld [vmem:[#allocation6 + $0x20] sm:$0xff]   ;;  %v2649_v53 = vld [vmem:[#allocation6 + $0x28] sm:$0xff]  }
  0xe5   : > { %2302 = vmatpush3.bf16.msra.mxu0 %v556_v34  ;;  %v2650_v54 = vld [vmem:[#allocation6 + $0x30] sm:$0xff]   ;;  %v2651_v55 = vld [vmem:[#allocation6 + $0x38] sm:$0xff]   ;;  %v2660_v57 = vld [vmem:[%s3299_s28 + $0x40] sm:$0xff]  }
  0xe6   : > { %2303 = vmatprep.subr.bf16.mxu0 %v557_v37  ;;  %v2659_v56 = vld [vmem:[%s3299_s28 + $0x38] sm:$0xff]   ;;  %v2661_v58 = vld [vmem:[%s3299_s28 + $0x48] sm:$0xff]   ;;  %v2662_v59 = vld [vmem:[%s3299_s28 + $0x50] sm:$0xff]  }
  0xe7   : > { %2332 = vmatpush3.bf16.msra.mxu1 %v2653_v40  ;;  %v2663_v60 = vld [vmem:[%s3299_s28 + $0x58] sm:$0xff]   ;;  %v2664_v61 = vld [vmem:[%s3299_s28 + $0x60] sm:$0xff]   ;;  %v2665_v62 = vld [vmem:[%s3299_s28 + $0x68] sm:$0xff]  }
  0xe8   : > { %2333 = vmatprep.subr.bf16.mxu1 %v2654_v42  ;;  %v2666_v23 = vld [vmem:[%s3299_s28 + $0x70] sm:$0xff]   ;;  %v2667_v24 = vld [vmem:[%s3299_s28 + $0x78] sm:$0xff]   ;;  %v3334_v25 = vld [vmem:[%s3305_s30] ss:$0 sm:$0xff] }
  0xe9   : > { %2304 = vmatpush3.bf16.msra.mxu0 %v557_v37 }
  0xea   : > { %2305 = vmatprep.subr.bf16.mxu0 %v558_v38 }
  0xeb   : > { %2334 = vmatpush3.bf16.msra.mxu1 %v2654_v42 }
  0xec   : > { %2335 = vmatprep.subr.bf16.mxu1 %v2655_v43 }
  0xed   : > { %2306 = vmatpush3.bf16.msra.mxu0 %v558_v38 }
  0xee   : > { %2307 = vmatprep.subr.bf16.mxu0 %v559_v41 }
  0xef   : > { %2336 = vmatpush3.bf16.msra.mxu1 %v2655_v43 }
  0xf0   : > { %2337 = vmatprep.subr.bf16.mxu1 %v2656_v46 }
  0xf1   : > { %2308 = vmatpush3.bf16.msra.mxu0 %v559_v41 }
  0xf2   : > { %2309 = vmatprep.subr.bf16.mxu0 %v560_v44 }
  0xf3   : > { %2338 = vmatpush3.bf16.msra.mxu1 %v2656_v46 }
  0xf4   : > { %2339 = vmatprep.subr.bf16.mxu1 %v2657_v47 }
  0xf5   : > { %2310 = vmatpush3.bf16.msra.mxu0 %v560_v44 }
  0xf6   : > { %2311 = vmatprep.subr.bf16.mxu0 %v561_v45 }
  0xf7   : > { %2340 = vmatpush3.bf16.msra.mxu1 %v2657_v47 }
  0xf8   : > { %2341 = vmatprep.subr.bf16.mxu1 %v2658_v50 }
  0xf9   : > { %2312 = vmatpush3.bf16.msra.mxu0 %v561_v45 }
  0xfa   : > { %2361 = vmatprep.subr.bf16.mxu0 %v2660_v57 }
  0xfb   : > { %2342 = vmatpush3.bf16.msra.mxu1 %v2658_v50 }
  0xfc   : > { %2314 = vmatmul.mubr.bf16.vlgmr.msra.gmra.mrb[0].mxu0 %v2645_v48  ;;  %2343 = vmatprep.subr.bf16.mxu1 %v2659_v56 }
  0xfd   : > { %2317 = vmatprep.mubr.bf16.mxu0 %v2646_v49  ;;  %2362 = vmatpush3.bf16.msra.mxu0 %v2660_v57 }
  0xfe   : > { %2363 = vmatprep.subr.bf16.mxu0 %v2661_v58 }
  0xff   : > { %2344 = vmatpush3.bf16.msra.mxu1 %v2659_v56 }
 0x100   : > { %2511 = vmatprep.subr.bf16.mxu1 %v2660_v57 }
 0x101   : > { %2364 = vmatpush3.bf16.msra.mxu0 %v2661_v58 }
 0x102   : > { %2365 = vmatprep.subr.bf16.mxu0 %v2662_v59 }
 0x104   : > { %2318 = vmatmul.mubr.bf16.gmra.mrb[4].mxu0 %v2647_v51 }
 0x105   : > { %2321 = vmatprep.mubr.bf16.mxu0 %v2648_v52  ;;  %2366 = vmatpush3.bf16.msra.mxu0 %v2662_v59 }
 0x106   : > { %2367 = vmatprep.subr.bf16.mxu0 %v2663_v60 }
 0x109   : > { %2368 = vmatpush3.bf16.msra.mxu0 %v2663_v60 }
 0x10a   : > { %2369 = vmatprep.subr.bf16.mxu0 %v2664_v61 }
 0x10c   : > { %2322 = vmatmul.mubr.bf16.gmra.mrb[8].mxu0 %v2649_v53 }
 0x10d   : > { %2325 = vmatprep.mubr.bf16.mxu0 %v2650_v54  ;;  %2370 = vmatpush3.bf16.msra.mxu0 %v2664_v61 }
 0x10e   : > { %2371 = vmatprep.subr.bf16.mxu0 %v2665_v62 }
 0x111   : > { %2372 = vmatpush3.bf16.msra.mxu0 %v2665_v62 }
 0x112   : > { %2373 = vmatprep.subr.bf16.mxu0 %v2666_v23 }
 0x114   : > { %2326 = vmatmul.mubr.bf16.gmra.mrb[12].mxu0 %v2651_v55 }
 0x115   : > { %2374 = vmatpush3.bf16.msra.mxu0 %v2666_v23 }
 0x116   : > { %2375 = vmatprep.subr.bf16.mxu0 %v2667_v24 }
 0x119   : > { %2376 = vmatpush3.bf16.msra.mxu0 %v2667_v24 }
 0x1cf   : > { %v2315_v63 = vpop.f32.mrb[0].mxu0 }
 0x1d0   : > { %v644_v0 = vpop.f32.mrb[1].mxu0 }
 0x1d1   : > { %v2316_v1 = vpop.f32.mrb[2].mxu0 }
 0x1d2   : > { %v712_v2 = vpack.c.bf16 %v2316_v1, %v2315_v63  ;;  %v647_v3 = vpop.f32.mrb[3].mxu0 }
 0x1d3   : > { %v711_v4 = vpack.c.bf16 %v647_v3, %v644_v0 }
 0x1d5   : > { %2345 = vmatprep.mubr.bf16.mxu1 %v711_v4 }
 0x1d6   : > { %2346 = vmatmul.mubr.bf16.vlgmr.msra.gmra.mrb[0].mxu1 %v712_v2 }
 0x1d7   : > { %v2319_v5 = vpop.f32.mrb[4].mxu0  ;;  %2519 = vmatpush3.bf16.msra.mxu1 %v2660_v57 }
 0x1d8   : > { %v660_v6 = vpop.f32.mrb[5].mxu0  ;;  %2512 = vmatprep.subr.bf16.mxu1 %v2661_v58 }
 0x1d9   : > { %v2320_v7 = vpop.f32.mrb[6].mxu0 }
 0x1da   : > { %v714_v8 = vpack.c.bf16 %v2320_v7, %v2319_v5  ;;  %v663_v9 = vpop.f32.mrb[7].mxu0 }
 0x1db   : > { %v713_v10 = vpack.c.bf16 %v663_v9, %v660_v6  ;;  %2520 = vmatpush3.bf16.msra.mxu1 %v2661_v58 }
 0x1dc   : > { %2513 = vmatprep.subr.bf16.mxu1 %v2662_v59 }
 0x1dd   : > { %2349 = vmatprep.mubr.bf16.mxu1 %v713_v10 }
 0x1de   : > { %2350 = vmatmul.mubr.bf16.gmra.mrb[4].mxu1 %v714_v8 }
 0x1df   : > { %v2323_v11 = vpop.f32.mrb[8].mxu0  ;;  %2521 = vmatpush3.bf16.msra.mxu1 %v2662_v59 }
 0x1e0   : > { %v676_v12 = vpop.f32.mrb[9].mxu0  ;;  %2514 = vmatprep.subr.bf16.mxu1 %v2663_v60 }
 0x1e1   : > { %v2324_v13 = vpop.f32.mrb[10].mxu0 }
 0x1e2   : > { %v716_v14 = vpack.c.bf16 %v2324_v13, %v2323_v11  ;;  %v679_v15 = vpop.f32.mrb[11].mxu0 }
 0x1e3   : > { %v715_v16 = vpack.c.bf16 %v679_v15, %v676_v12  ;;  %2522 = vmatpush3.bf16.msra.mxu1 %v2663_v60 }
 0x1e4   : > { %2515 = vmatprep.subr.bf16.mxu1 %v2664_v61 }
 0x1e5   : > { %2353 = vmatprep.mubr.bf16.mxu1 %v715_v16 }
 0x1e6   : > { %2354 = vmatmul.mubr.bf16.gmra.mrb[8].mxu1 %v716_v14 }
 0x1e7   : > { %v2327_v17 = vpop.f32.mrb[12].mxu0  ;;  %2523 = vmatpush3.bf16.msra.mxu1 %v2664_v61 }
 0x1e8   : > { %v692_v18 = vpop.f32.mrb[13].mxu0  ;;  %2516 = vmatprep.subr.bf16.mxu1 %v2665_v62 }
 0x1e9   : > { %v2328_v19 = vpop.f32.mrb[14].mxu0 }
 0x1ea   : > { %v718_v20 = vpack.c.bf16 %v2328_v19, %v2327_v17  ;;  %v695_v21 = vpop.f32.mrb[15].mxu0 }
 0x1eb   : > { %v717_v22 = vpack.c.bf16 %v695_v21, %v692_v18  ;;  %2524 = vmatpush3.bf16.msra.mxu1 %v2665_v62 }
 0x1ec   : > { %2517 = vmatprep.subr.bf16.mxu1 %v2666_v23 }
 0x1ed   : > { %2357 = vmatprep.mubr.bf16.mxu1 %v717_v22 }
 0x1ee   : > { %2358 = vmatmul.mubr.bf16.gmra.mrb[12].mxu1 %v718_v20 }
 0x1ef   : > { %2525 = vmatpush3.bf16.msra.mxu1 %v2666_v23 }
 0x1f0   : > { %2518 = vmatprep.subr.bf16.mxu1 %v2667_v24 }
 0x1f3   : > { %2526 = vmatpush3.bf16.msra.mxu1 %v2667_v24 }
 0x2a9   : > { %v2347_v26 = vpop.f32.mrb[0].mxu1 }
 0x2aa   : > { %v830_v27 = vadd.f32 %v2347_v26, %v3334_v25  ;;  %v821_v28 = vpop.f32.mrb[1].mxu1 }
 0x2ab   : > { %v822_v29 = vadd.f32 %v3334_v25, %v821_v28  ;;  %v2348_v30 = vpop.f32.mrb[2].mxu1 }
 0x2ac   : > { %v902_v31 = vmul.f32 0.01, %v830_v27  ;;  %v833_v32 = vadd.f32 %v2348_v30, %v3334_v25  ;;  %v824_v33 = vpop.f32.mrb[3].mxu1  ;;  %vm886_vm0 = vcmp.gt.f32.partialorder %v830_v27, 0.0 }
 0x2ad   : > { %v900_v34 = vmul.f32 0.01, %v822_v29  ;;  %v825_v35 = vadd.f32 %v3334_v25, %v824_v33  ;;  %vm884_vm1 = vcmp.gt.f32.partialorder %v822_v29, 0.0 }
 0x2ae   : > { %vm887_vm2 = vcmp.gt.f32.partialorder %v833_v32, 0.0  ;;  %v903_v36 = vmul.f32 0.01, %v833_v32  ;;  %v918_v38 = vsel %vm886_vm0, %v830_v27, %v902_v31 }
 0x2af   : > { %vm885_vm3 = vcmp.gt.f32.partialorder %v825_v35, 0.0  ;;  %v901_v37 = vmul.f32 0.01, %v825_v35  ;;  %v916_v41 = vsel %vm884_vm1, %v822_v29, %v900_v34 }
 0x2b0   : > { %v919_v39 = vsel %vm887_vm2, %v833_v32, %v903_v36 }
 0x2b1   : > { %v933_v40 = vpack.c.bf16 %v919_v39, %v918_v38  ;;  %v917_v42 = vsel %vm885_vm3, %v825_v35, %v901_v37  ;;  %v2351_v43 = vpop.f32.mrb[4].mxu1  ;;  %v2161_v35 = vld [vmem:[%s3305_s30 + $0x1] ss:$0 sm:$0xff] }
 0x2b2   : > { %v932_v44 = vpack.c.bf16 %v917_v42, %v916_v41  ;;  %v846_v45 = vadd.f32 %v2351_v43, %v3334_v25  ;;  %v837_v46 = vpop.f32.mrb[5].mxu1 }
 0x2b3   : > { %v838_v47 = vadd.f32 %v3334_v25, %v837_v46  ;;  %v2352_v48 = vpop.f32.mrb[6].mxu1 }
 0x2b4   : > { %2377 = vmatprep.mubr.bf16.mxu0 %v932_v44  ;;  %vm890_vm4 = vcmp.gt.f32.partialorder %v846_v45, 0.0  ;;  %v906_v49 = vmul.f32 0.01, %v846_v45  ;;  %v849_v50 = vadd.f32 %v2352_v48, %v3334_v25  ;;  %v840_v51 = vpop.f32.mrb[7].mxu1 }
 0x2b5   : > { %2378 = vmatmul.mubr.bf16.vlgmr.msra.gmra.mrb[16].mxu0 %v933_v40  ;;  %vm888_vm5 = vcmp.gt.f32.partialorder %v838_v47, 0.0  ;;  %v904_v52 = vmul.f32 0.01, %v838_v47  ;;  %v841_v53 = vadd.f32 %v3334_v25, %v840_v51 }
 0x2b6   : > { %vm891_vm6 = vcmp.gt.f32.partialorder %v849_v50, 0.0  ;;  %v907_v54 = vmul.f32 0.01, %v849_v50  ;;  %v922_v55 = vsel %vm890_vm4, %v846_v45, %v906_v49 }
 0x2b7   : > { %vm889_vm7 = vcmp.gt.f32.partialorder %v841_v53, 0.0  ;;  %v905_v56 = vmul.f32 0.01, %v841_v53  ;;  %v920_v57 = vsel %vm888_vm5, %v838_v47, %v904_v52 }
 0x2b8   : > { %v923_v58 = vsel %vm891_vm6, %v849_v50, %v907_v54 }
 0x2b9   : > { %v2355_v59 = vpop.f32.mrb[8].mxu1  ;;  %v921_v60 = vsel %vm889_vm7, %v841_v53, %v905_v56  ;;  %v935_v61 = vpack.c.bf16 %v923_v58, %v922_v55 }
 0x2ba   : > { %v862_v62 = vadd.f32 %v2355_v59, %v3334_v25  ;;  %v853_v63 = vpop.f32.mrb[9].mxu1  ;;  %v934_v0 = vpack.c.bf16 %v921_v60, %v920_v57 }
 0x2bb   : > { %v854_v1 = vadd.f32 %v3334_v25, %v853_v63  ;;  %v2356_v2 = vpop.f32.mrb[10].mxu1 }
 0x2bc   : > { %vm894_vm8 = vcmp.gt.f32.partialorder %v862_v62, 0.0  ;;  %v910_v3 = vmul.f32 0.01, %v862_v62  ;;  %v865_v4 = vadd.f32 %v2356_v2, %v3334_v25  ;;  %v856_v5 = vpop.f32.mrb[11].mxu1  ;;  %2381 = vmatprep.mubr.bf16.mxu0 %v934_v0 }
 0x2bd   : > { %vm892_vm9 = vcmp.gt.f32.partialorder %v854_v1, 0.0  ;;  %v908_v6 = vmul.f32 0.01, %v854_v1  ;;  %v857_v7 = vadd.f32 %v3334_v25, %v856_v5  ;;  %2382 = vmatmul.mubr.bf16.gmra.mrb[20].mxu0 %v935_v61 }
 0x2be   : > { %v926_v8 = vsel %vm894_vm8, %v862_v62, %v910_v3  ;;  %vm895_vm10 = vcmp.gt.f32.partialorder %v865_v4, 0.0  ;;  %v911_v9 = vmul.f32 0.01, %v865_v4 }
 0x2bf   : > { %vm893_vm11 = vcmp.gt.f32.partialorder %v857_v7, 0.0  ;;  %v909_v10 = vmul.f32 0.01, %v857_v7  ;;  %v924_v11 = vsel %vm892_vm9, %v854_v1, %v908_v6 }
 0x2c0   : > { %v927_v12 = vsel %vm895_vm10, %v865_v4, %v911_v9 }
 0x2c1   : > { %v937_v13 = vpack.c.bf16 %v927_v12, %v926_v8  ;;  %v2359_v14 = vpop.f32.mrb[12].mxu1  ;;  %v925_v15 = vsel %vm893_vm11, %v857_v7, %v909_v10 }
 0x2c2   : > { %v878_v16 = vadd.f32 %v2359_v14, %v3334_v25  ;;  %v869_v17 = vpop.f32.mrb[13].mxu1  ;;  %v936_v18 = vpack.c.bf16 %v925_v15, %v924_v11  ;;  %v2170_v14 = vld [vmem:[%s3305_s30 + $0x2] ss:$0 sm:$0xff] }
 0x2c3   : > { %v870_v19 = vadd.f32 %v3334_v25, %v869_v17  ;;  %v2360_v20 = vpop.f32.mrb[14].mxu1  ;;  %v2171_v17 = vld [vmem:[%s3305_s30 + $0x3] ss:$0 sm:$0xff] }
 0x2c4   : > { %vm898_vm12 = vcmp.gt.f32.partialorder %v878_v16, 0.0  ;;  %v914_v21 = vmul.f32 0.01, %v878_v16  ;;  %v881_v22 = vadd.f32 %v2360_v20, %v3334_v25  ;;  %v872_v23 = vpop.f32.mrb[15].mxu1  ;;  %2385 = vmatprep.mubr.bf16.mxu1 %v936_v18  ;;  %v1309_v20 = vstv %s1308_s18 }
 0x2c5   : > { %vm896_vm13 = vcmp.gt.f32.partialorder %v870_v19, 0.0  ;;  %v912_v24 = vmul.f32 0.01, %v870_v19  ;;  %v873_v26 = vadd.f32 %v3334_v25, %v872_v23  ;;  %2386 = vmatmul.mubr.bf16.vlgmr.msra.gmra.mrb[16].mxu1 %v937_v13  ;;  %vm1310_vm0 = vcmp.eq.s32.totalorder %v1309_v20, 1 }
 0x2c6   : > { %vm899_vm14 = vcmp.gt.f32.partialorder %v881_v22, 0.0  ;;  %v915_v27 = vmul.f32 0.01, %v881_v22  ;;  %v930_v28 = vsel %vm898_vm12, %v878_v16, %v914_v21 }
 0x2c7   : > { %vm897_vm15 = vcmp.gt.f32.partialorder %v873_v26, 0.0  ;;  %v913_v29 = vmul.f32 0.01, %v873_v26  ;;  %v928_v30 = vsel %vm896_vm13, %v870_v19, %v912_v24 }
 0x2c8   : > { %v931_v31 = vsel %vm899_vm14, %v881_v22, %v915_v27 }
 0x2c9   : > { %v929_v32 = vsel %vm897_vm15, %v873_v26, %v913_v29  ;;  %v939_v33 = vpack.c.bf16 %v931_v31, %v930_v28  ;;  %v1395_v31 = vlaneseq (!%p2172_p5) }
 0x2ca   : > { %v938_v34 = vpack.c.bf16 %v929_v32, %v928_v30  ;;  %v1363_v30 = vld [vmem:[#allocation10] sm:$0xff] (!%p2172_p5)  ;;  %v1364_v32 = vld [vmem:[#allocation10 + $0x8] sm:$0xff] (!%p2172_p5) }
 0x2cc   : > { %2389 = vmatprep.mubr.bf16.mxu1 %v938_v34  ;;  %v3357_v34 = vand.u32 (!%p2172_p5), 127, %v1395_v31 }
 0x2cd   : > { %2390 = vmatmul.mubr.bf16.gmra.mrb[20].mxu1 %v939_v33 }
 0x2ce   : > { %vm1397_vm3 = vcmp.lt.s32.totalorder (!%p2172_p5), %v3357_v34, 32 }
 0x388   : > { %v2379_v36 = vpop.f32.mrb[16].mxu0 }
 0x389   : > { %v1043_v37 = vpop.f32.mrb[17].mxu0 }
 0x38a   : > { %v1044_v38 = vadd.f32 %v2161_v35, %v1043_v37  ;;  %v2380_v39 = vpop.f32.mrb[18].mxu0  ;;  %v1366_v37 = vld [vmem:[#allocation10 + $0x18] sm:$0xff] (!%p2172_p5) }
 0x38b   : > { %v1046_v40 = vpop.f32.mrb[19].mxu0 }
 0x38c   : > { %v1047_v25 = vadd.f32 %v2161_v35, %v1046_v40  ;;  %v1143_v41 = vmul.f32 %v1044_v38, %v1044_v38  ;;  %v1365_v35 = vld [vmem:[#allocation10 + $0x10] sm:$0xff] (!%p2172_p5) }
 0x38d   : > { %v1400_v39 = vsel (!%p2172_p5), %vm1397_vm3, %v1365_v35, -inf }
 0x38e   : > { %v1122_v42 = vadd.f32 %v1047_v25, %v1044_v38  ;;  %v1144_v43 = vmul.f32 %v1047_v25, %v1047_v25  ;;  %1418 = vmax.xlane.f32.xlu1 (!%p2172_p5), %v1400_v39 }
 0x390   : > { %v1137_v44 = vrot.slane %v1122_v42, 4  ;;  %v1159_v45 = vadd.f32 %v1144_v43, %v1143_v41  ;;  %v2383_v46 = vpop.f32.mrb[20].mxu0  ;;  %v1367_v41 = vld [vmem:[#allocation10 + $0x20] sm:$0xff] (!%p2172_p5) }
 0x391   : > { %v1059_v47 = vpop.f32.mrb[21].mxu0  ;;  %v1402_v43 = vsel (!%p2172_p5), %vm1397_vm3, %v1367_v41, -inf  ;;  %v1370_v46 = vld [vmem:[#allocation10 + $0x38] sm:$0xff] (!%p2172_p5) }
 0x392   : > { %v1138_v48 = vadd.f32 %v1137_v44, %v1122_v42  ;;  %v1174_v49 = vrot.slane %v1159_v45, 4  ;;  %v2384_v50 = vpop.f32.mrb[22].mxu0  ;;  %v1368_v42 = vld [vmem:[#allocation10 + $0x28] sm:$0xff] (!%p2172_p5) }
 0x393   : > { %v1062_v51 = vpop.f32.mrb[23].mxu0  ;;  %v3372_v44 = vsel (!%p2172_p5), %vm1397_vm3, %v1368_v42, -inf  ;;  %v1372_v50 = vld [vmem:[#allocation10 + $0x48] sm:$0xff] (!%p2172_p5) }
 0x394   : > { %v1139_v52 = vrot.slane %v1138_v48, 2  ;;  %v1175_v53 = vadd.f32 %v1174_v49, %v1159_v45  ;;  %v1369_v45 = vld [vmem:[#allocation10 + $0x30] sm:$0xff] (!%p2172_p5)  ;;  %v1371_v49 = vld [vmem:[#allocation10 + $0x40] sm:$0xff] (!%p2172_p5) }
 0x395   : > { %v3377_v47 = vsel (!%p2172_p5), %vm1397_vm3, %v1369_v45, -inf  ;;  %v3387_v51 = vsel (!%p2172_p5), %vm1397_vm3, %v1371_v49, -inf }
 0x396   : > { %v1140_v54 = vadd.f32 %v1139_v52, %v1138_v48  ;;  %v1176_v55 = vrot.slane %v1175_v53, 2  ;;  %v3381_v48 = vsel (!%p2172_p5), %vm1397_vm3, %v1370_v46, -inf  ;;  %v3391_v52 = vsel (!%p2172_p5), %vm1397_vm3, %v1372_v50, -inf }
 0x398   : > { %v1141_v56 = vrot.slane %v1140_v54, 1  ;;  %v1177_v57 = vadd.f32 %v1176_v55, %v1175_v53  ;;  %v2387_v58 = vpop.f32.mrb[16].mxu1  ;;  %v1373_v53 = vld [vmem:[#allocation10 + $0x50] sm:$0xff] (!%p2172_p5) }
 0x399   : > { %v1075_v59 = vpop.f32.mrb[17].mxu1  ;;  %v3397_v55 = vsel (!%p2172_p5), %vm1397_vm3, %v1373_v53, -inf  ;;  %v1376_v58 = vld [vmem:[#allocation10 + $0x68] sm:$0xff] (!%p2172_p5) }
 0x39a   : > { %v1142_v60 = vadd.f32 %v1141_v56, %v1140_v54  ;;  %v1178_v61 = vrot.slane %v1177_v57, 1  ;;  %v2388_v62 = vpop.f32.mrb[18].mxu1  ;;  %v1374_v54 = vld [vmem:[#allocation10 + $0x58] sm:$0xff] (!%p2172_p5) }
 0x39b   : > { %v1078_v63 = vpop.f32.mrb[19].mxu1  ;;  %v3401_v56 = vsel (!%p2172_p5), %vm1397_vm3, %v1374_v54, -inf  ;;  %v1378_v62 = vld [vmem:[#allocation10 + $0x78] sm:$0xff] (!%p2172_p5) }
 0x39c   : > { %v1179_v0 = vadd.f32 %v1178_v61, %v1177_v57  ;;  %v1180_v1 = vmul.f32 0.0625, %v1142_v60  ;;  %v1375_v57 = vld [vmem:[#allocation10 + $0x60] sm:$0xff] (!%p2172_p5)  ;;  %v3411_v60 = vsel (!%p2172_p5), %vm1397_vm3, %v1376_v58, -inf  ;;  %v1377_v61 = vld [vmem:[#allocation10 + $0x70] sm:$0xff] (!%p2172_p5) }
 0x39d   : > { %v3407_v59 = vsel (!%p2172_p5), %vm1397_vm3, %v1375_v57, -inf  ;;  %v3417_v63 = vsel (!%p2172_p5), %vm1397_vm3, %v1377_v61, -inf }
 0x39e   : > { %v1181_v2 = vmul.f32 0.0625, %v1179_v0  ;;  %v1182_v3 = vmul.f32 %v1180_v1, %v1180_v1  ;;  %v1185_v4 = vsub.f32 %v1044_v38, %v1180_v1  ;;  %v1186_v5 = vsub.f32 %v1047_v25, %v1180_v1 }
 0x39f   : > { %v1401_v25 = vsel (!%p2172_p5), %vm1397_vm3, %v1366_v37, -inf  ;;  %v3421_v0 = vsel (!%p2172_p5), %vm1397_vm3, %v1378_v62, -inf }
 0x3a0   : > { %v1183_v6 = vsub.f32 %v1181_v2, %v1182_v3  ;;  %v2391_v7 = vpop.f32.mrb[20].mxu1  ;;  %1420 = vmax.xlane.f32.xlu1 (!%p2172_p5), %v1401_v25 }
 0x3a1   : > { %v1091_v8 = vpop.f32.mrb[21].mxu1 }
 0x3a2   : > { %v1184_v9 = vmax.f32 %v1183_v6, 0.0  ;;  %v2392_v10 = vpop.f32.mrb[22].mxu1 }
 0x3a3   : > { %v1094_v11 = vpop.f32.mrb[23].mxu1 }
 0x3a4   : > { %v1201_v12 = vadd.f32 1e-05, %v1184_v9  ;;  %1424 = vmax.xlane.f32.xlu1 (!%p2172_p5), %v3372_v44 }
 0x3a6   : > { %2668 = vrsqrt.f32 %v1201_v12 }
 0x3a8   : > { %1428 = vmax.xlane.f32.xlu1 (!%p2172_p5), %v3381_v48 }
 0x3ac   : > { %1432 = vmax.xlane.f32.xlu1 (!%p2172_p5), %v3391_v52 }
 0x3b0   : > { %v2669_v13 = vpop.eup %2668  ;;  %1436 = vmax.xlane.f32.xlu1 (!%p2172_p5), %v3401_v56 }
 0x3b1   : > { %v1203_v15 = vmul.f32 %v2669_v13, %v1185_v4  ;;  %v1204_v16 = vmul.f32 %v2669_v13, %v1186_v5 }
 0x3b3   : > { %v1223_v18 = vmul.f32 %v2170_v14, %v1203_v15  ;;  %v1224_v19 = vmul.f32 %v2170_v14, %v1204_v16 }
 0x3b4   : > { %1440 = vmax.xlane.f32.xlu1 (!%p2172_p5), %v3411_v60 }
 0x3b5   : > { %v1243_v21 = vadd.f32 %v2171_v17, %v1223_v18  ;;  %v1244_v22 = vadd.f32 %v2171_v17, %v1224_v19  ;;  %1362 = sbr.rel (%p2172_p5) target bundleno = 1861 (0x745), region = 84 }
 0x3b7   : > { %vm1260_vm1 = vcmp.gt.f32.partialorder %v1243_v21, 0.0  ;;  %vm1261_vm2 = vcmp.gt.f32.partialorder %v1244_v22, 0.0  ;;  %v1276_v23 = vmul.f32 0.01, %v1243_v21  ;;  %v1277_v24 = vmul.f32 0.01, %v1244_v22 }
 0x3b8   : > { %1444 = vmax.xlane.f32.xlu1 (!%p2172_p5), %v3421_v0 }
 0x3b9   : > { %v1292_v26 = vsel %vm1260_vm1, %v1243_v21, %v1276_v23  ;;  %v1293_v27 = vsel %vm1261_vm2, %v1244_v22, %v1277_v24 }
 0x3ba   : > { %v1311_v28 = vsel %vm1310_vm0, %v1292_v26, %v1243_v21  ;;  %v1312_v29 = vsel %vm1310_vm0, %v1293_v27, %v1244_v22 }
 0x3bb   : > { %1343 = vst [vmem:[#allocation2] sm:$0xff] %v1311_v28  ;;  %1344 = vst [vmem:[#allocation2 + $0x8] sm:$0xff] %v1312_v29  ;;  %v1379_v33 = vadd.f32 (!%p2172_p5), %v1363_v30, %v1311_v28  ;;  %v1380_v36 = vadd.f32 (!%p2172_p5), %v1364_v32, %v1312_v29 }
 0x3bd   : > { %v1398_v38 = vsel %vm1397_vm3, %v1379_v33, -inf  ;;  %v1399_v40 = vsel %vm1397_vm3, %v1380_v36, -inf }
 0x3be   : > { %1414 = vmax.xlane.f32.xlu0 %v1398_v38 }
 0x3c2   : > { %1416 = vmax.xlane.f32.xlu0 %v1399_v40 }
 0x3c6   : > { %1422 = vmax.xlane.f32.xlu0 %v1402_v43 }
 0x3ca   : > { %1426 = vmax.xlane.f32.xlu0 %v3377_v47 }
 0x3ce   : > { %1430 = vmax.xlane.f32.xlu0 %v3387_v51 }
 0x3d2   : > { %1434 = vmax.xlane.f32.xlu0 %v3397_v55 }
 0x3d6   : > { %1438 = vmax.xlane.f32.xlu0 %v3407_v59 }
 0x3da   : > { %1442 = vmax.xlane.f32.xlu0 %v3417_v63 }
 0x41b   : > { %v1419_v2 = vpop.xlane.xlu1 %1418 }
 0x41c   : > { %vm1448_vm5 = vcmp.ge.f32.partialorder %v1400_v39, %v1419_v2 }
 0x41d   : > { %vm1464_vm7 = vmand %vm1448_vm5, %vm1397_vm3 }
 0x41e   : > { %v3433_v4 = vsel %vm1464_vm7, %v3357_v34, 128 }
 0x41f   : > { %v1523_v8 = vshra.s32 %v3433_v4, 16 }
 0x421   : > { %v3450_v14 = vcvt.s32.f32 %v1523_v8  ;;  %v1522_v8 = vand.u32 65535, %v3433_v4 }
 0x42d   : > { %v1421_v6 = vpop.xlane.xlu1 %1420 }
 0x42e   : > { %vm1449_vm9 = vcmp.ge.f32.partialorder %v1401_v25, %v1421_v6 }
 0x42f   : > { %vm1465_vm11 = vmand %vm1449_vm9, %vm1397_vm3 }
 0x430   : > { %v3447_v11 = vsel %vm1465_vm11, %v3357_v34, 128 }
 0x431   : > { %v1425_v13 = vpop.xlane.xlu1 %1424  ;;  %v1537_v16 = vshra.s32 %v3447_v11, 16 }
 0x432   : > { %vm1451_vm13 = vcmp.ge.f32.partialorder %v3372_v44, %v1425_v13 }
 0x433   : > { %vm1467_vm15 = vmand %vm1451_vm13, %vm1397_vm3  ;;  %v3469_v22 = vcvt.s32.f32 %v1537_v16 }
 0x434   : > { %v3465_v19 = vsel %vm1467_vm15, %v3357_v34, 128 }
 0x435   : > { %v1429_v21 = vpop.xlane.xlu1 %1428  ;;  %v1565_v24 = vshra.s32 %v3465_v19, 16 }
 0x436   : > { %vm1453_vm1 = vcmp.ge.f32.partialorder %v3381_v48, %v1429_v21 }
 0x437   : > { %v3489_v31 = vcvt.s32.f32 %v1565_v24 }
 0x439   : > { %v1433_v30 = vpop.xlane.xlu1 %1432 }
 0x43d   : > { %v1437_v39 = vpop.xlane.xlu1 %1436 }
 0x441   : > { %v1441_v46 = vpop.xlane.xlu1 %1440 }
 0x445   : > { %v1445_v54 = vpop.xlane.xlu1 %1444 }
 0x44b   : > { %v1415_v1 = vpop.xlane.xlu0 %1414 }
 0x44c   : > { %vm1446_vm4 = vcmp.ge.f32.partialorder %v1398_v38, %v1415_v1 }
 0x44d   : > { %vm1462_vm6 = vmand %vm1446_vm4, %vm1397_vm3 }
 0x44e   : > { %v3428_v3 = vsel %vm1462_vm6, %v3357_v34, 128  ;;  %vm1469_vm4 = vmand %vm1453_vm1, %vm1397_vm3  ;;  %vm1455_vm6 = vcmp.ge.f32.partialorder %v3391_v52, %v1433_v30 }
 0x44f   : > { %v1417_v5 = vpop.xlane.xlu0 %1416  ;;  %v1495_v7 = vshra.s32 %v3428_v3, 16  ;;  %v3485_v28 = vsel %vm1469_vm4, %v3357_v34, 128  ;;  %v1494_v2 = vand.u32 65535, %v3428_v3  ;;  %v1536_v3 = vand.u32 65535, %v3447_v11 }
 0x450   : > { %vm1447_vm8 = vcmp.ge.f32.partialorder %v1399_v40, %v1417_v5  ;;  %v1593_v33 = vshra.s32 %v3485_v28, 16  ;;  %v1564_v11 = vand.u32 65535, %v3465_v19  ;;  %v1592_v19 = vand.u32 65535, %v3485_v28 }
 0x451   : > { %vm1463_vm10 = vmand %vm1447_vm8, %vm1397_vm3  ;;  %v3439_v9 = vcvt.s32.f32 %v1495_v7  ;;  %v1496_v6 = vcvt.s32.f32 %v1494_v2  ;;  %v1538_v24 = vcvt.s32.f32 %v1536_v3 }
 0x452   : > { %v3442_v10 = vsel %vm1463_vm10, %v3357_v34, 128  ;;  %vm1471_vm8 = vmand %vm1455_vm6, %vm1397_vm3  ;;  %v3509_v40 = vcvt.s32.f32 %v1593_v33  ;;  %vm1457_vm10 = vcmp.ge.f32.partialorder %v3401_v56, %v1437_v39  ;;  %v1566_v33 = vcvt.s32.f32 %v1564_v11  ;;  %v1861_v11 = vld [vmem:[#allocation11 + $0x38] sm:$0xff] }
 0x453   : > { %1498 = vmin.xlane.f32.xlu0 %v3439_v9  ;;  %v1423_v12 = vpop.xlane.xlu0 %1422  ;;  %v1509_v15 = vshra.s32 %v3442_v10, 16  ;;  %v3505_v37 = vsel %vm1471_vm8, %v3357_v34, 128  ;;  %v1508_v7 = vand.u32 65535, %v3442_v10 }
 0x454   : > { %vm1450_vm12 = vcmp.ge.f32.partialorder %v1402_v43, %v1423_v12  ;;  %v1621_v41 = vshra.s32 %v3505_v37, 16  ;;  %v1620_v28 = vand.u32 65535, %v3505_v37 }
 0x455   : > { %vm1466_vm14 = vmand %vm1450_vm12, %vm1397_vm3  ;;  %v3457_v17 = vcvt.s32.f32 %v1509_v15  ;;  %v1510_v16 = vcvt.s32.f32 %v1508_v7 }
 0x456   : > { %v3460_v18 = vsel %vm1466_vm14, %v3357_v34, 128  ;;  %vm1473_vm12 = vmand %vm1457_vm10, %vm1397_vm3  ;;  %vm1459_vm14 = vcmp.ge.f32.partialorder %v3411_v60, %v1441_v46 }
 0x457   : > { %1526 = vmin.xlane.f32.xlu0 %v3450_v14  ;;  %1512 = vmin.xlane.f32.xlu1 %v3457_v17  ;;  %v1427_v20 = vpop.xlane.xlu0 %1426  ;;  %v1551_v23 = vshra.s32 %v3460_v18, 16  ;;  %v3525_v44 = vsel %vm1473_vm12, %v3357_v34, 128  ;;  %v1550_v21 = vand.u32 65535, %v3460_v18 }
 0x458   : > { %vm1452_vm0 = vcmp.ge.f32.partialorder %v3377_v47, %v1427_v20  ;;  %v3529_v47 = vcvt.s32.f32 %v1621_v41  ;;  %v1649_v49 = vshra.s32 %v3525_v44, 16  ;;  %v1524_v20 = vcvt.s32.f32 %v1522_v8 }
 0x459   : > { %vm1468_vm2 = vmand %vm1452_vm0, %vm1397_vm3  ;;  %v3477_v26 = vcvt.s32.f32 %v1551_v23  ;;  %v1594_v41 = vcvt.s32.f32 %v1592_v19  ;;  %v1648_v37 = vand.u32 65535, %v3525_v44  ;;  %v2991_v8 = vmov 0.0|0.0   ;;  %v1865_v19 = vld [vmem:[#allocation11 + $0x58] sm:$0xff] }
 0x45a   : > { %v3480_v27 = vsel %vm1468_vm2, %v3357_v34, 128  ;;  %vm1475_vm0 = vmand %vm1459_vm14, %vm1397_vm3  ;;  %vm1461_vm2 = vcmp.ge.f32.partialorder %v3421_v0, %v1445_v54  ;;  %2463 = vmatprep.subr.bf16.mxu0 %v2991_v8  ;;  %2487 = vmatprep.subr.bf16.mxu1 %v2991_v8 }
 0x45b   : > { %1540 = vmin.xlane.f32.xlu1 %v3469_v22  ;;  %1554 = vmin.xlane.f32.xlu0 %v3477_v26  ;;  %v1431_v29 = vpop.xlane.xlu0 %1430  ;;  %v1579_v32 = vshra.s32 %v3480_v27, 16  ;;  %v3545_v52 = vsel %vm1475_vm0, %v3357_v34, 128  ;;  %v1578_v18 = vand.u32 65535, %v3480_v27 }
 0x45c   : > { %vm1454_vm5 = vcmp.ge.f32.partialorder %v3387_v51, %v1431_v29  ;;  %v1677_v57 = vshra.s32 %v3545_v52, 16  ;;  %v1552_v29 = vcvt.s32.f32 %v1550_v21  ;;  %v1676_v44 = vand.u32 65535, %v3545_v52  ;;  %v1857_v21 = vld [vmem:[#allocation11 + $0x18] sm:$0xff] }
 0x45d   : > { %vm1470_vm7 = vmand %vm1454_vm5, %vm1397_vm3  ;;  %v3497_v35 = vcvt.s32.f32 %v1579_v32 }
 0x45e   : > { %v3500_v36 = vsel %vm1470_vm7, %v3357_v34, 128  ;;  %vm1477_vm5 = vmand %vm1461_vm2, %vm1397_vm3  ;;  %v3569_v61 = vcvt.s32.f32 %v1677_v57  ;;  %v1650_v57 = vcvt.s32.f32 %v1648_v37 }
 0x45f   : > { %1568 = vmin.xlane.f32.xlu1 %v3489_v31  ;;  %1582 = vmin.xlane.f32.xlu0 %v3497_v35  ;;  %v1435_v38 = vpop.xlane.xlu0 %1434  ;;  %v1607_v25 = vshra.s32 %v3500_v36, 16  ;;  %v3565_v60 = vsel %vm1477_vm5, %v3357_v34, 128  ;;  %v1606_v27 = vand.u32 65535, %v3500_v36 }
 0x460   : > { %vm1456_vm9 = vcmp.ge.f32.partialorder %v3397_v55, %v1435_v38  ;;  %v3549_v55 = vcvt.s32.f32 %v1649_v49  ;;  %v1580_v38 = vcvt.s32.f32 %v1578_v18  ;;  %v1622_v49 = vcvt.s32.f32 %v1620_v28  ;;  %v1869_v28 = vld [vmem:[#allocation11 + $0x78] sm:$0xff] }
 0x461   : > { %vm1472_vm11 = vmand %vm1456_vm9, %vm1397_vm3  ;;  %v3517_v42 = vcvt.s32.f32 %v1607_v25  ;;  %v1704_v52 = vand.u32 65535, %v3565_v60 }
 0x462   : > { %v3520_v43 = vsel %vm1472_vm11, %v3357_v34, 128 }
 0x463   : > { %1596 = vmin.xlane.f32.xlu1 %v3509_v40  ;;  %1610 = vmin.xlane.f32.xlu0 %v3517_v42  ;;  %v1439_v45 = vpop.xlane.xlu0 %1438  ;;  %v1635_v48 = vshra.s32 %v3520_v43, 16  ;;  %v1634_v36 = vand.u32 65535, %v3520_v43 }
 0x464   : > { %vm1458_vm13 = vcmp.ge.f32.partialorder %v3407_v59, %v1439_v45  ;;  %v1608_v45 = vcvt.s32.f32 %v1606_v27 }
 0x465   : > { %vm1474_vm15 = vmand %vm1458_vm13, %vm1397_vm3  ;;  %v3537_v50 = vcvt.s32.f32 %v1635_v48 }
 0x466   : > { %v3540_v51 = vsel %vm1474_vm15, %v3357_v34, 128 }
 0x467   : > { %1624 = vmin.xlane.f32.xlu1 %v3529_v47  ;;  %1638 = vmin.xlane.f32.xlu0 %v3537_v50  ;;  %v1443_v53 = vpop.xlane.xlu0 %1442  ;;  %v1663_v56 = vshra.s32 %v3540_v51, 16  ;;  %v1662_v43 = vand.u32 65535, %v3540_v51 }
 0x468   : > { %vm1460_vm1 = vcmp.ge.f32.partialorder %v3417_v63, %v1443_v53  ;;  %v1705_v63 = vshra.s32 %v3565_v60, 16  ;;  %v1636_v53 = vcvt.s32.f32 %v1634_v36 }
 0x469   : > { %vm1476_vm4 = vmand %vm1460_vm1, %vm1397_vm3  ;;  %v3557_v58 = vcvt.s32.f32 %v1663_v56 }
 0x46a   : > { %v3560_v59 = vsel %vm1476_vm4, %v3357_v34, 128  ;;  %v3577_v1 = vcvt.s32.f32 %v1705_v63 }
 0x46b   : > { %1652 = vmin.xlane.f32.xlu1 %v3549_v55  ;;  %1666 = vmin.xlane.f32.xlu0 %v3557_v58  ;;  %v1691_v62 = vshra.s32 %v3560_v59, 16  ;;  %v1690_v51 = vand.u32 65535, %v3560_v59 }
 0x46d   : > { %v3573_v0 = vcvt.s32.f32 %v1691_v62  ;;  %v1664_v62 = vcvt.s32.f32 %v1662_v43  ;;  %v1692_v7 = vcvt.s32.f32 %v1690_v51 }
 0x46f   : > { %1680 = vmin.xlane.f32.xlu1 %v3569_v61  ;;  %1694 = vmin.xlane.f32.xlu0 %v3573_v0 }
 0x473   : > { %1708 = vmin.xlane.f32.xlu1 %v3577_v1 }
 0x4e0   : > { %v3581_v5 = vpop.xlane.xlu0 %1498 }
 0x4e1   : > { %vm1500_vm3 = vcmp.eq.f32.partialorder %v3439_v9, %v3581_v5 }
 0x4e2   : > { %v1501_v12 = vsel %vm1500_vm3, %v1496_v6, inf  ;;  %v1678_v6 = vcvt.s32.f32 %v1676_v44  ;;  %vm2992_vm3 = vmmov 0  }
 0x4e3   : > { %1502 = vmin.xlane.f32.xlu0 %v1501_v12  ;;  %v1706_v12 = vcvt.s32.f32 %v1704_v52 }
 0x4e4   : > { %v3587_v13 = vpop.xlane.xlu1 %1512  ;;  %v3589_v15 = vpop.xlane.xlu0 %1526 }
 0x4e5   : > { %vm1514_vm6 = vcmp.eq.f32.partialorder %v3457_v17, %v3587_v13  ;;  %vm1528_vm7 = vcmp.eq.f32.partialorder %v3450_v14, %v3589_v15  ;;  %v1533_v37 = vcvt.f32.s32 %v3589_v15 }
 0x4e6   : > { %v1515_v4 = vsel %vm1514_vm6, %v1510_v16, inf  ;;  %v1529_v9 = vsel %vm1528_vm7, %v1524_v20, inf  ;;  %v2993_v16 = vmov 0.0   ;;  %v1856_v20 = vld [vmem:[#allocation11 + $0x10] sm:$0xff] }
 0x4e7   : > { %1516 = vmin.xlane.f32.xlu1 %v1515_v4  ;;  %1530 = vmin.xlane.f32.xlu0 %v1529_v9  ;;  %v2491_v4 = vpack.c.bf16 %v1857_v21, %v1856_v20  ;;  %v1858_v9 = vld [vmem:[#allocation11 + $0x20] sm:$0xff] }
 0x4e8   : > { %v3597_v10 = vpop.xlane.xlu1 %1540  ;;  %v3599_v23 = vpop.xlane.xlu0 %1554  ;;  %2425 = vmatprep.mubr.msk.f32.mxu0 %vm2992_vm3, %v2993_v16  ;;  %2460 = vmatprep.mubr.msk.f32.mxu1 %vm2992_vm3, %v2993_v16 }
 0x4e9   : > { %vm1542_vm8 = vcmp.eq.f32.partialorder %v3469_v22, %v3597_v10  ;;  %vm1556_vm9 = vcmp.eq.f32.partialorder %v3477_v26, %v3599_v23 }
 0x4ea   : > { %v1543_v14 = vsel %vm1542_vm8, %v1538_v24, inf  ;;  %v1557_v17 = vsel %vm1556_vm9, %v1552_v29, inf  ;;  %v1859_v24 = vld [vmem:[#allocation11 + $0x28] sm:$0xff]  ;;  %v1860_v29 = vld [vmem:[#allocation11 + $0x30] sm:$0xff] }
 0x4eb   : > { %1544 = vmin.xlane.f32.xlu1 %v1543_v14  ;;  %1558 = vmin.xlane.f32.xlu0 %v1557_v17  ;;  %v2497_v18 = vpack.c.bf16 %v1861_v11, %v1860_v29  ;;  %v1862_v14 = vld [vmem:[#allocation11 + $0x40] sm:$0xff]  ;;  %v1863_v17 = vld [vmem:[#allocation11 + $0x48] sm:$0xff] }
 0x4ec   : > { %v3607_v30 = vpop.xlane.xlu1 %1568  ;;  %v3609_v32 = vpop.xlane.xlu0 %1582 }
 0x4ed   : > { %vm1570_vm10 = vcmp.eq.f32.partialorder %v3489_v31, %v3607_v30  ;;  %vm1584_vm11 = vcmp.eq.f32.partialorder %v3497_v35, %v3609_v32  ;;  %v1575_v52 = vcvt.f32.s32 %v3607_v30 }
 0x4ee   : > { %v1571_v22 = vsel %vm1570_vm10, %v1566_v33, inf  ;;  %v1585_v26 = vsel %vm1584_vm11, %v1580_v38, inf  ;;  %v2500_v33 = vpack.c.bf16 %v1863_v17, %v1862_v14  ;;  %v1864_v38 = vld [vmem:[#allocation11 + $0x50] sm:$0xff] }
 0x4ef   : > { %1572 = vmin.xlane.f32.xlu1 %v1571_v22  ;;  %1586 = vmin.xlane.f32.xlu0 %v1585_v26  ;;  %v2503_v27 = vpack.c.bf16 %v1865_v19, %v1864_v38  ;;  %v1866_v22 = vld [vmem:[#allocation11 + $0x60] sm:$0xff]  ;;  %v1867_v26 = vld [vmem:[#allocation11 + $0x68] sm:$0xff] }
 0x4f0   : > { %v3617_v39 = vpop.xlane.xlu1 %1596  ;;  %v3619_v25 = vpop.xlane.xlu0 %1610 }
 0x4f1   : > { %vm1598_vm12 = vcmp.eq.f32.partialorder %v3509_v40, %v3617_v39  ;;  %vm1612_vm13 = vcmp.eq.f32.partialorder %v3517_v42, %v3619_v25 }
 0x4f2   : > { %v1599_v31 = vsel %vm1598_vm12, %v1594_v41, inf  ;;  %v1613_v35 = vsel %vm1612_vm13, %v1608_v45, inf  ;;  %v2506_v41 = vpack.c.bf16 %v1867_v26, %v1866_v22  ;;  %v1868_v45 = vld [vmem:[#allocation11 + $0x70] sm:$0xff] }
 0x4f3   : > { %1600 = vmin.xlane.f32.xlu1 %v1599_v31  ;;  %1614 = vmin.xlane.f32.xlu0 %v1613_v35  ;;  %v2509_v36 = vpack.c.bf16 %v1869_v28, %v1868_v45  ;;  %v1505_v31 = vcvt.f32.s32 %v3581_v5  ;;  %v1519_v35 = vcvt.f32.s32 %v3587_v13 }
 0x4f4   : > { %v3627_v46 = vpop.xlane.xlu1 %1624  ;;  %v3629_v48 = vpop.xlane.xlu0 %1638 }
 0x4f5   : > { %vm1626_vm14 = vcmp.eq.f32.partialorder %v3529_v47, %v3627_v46  ;;  %vm1640_vm15 = vcmp.eq.f32.partialorder %v3537_v50, %v3629_v48  ;;  %v1631_v38 = vcvt.f32.s32 %v3627_v46  ;;  %v1645_v19 = vcvt.f32.s32 %v3629_v48 }
 0x4f6   : > { %v1627_v40 = vsel %vm1626_vm14, %v1622_v49, inf  ;;  %v1641_v42 = vsel %vm1640_vm15, %v1636_v53, inf  ;;  %v1506_v53 = vshll.u32 %v1505_v31, 16 }
 0x4f7   : > { %1628 = vmin.xlane.f32.xlu1 %v1627_v40  ;;  %1642 = vmin.xlane.f32.xlu0 %v1641_v42  ;;  %v1547_v40 = vcvt.f32.s32 %v3597_v10  ;;  %v1646_v31 = vshll.u32 %v1645_v19, 16 }
 0x4f8   : > { %v3637_v54 = vpop.xlane.xlu1 %1652  ;;  %v3639_v56 = vpop.xlane.xlu0 %1666 }
 0x4f9   : > { %vm1654_vm0 = vcmp.eq.f32.partialorder %v3549_v55, %v3637_v54  ;;  %vm1668_vm1 = vcmp.eq.f32.partialorder %v3557_v58, %v3639_v56  ;;  %v1548_v13 = vshll.u32 %v1547_v40, 16 }
 0x4fa   : > { %v1655_v47 = vsel %vm1654_vm0, %v1650_v57, inf  ;;  %v1669_v50 = vsel %vm1668_vm1, %v1664_v62, inf  ;;  %v1520_v57 = vshll.u32 %v1519_v35, 16  ;;  %v1561_v62 = vcvt.f32.s32 %v3599_v23 }
 0x4fb   : > { %1656 = vmin.xlane.f32.xlu1 %v1655_v47  ;;  %1670 = vmin.xlane.f32.xlu0 %v1669_v50  ;;  %v1534_v47 = vshll.u32 %v1533_v37, 16  ;;  %v1589_v23 = vcvt.f32.s32 %v3609_v32  ;;  %v2994_v32 = vmov 1.0|1.0   ;;  %v1659_v35 = vcvt.f32.s32 %v3637_v54 }
 0x4fc   : > { %v3647_v63 = vpop.xlane.xlu1 %1680  ;;  %v3649_v2 = vpop.xlane.xlu0 %1694  ;;  %v1562_v10 = vshll.u32 %v1561_v62, 16 }
 0x4fd   : > { %vm1682_vm2 = vcmp.eq.f32.partialorder %v3569_v61, %v3647_v63  ;;  %vm1696_vm4 = vcmp.eq.f32.partialorder %v3573_v0, %v3649_v2  ;;  %v1854_v61 = vld [vmem:[#allocation11] sm:$0xff]  ;;  %v1855_v0 = vld [vmem:[#allocation11 + $0x8] sm:$0xff]  ;;  %v1590_v21 = vshll.u32 %v1589_v23, 16  ;;  %v1660_v62 = vshll.u32 %v1659_v35, 16 }
 0x4fe   : > { %v1683_v55 = vsel %vm1682_vm2, %v1678_v6, inf  ;;  %v1697_v58 = vsel %vm1696_vm4, %v1692_v7, inf  ;;  %v2488_v3 = vpack.c.bf16 %v1855_v0, %v1854_v61 }
 0x4ff   : > { %1684 = vmin.xlane.f32.xlu1 %v1683_v55  ;;  %1698 = vmin.xlane.f32.xlu0 %v1697_v58 }
 0x500   : > { %v3658_v59 = vpop.xlane.xlu1 %1708  ;;  %2489 = vmatpush3.bf16.msra.mxu1 %v2488_v3  ;;  %v1576_v3 = vshll.u32 %v1575_v52, 16 }
 0x501   : > { %vm1710_vm5 = vcmp.eq.f32.partialorder %v3577_v1, %v3658_v59  ;;  %2490 = vmatprep.subr.bf16.mxu1 %v2991_v8  ;;  %v2494_v1 = vpack.c.bf16 %v1859_v24, %v1858_v9  ;;  %v1617_v9 = vcvt.f32.s32 %v3619_v25  ;;  %v1715_v23 = vcvt.f32.s32 %v3658_v59 }
 0x502   : > { %v1711_v60 = vsel %vm1710_vm5, %v1706_v12, inf }
 0x503   : > { %1712 = vmin.xlane.f32.xlu1 %v1711_v60 }
 0x504   : > { %2492 = vmatpush3.bf16.msra.mxu1 %v2491_v4  ;;  %v1603_v4 = vcvt.f32.s32 %v3617_v39 }
 0x505   : > { %2493 = vmatprep.subr.bf16.mxu1 %v2991_v8 }
 0x506   : > { %v1604_v17 = vshll.u32 %v1603_v4, 16 }
 0x508   : > { %2495 = vmatpush3.bf16.msra.mxu1 %v2494_v1 }
 0x509   : > { %2496 = vmatprep.subr.bf16.mxu1 %v2991_v8 }
 0x50c   : > { %2498 = vmatpush3.bf16.msra.mxu1 %v2497_v18 }
 0x50d   : > { %2499 = vmatprep.subr.bf16.mxu1 %v2991_v8 }
 0x510   : > { %2501 = vmatpush3.bf16.msra.mxu1 %v2500_v33  ;;  %v1618_v33 = vshll.u32 %v1617_v9, 16 }
 0x511   : > { %2502 = vmatprep.subr.bf16.mxu1 %v2991_v8 }
 0x514   : > { %2504 = vmatpush3.bf16.msra.mxu1 %v2503_v27 }
 0x515   : > { %2505 = vmatprep.subr.bf16.mxu1 %v2991_v8 }
 0x518   : > { %2507 = vmatpush3.bf16.msra.mxu1 %v2506_v41 }
 0x519   : > { %2508 = vmatprep.subr.bf16.mxu1 %v2991_v8 }
 0x51c   : > { %2510 = vmatpush3.bf16.msra.mxu1 %v2509_v36  ;;  %v1632_v36 = vshll.u32 %v1631_v38, 16 }
 0x570   : > { %v1503_v49 = vpop.xlane.xlu0 %1502 }
 0x571   : > { %v1504_v43 = vcvt.f32.s32 %v1503_v49  ;;  %v1673_v49 = vcvt.f32.s32 %v3639_v56 }
 0x573   : > { %v1507_v42 = vadd.s32 %v1506_v53, %v1504_v43 }
 0x574   : > { %v1517_v44 = vpop.xlane.xlu1 %1516  ;;  %v1531_v51 = vpop.xlane.xlu0 %1530 }
 0x575   : > { %v1518_v50 = vcvt.f32.s32 %v1517_v44  ;;  %v1532_v6 = vcvt.f32.s32 %v1531_v51  ;;  %vm1718_vm6 = vcmp.eq.s32.totalorder %v3357_v34, %v1507_v42  ;;  %v1674_v44 = vshll.u32 %v1673_v49, 16 }
 0x576   : > { %v2173_v5 = vsel %vm1718_vm6, 1.0, %v2993_v16  ;;  %v1687_v51 = vcvt.f32.s32 %v3647_v63 }
 0x577   : > { %v1521_v15 = vadd.s32 %v1520_v57, %v1518_v50  ;;  %v1535_v7 = vadd.s32 %v1534_v47, %v1532_v6  ;;  %1766 = vst [vmem:[#allocation14] sm:$0xff] %v2173_v5  ;;  %v1701_v47 = vcvt.f32.s32 %v3649_v2 }
 0x578   : > { %v1545_v55 = vpop.xlane.xlu1 %1544  ;;  %v1559_v58 = vpop.xlane.xlu0 %1558 }
 0x579   : > { %v1546_v12 = vcvt.f32.s32 %v1545_v55  ;;  %v1560_v60 = vcvt.f32.s32 %v1559_v58  ;;  %vm1719_vm7 = vcmp.eq.s32.totalorder %v3357_v34, %v1521_v15  ;;  %vm1720_vm8 = vcmp.eq.s32.totalorder %v3357_v34, %v1535_v7 }
 0x57a   : > { %v2174_v61 = vsel %vm1719_vm7, 1.0, %v2993_v16  ;;  %vm2464_vm9 = vmpackc.low %vm1719_vm7, %vm1718_vm6  ;;  %v2175_v0 = vsel %vm1720_vm8, 1.0, %v2993_v16  ;;  %v1702_v52 = vshll.u32 %v1701_v47, 16 }
 0x57b   : > { %v1549_v30 = vadd.s32 %v1548_v13, %v1546_v12  ;;  %v1563_v20 = vadd.s32 %v1562_v10, %v1560_v60  ;;  %1767 = vst [vmem:[#allocation14 + $0x8] sm:$0xff] %v2174_v61  ;;  %2465 = vmatpush3.bf16.msk.msra.mxu0 %vm2464_vm9, %v2994_v32  ;;  %1768 = vst [vmem:[#allocation14 + $0x10] sm:$0xff] %v2175_v0  ;;  %v1688_v10 = vshll.u32 %v1687_v51, 16 }
 0x57c   : > { %v1573_v24 = vpop.xlane.xlu1 %1572  ;;  %v1587_v1 = vpop.xlane.xlu0 %1586  ;;  %2466 = vmatprep.subr.bf16.mxu0 %v2991_v8 }
 0x57d   : > { %v1574_v29 = vcvt.f32.s32 %v1573_v24  ;;  %v1588_v11 = vcvt.f32.s32 %v1587_v1  ;;  %vm1721_vm10 = vcmp.eq.s32.totalorder %v3357_v34, %v1549_v30  ;;  %vm1722_vm11 = vcmp.eq.s32.totalorder %v3357_v34, %v1563_v20 }
 0x57e   : > { %v2176_v18 = vsel %vm1721_vm10, 1.0, %v2993_v16  ;;  %vm2467_vm12 = vmpackc.low %vm1721_vm10, %vm1720_vm8  ;;  %v2177_v39 = vsel %vm1722_vm11, 1.0, %v2993_v16 }
 0x57f   : > { %v1577_v25 = vadd.s32 %v1576_v3, %v1574_v29  ;;  %v1591_v14 = vadd.s32 %v1590_v21, %v1588_v11  ;;  %1769 = vst [vmem:[#allocation14 + $0x18] sm:$0xff] %v2176_v18  ;;  %2468 = vmatpush3.bf16.msk.msra.mxu0 %vm2467_vm12, %v2994_v32  ;;  %1770 = vst [vmem:[#allocation14 + $0x20] sm:$0xff] %v2177_v39  ;;  %v1716_v3 = vshll.u32 %v1715_v23, 16  ;;  %v1782_v29 = vld [vmem:[%s3856_s5] sm:$0x3] }
 0x580   : > { %v1601_v27 = vpop.xlane.xlu1 %1600  ;;  %v1615_v22 = vpop.xlane.xlu0 %1614  ;;  %2469 = vmatprep.subr.bf16.mxu0 %v2991_v8 }
 0x581   : > { %v1602_v26 = vcvt.f32.s32 %v1601_v27  ;;  %v1616_v41 = vcvt.f32.s32 %v1615_v22  ;;  %vm1723_vm13 = vcmp.eq.s32.totalorder %v3357_v34, %v1577_v25  ;;  %vm1724_vm14 = vcmp.eq.s32.totalorder %v3357_v34, %v1591_v14 }
 0x582   : > { %v2178_v45 = vsel %vm1723_vm13, 1.0, %v2993_v16  ;;  %vm2470_vm15 = vmpackc.low %vm1723_vm13, %vm1722_vm11  ;;  %v2179_v46 = vsel %vm1724_vm14, 1.0, %v2993_v16 }
 0x583   : > { %v1605_v48 = vadd.s32 %v1604_v17, %v1602_v26  ;;  %v1619_v28 = vadd.s32 %v1618_v33, %v1616_v41  ;;  %1771 = vst [vmem:[#allocation14 + $0x28] sm:$0xff] %v2178_v45  ;;  %2471 = vmatpush3.bf16.msk.msra.mxu0 %vm2470_vm15, %v2994_v32  ;;  %1772 = vst [vmem:[#allocation14 + $0x30] sm:$0xff] %v2179_v46 }
 0x584   : > { %v1629_v53 = vpop.xlane.xlu1 %1628  ;;  %v1643_v37 = vpop.xlane.xlu0 %1642  ;;  %2472 = vmatprep.subr.bf16.mxu0 %v2991_v8 }
 0x585   : > { %v1630_v43 = vcvt.f32.s32 %v1629_v53  ;;  %v1644_v40 = vcvt.f32.s32 %v1643_v37  ;;  %vm1725_vm0 = vcmp.eq.s32.totalorder %v3357_v34, %v1605_v48  ;;  %vm1726_vm1 = vcmp.eq.s32.totalorder %v3357_v34, %v1619_v28 }
 0x586   : > { %v2180_v42 = vsel %vm1725_vm0, 1.0, %v2993_v16  ;;  %vm2473_vm2 = vmpackc.low %vm1725_vm0, %vm1724_vm14  ;;  %v2181_v54 = vsel %vm1726_vm1, 1.0, %v2993_v16 }
 0x587   : > { %v1633_v56 = vadd.s32 %v1632_v36, %v1630_v43  ;;  %v1647_v57 = vadd.s32 %v1646_v31, %v1644_v40  ;;  %1773 = vst [vmem:[#allocation14 + $0x38] sm:$0xff] %v2180_v42  ;;  %2474 = vmatpush3.bf16.msk.msra.mxu0 %vm2473_vm2, %v2994_v32  ;;  %1774 = vst [vmem:[#allocation14 + $0x40] sm:$0xff] %v2181_v54 }
 0x588   : > { %v1657_v50 = vpop.xlane.xlu1 %1656  ;;  %v1671_v6 = vpop.xlane.xlu0 %1670  ;;  %2475 = vmatprep.subr.bf16.mxu0 %v2991_v8 }
 0x589   : > { %v1658_v5 = vcvt.f32.s32 %v1657_v50  ;;  %v1672_v13 = vcvt.f32.s32 %v1671_v6  ;;  %vm1727_vm4 = vcmp.eq.s32.totalorder %v3357_v34, %v1633_v56  ;;  %vm1728_vm5 = vcmp.eq.s32.totalorder %v3357_v34, %v1647_v57 }
 0x58a   : > { %v2182_v15 = vsel %vm1727_vm4, 1.0, %v2993_v16  ;;  %vm2476_vm3 = vmpackc.low %vm1727_vm4, %vm1726_vm1  ;;  %v2183_v63 = vsel %vm1728_vm5, 1.0, %v2993_v16 }
 0x58b   : > { %v1661_v2 = vadd.s32 %v1660_v62, %v1658_v5  ;;  %v1675_v7 = vadd.s32 %v1674_v44, %v1672_v13  ;;  %1775 = vst [vmem:[#allocation14 + $0x48] sm:$0xff] %v2182_v15  ;;  %2477 = vmatpush3.bf16.msk.msra.mxu0 %vm2476_vm3, %v2994_v32  ;;  %1776 = vst [vmem:[#allocation14 + $0x50] sm:$0xff] %v2183_v63 }
 0x58c   : > { %v1685_v55 = vpop.xlane.xlu1 %1684  ;;  %v1699_v58 = vpop.xlane.xlu0 %1698  ;;  %2478 = vmatprep.subr.bf16.mxu0 %v2991_v8 }
 0x58d   : > { %v1686_v12 = vcvt.f32.s32 %v1685_v55  ;;  %v1700_v60 = vcvt.f32.s32 %v1699_v58  ;;  %vm1729_vm6 = vcmp.eq.s32.totalorder %v3357_v34, %v1661_v2  ;;  %vm1730_vm7 = vcmp.eq.s32.totalorder %v3357_v34, %v1675_v7 }
 0x58e   : > { %v2184_v61 = vsel %vm1729_vm6, 1.0, %v2993_v16  ;;  %vm2479_vm8 = vmpackc.low %vm1729_vm6, %vm1728_vm5  ;;  %v2185_v0 = vsel %vm1730_vm7, 1.0, %v2993_v16 }
 0x58f   : > { %v1689_v59 = vadd.s32 %v1688_v10, %v1686_v12  ;;  %v1703_v30 = vadd.s32 %v1702_v52, %v1700_v60  ;;  %1777 = vst [vmem:[#allocation14 + $0x58] sm:$0xff] %v2184_v61  ;;  %2480 = vmatpush3.bf16.msk.msra.mxu0 %vm2479_vm8, %v2994_v32  ;;  %1778 = vst [vmem:[#allocation14 + $0x60] sm:$0xff] %v2185_v0 }
 0x590   : > { %v1713_v20 = vpop.xlane.xlu1 %1712  ;;  %2481 = vmatprep.subr.bf16.mxu0 %v2991_v8 }
 0x591   : > { %vm1732_vm9 = vcmp.eq.s32.totalorder %v3357_v34, %v1703_v30  ;;  %v1714_v21 = vcvt.f32.s32 %v1713_v20  ;;  %vm1731_vm10 = vcmp.eq.s32.totalorder %v3357_v34, %v1689_v59 }
 0x592   : > { %v2187_v4 = vsel %vm1732_vm9, 1.0, %v2993_v16  ;;  %v2186_v9 = vsel %vm1731_vm10, 1.0, %v2993_v16  ;;  %vm2482_vm11 = vmpackc.low %vm1731_vm10, %vm1730_vm7 }
 0x593   : > { %1780 = vst [vmem:[#allocation14 + $0x70] sm:$0xff] %v2187_v4  ;;  %v1717_v24 = vadd.s32 %v1716_v3, %v1714_v21  ;;  %1779 = vst [vmem:[#allocation14 + $0x68] sm:$0xff] %v2186_v9  ;;  %2483 = vmatpush3.bf16.msk.msra.mxu0 %vm2482_vm11, %v2994_v32 }
 0x594   : > { %2484 = vmatprep.subr.bf16.mxu0 %v2991_v8  ;;  %v2205_v8 = vld [vmem:[%s3858_s7] ss:$0 sm:$0xff] }
 0x595   : > { %vm1733_vm12 = vcmp.eq.s32.totalorder %v3357_v34, %v1717_v24 }
 0x596   : > { %v2188_v1 = vsel %vm1733_vm12, 1.0, %v2993_v16  ;;  %vm2485_vm13 = vmpackc.low %vm1733_vm12, %vm1732_vm9 }
 0x597   : > { %1781 = vst [vmem:[#allocation14 + $0x78] sm:$0xff] %v2188_v1  ;;  %2486 = vmatpush3.bf16.msk.msra.mxu0 %vm2485_vm13, %v2994_v32 }
 0x59a   : > { %2426 = vmatmul.mubr.f32.vlgmr.msra.gmra.mrb[0].mxu0 %v1782_v29 }
 0x66d   : > { %v1849_v11 = vpop.f32.mrb[0].mxu0 }
 0x66e   : > { %1853 = vst [vmem:[#allocation16] sm:$0x3] %v1849_v11  ;;  %v2427_v18 = vpop.f32.mrb[1].mxu0  ;;  %2461 = vmatmul.mubr.f32.vlgmr.msra.gmra.mrb[0].mxu1 %v1849_v11 }
 0x741   : > { %v1943_v34 = vpop.f32.mrb[0].mxu1 }
 0x742   : > { %v1944_v39 = vadd.f32 %v2205_v8, %v1943_v34  ;;  %v2462_v16 = vpop.f32.mrb[1].mxu1 }
 0x744   : > { %1947 = vst [vmem:[#allocation13] sm:$0x3] %v1944_v39 }
 0x745 PF: > { %p2588_p8 = scmp.eq.s32.totalorder %s3074_s17, 2  ;;  %s2995_s20 = smov [#allocation14]  }
 0x746   : > { %s1965_s27 = sshll.u32 %s2995_s20, 4  ;;  %s1966_s27 = int_to_ptr.vmem [resolvable:$true] %s1965_s27 }
 0x747   : > { %s2842_s16 = scalar_lea.vmem %s1966_s27, 2048  ;;  %p2849_p12 = scmp.lt.s32.totalorder %s1966_s27, %s1966_s27 }
 0x748   : > { %p2843_p4 = scmp.ne.s32.totalorder %s1966_s27, %s2842_s16  ;;  %p2850_p0 = scmp.lt.s32.totalorder %s2842_s16, %s2842_s16 }
 0x74a   : > { %p2844_p6 = pnand %p2843_p4, %p2588_p8  ;;  %p2851_p11 = por %p2850_p0, %p2849_p12 }
 0x74c   : > { %p2845_p9 = pneg %p2844_p6 }
 0x74e   : > { %p2852_p3 = pnand %p2851_p11, %p2845_p9 }
 0x750   : > { %2855 = shalt.err (!%p2852_p3)
}
 0x751   : > { %s2856_s13 = scalar_lea.hbm %s3860_s9, 2048 }
 0x752   : > { %p2857_p7 = scmp.ne.s32.totalorder %s3860_s9, %s2856_s13  ;;  %p2862_p13 = scmp.lt.u32.totalorder %s2856_s13, %s3860_s9 }
 0x754   : > { %p2858_p1 = pnand %p2857_p7, %p2588_p8 }
 0x756   : > { %p2859_p10 = pneg %p2858_p1 }
 0x758   : > { %p2864_p2 = pnand %p2862_p13, %p2859_p10 }
 0x75a   : > { %2867 = shalt.err (!%p2864_p2)
}
 0x75b   : > { %s2996_s11 = smov 128   ;;  %s2997_s0 = smov 8  }
 0x75c   : > { %2550 = dma.vmem_to_hbm [thread:$0]  (%p2588_p8), %s1966_s27, 2048, %s3860_s9, [#allocation15], %s2996_s11, %s2996_s11, %s2997_s0  }
 0x75d   : > { %s2998_s28 = smov [#allocation13]   ;;  %s2999_s30 = smov [#allocation16]  }
 0x75e   : > { %s1955_s12 = sshll.u32 %s2998_s28, 4  ;;  %s1979_s18 = sshll.u32 %s2999_s30, 4  ;;  %s1956_s12 = int_to_ptr.vmem [resolvable:$true] %s1955_s12  ;;  %s3787_s18 = int_to_ptr.vmem [resolvable:$true] %s1979_s18 }
 0x75f   : > { %s2868_s10 = scalar_lea.vmem %s1956_s12, 32  ;;  %p2875_p9 = scmp.lt.s32.totalorder %s1956_s12, %s1956_s12 }
 0x760   : > { %p2869_p5 = scmp.ne.s32.totalorder %s1956_s12, %s2868_s10  ;;  %p2876_p12 = scmp.lt.s32.totalorder %s2868_s10, %s2868_s10 }
 0x762   : > { %p2870_p4 = pnand %p2869_p5, %p2588_p8  ;;  %p2877_p0 = por %p2876_p12, %p2875_p9 }
 0x764   : > { %p2871_p6 = pneg %p2870_p4 }
 0x766   : > { %p2878_p11 = pnand %p2877_p0, %p2871_p6 }
 0x768   : > { %2881 = shalt.err (!%p2878_p11)
}
 0x769   : > { %s3916_s21 = sld [smem:[#allocation29_spill]] }
 0x76f   : > { %s2882_s20 = scalar_lea.hbm %s3916_s21, 32 }
 0x770   : > { %p2883_p3 = scmp.ne.s32.totalorder %s3916_s21, %s2882_s20  ;;  %p2888_p10 = scmp.lt.u32.totalorder %s2882_s20, %s3916_s21 }
 0x772   : > { %p2884_p7 = pnand %p2883_p3, %p2588_p8 }
 0x774   : > { %p2885_p1 = pneg %p2884_p7 }
 0x776   : > { %p2890_p13 = pnand %p2888_p10, %p2885_p1 }
 0x778   : > { %2893 = shalt.err (!%p2890_p13)
}
 0x779   : > { %2548 = dma.vmem_to_hbm [thread:$0]  (%p2588_p8), %s1956_s12, 32, %s3916_s21, [#allocation5]  }
 0x77a   : > { %s2894_s1 = scalar_lea.vmem %s3787_s18, 32  ;;  %p2901_p6 = scmp.lt.s32.totalorder %s3787_s18, %s3787_s18 }
 0x77b   : > { %p2895_p2 = scmp.ne.s32.totalorder %s3787_s18, %s2894_s1  ;;  %p2902_p9 = scmp.lt.s32.totalorder %s2894_s1, %s2894_s1 }
 0x77d   : > { %p2896_p5 = pnand %p2895_p2, %p2588_p8  ;;  %p2903_p12 = por %p2902_p9, %p2901_p6 }
 0x77f   : > { %p2897_p4 = pneg %p2896_p5 }
 0x781   : > { %p2904_p0 = pnand %p2903_p12, %p2897_p4 }
 0x783   : > { %2907 = shalt.err (!%p2904_p0)
}
 0x784   : > { %s3917_s11 = sld [smem:[#allocation30_spill]] }
 0x78a   : > { %s2908_s0 = scalar_lea.hbm %s3917_s11, 32 }
 0x78b   : > { %p2909_p11 = scmp.ne.s32.totalorder %s3917_s11, %s2908_s0  ;;  %p2914_p1 = scmp.lt.u32.totalorder %s2908_s0, %s3917_s11 }
 0x78d   : > { %p2910_p3 = pnand %p2909_p11, %p2588_p8 }
 0x78f   : > { %p2911_p7 = pneg %p2910_p3 }
 0x791   : > { %p2916_p10 = pnand %p2914_p1, %p2911_p7 }
 0x793   : > { %2919 = shalt.err (!%p2916_p10)
}
 0x794   : > { %2552 = dma.vmem_to_hbm [thread:$0]  (%p2588_p8), %s3787_s18, 32, %s3917_s11, [#allocation15]  }
 0x795   : > { %2957 = dma.done.wait (%p2588_p8), [#allocation5], 32  }
 0x796   : > { %2959 = vsyncadd (%p2588_p8), [#allocation5], 4294967264 }
 0x797   : > { %2961 = dma.done.wait (%p2588_p8), [#allocation15], 2080  }
 0x798   : > { %2963 = vsyncadd (%p2588_p8), [#allocation15], 4294965216 }
 0x799 PF: > { %s3918_s16 = sld [smem:[#allocation24_spill]]  ;;  %s3919_s26 = sld [smem:[#allocation25_spill]] }
 0x79a   : > { %s3920_s13 = smov %s2970_s14  ;;  %s3921_s14 = smov %s2974_s15 }
 0x79f   : > { %p23_p13 = scmp.ge.s32.totalorder %s3918_s16, 5   ;;  %s3922_s15 = smov %s3919_s26 }
 0x7a1   :  { %25 = sbr.rel (!%p23_p13) target bundleno = 12 (0xc), region = 140 }
 0x7a8   :  { %2000 = vsyncpa [#allocation4], 1 }
 0x7a9   :  { %2002 = vsyncpa [#allocation4 + $0x1], 1 }
 0x7aa   :  { %2003 = vsyncpa [#allocation7], 1 }
 0x7ab   :  { %2004 = vsyncpa [#allocation12], 1 }
 0x7ac   :  { %2005 = vsyncpa [#allocation5], 1 }
 0x7ad   :  { %2007 = vsyncpa [#allocation5 + $0x1], 1 }
 0x7ae   :  { %2008 = vsyncpa [#allocation15], 1 }

// kernel: tpu_custom_call.1
= control target key start
LH: loop header
LB: loop body
LE: loop exit
PB: predicated region body
PF: predicated region fallthrough
CT: control target
= control target key end

     0   :  { %s3851_s0 = inlined_call_operand.hbm [shape: f32[128,128], index: 0, kind: input, shape index: {}]   ;;  %s3852_s1 = inlined_call_operand.hbm [shape: bf16[128,128], index: 1, kind: input, shape index: {}]   ;;  %s3853_s2 = inlined_call_operand.hbm [shape: bf16[3,2,128,128], index: 2, kind: input, shape index: {}]   ;;  %s3854_s3 = inlined_call_operand.hbm [shape: f32[3,4,128], index: 3, kind: input, shape index: {}]   ;;  %s3855_s4 = inlined_call_operand.hbm [shape: f32[128,128], index: 4, kind: input, shape index: {}]   ;;  %s3856_s5 = inlined_call_operand.vmem [shape: f32[2,128], index: 5, kind: input, shape index: {}]   ;;  %s3857_s6 = inlined_call_operand.hbm [shape: f32[128,128], index: 6, kind: input, shape index: {}]   ;;  %s3858_s7 = inlined_call_operand.vmem [shape: f32[1,128], index: 7, kind: input, shape index: {}]   ;;  %s3859_s8 = inlined_call_operand.hbm [shape: f32[2,128], index: 8, kind: output, shape index: {0}]   ;;  %s3860_s9 = inlined_call_operand.hbm [shape: f32[128,128], index: 9, kind: output, shape index: {1}]   ;;  %s3861_s10 = inlined_call_operand.hbm [shape: f32[2,128], index: 10, kind: output, shape index: {2}]  }
   0x1   :  { %3881 = sst [smem:[#allocation26_spill]] %s3851_s0 }
   0x2   :  { %3882 = sst [smem:[#allocation27_spill]] %s3852_s1 }
   0x3   :  { %3883 = sst [smem:[#allocation28_spill]] %s3853_s2 }
   0x4   :  { %3884 = sst [smem:[#allocation29_spill]] %s3859_s8 }
   0x5   :  { %3885 = sst [smem:[#allocation30_spill]] %s3861_s10 }
   0x6   :  { %16 = vsyncpa [#allocation4], 0 }
   0x7   :  { %17 = vsyncpa [#allocation7], 0 }
   0x8   :  { %18 = vsyncpa [#allocation12], 0 }
   0x9   :  { %19 = vsyncpa [#allocation5], 0 }
   0xa   :  { %20 = vsyncpa [#allocation15], 0  ;;  %s3055_s13 = smov 0   ;;  %s3057_s14 = smov 0  }
   0xb   :  { %s3059_s15 = smov 0   ;;  %s3061_s16 = smov 0  }
   0xc LB: > { %s3074_s17 = sadd.s32 4294967295, %s2978_s16   ;;  %p88_p0 = scmp.ne.s32.totalorder %s2970_s14, %s2966_s13  ;;  %s2978_s16 = sphi %s3061_s16, %s3918_s16   ;;  %s2974_s15 = sphi %s3059_s15, %s3922_s15   ;;  %s2970_s14 = sphi %s3057_s14, %s3921_s14   ;;  %s2966_s13 = sphi %s3055_s13, %s3920_s13  }
   0xd   : > { %p3862_p1 = scmp.eq.s32.totalorder %s3074_s17, 0  ;;  %p2109_p2 = scmp.ge.s32.totalorder %s2978_s16, 1 }
   0xe   : > { %p272_p3 = scmp.lt.s32.totalorder %s2978_s16, 4  ;;  %s2980_s20 = smov [#allocation3]  }
   0xf   : > { %p3083_p5 = por %p3862_p1, %p88_p0  ;;  %s284_s21 = sshll.u32 %s2980_s20, 4  ;;  %s285_s21 = int_to_ptr.vmem [resolvable:$true] %s284_s21 }
  0x10   : > { %p3087_p6 = pnand %p2109_p2, %p272_p3  ;;  %s2981_s23 = smov [#allocation6]  }
  0x11   : > { %s3886_s18 = scalar_select %p3083_p5, 1, 0 }
  0x12   : > { %s3887_s19 = scalar_select %p3087_p6, 1, 0 }
  0x13   : > { %p2559_p7 = pneg %p3087_p6  ;;  %s297_s24 = sshll.u32 %s2981_s23, 4  ;;  %s3099_s24 = int_to_ptr.vmem [resolvable:$true] %s297_s24 }
  0x14   : > { %s3889_s0 = sld [smem:[#allocation26_spill]] }
  0x15   : > { %p3095_p8 = pnand %p2559_p7, %p3862_p1 }
  0x17   : > { %s3888_s22 = scalar_select %p3095_p8, 1, 0 }
  0x18   : > { %p3109_p10 = pneg %p3095_p8 }
  0x1a   : > { %s2670_s27 = scalar_lea.hbm %s3889_s0, 2048 }
  0x1b   : > { %p2671_p9 = scmp.ne.s32.totalorder %s3889_s0, %s2670_s27  ;;  %p2677_p13 = scmp.lt.u32.totalorder %s2670_s27, %s3889_s0 }
  0x1d   : > { %p2673_p11 = pnand %p3109_p10, %p2671_p9 }
  0x1f   : > { %p2674_p12 = pneg %p2673_p11 }
  0x21   : > { %p2679_p0 = pnand %p2677_p13, %p2674_p12 }
  0x23   : > { %2682 = shalt.err (!%p2679_p0)
}
  0x24   : > { %s2683_s13 = scalar_lea.vmem %s285_s21, 2048  ;;  %p2691_p4 = scmp.lt.s32.totalorder %s285_s21, %s285_s21 }
  0x25   : > { %p2684_p2 = scmp.ne.s32.totalorder %s285_s21, %s2683_s13  ;;  %p2692_p1 = scmp.lt.s32.totalorder %s2683_s13, %s2683_s13 }
  0x27   : > { %p2686_p3 = pnand %p2684_p2, %p3109_p10  ;;  %p2693_p5 = por %p2692_p1, %p2691_p4 }
  0x29   : > { %p2687_p7 = pneg %p2686_p3 }
  0x2b   : > { %p2694_p6 = pnand %p2693_p5, %p2687_p7 }
  0x2d   : > { %2697 = shalt.err (!%p2694_p6)
}
  0x2e   : > { %s3866_s20 = smov 128   ;;  %s3868_s23 = smov 8  }
  0x2f   : > { %2562 = dma.hbm_to_vmem [thread:$0]  (!%p3095_p8), %s3889_s0, 2048, %s285_s21, [#allocation4], %s3866_s20, %s3866_s20, %s3868_s23  }
  0x30   : > { %s3891_s1 = sld [smem:[#allocation27_spill]] }
  0x36   : > { %s2698_s29 = scalar_lea.hbm %s3891_s1, 1024 }
  0x37   : > { %p2699_p1 = scmp.ne.s32.totalorder %s3891_s1, %s2698_s29  ;;  %p2705_p6 = scmp.lt.u32.totalorder %s2698_s29, %s3891_s1 }
  0x39   : > { %p2701_p4 = pnand %p2699_p1, %p3109_p10 }
  0x3b   : > { %p2702_p5 = pneg %p2701_p4 }
  0x3d   : > { %p2707_p9 = pnand %p2705_p6, %p2702_p5 }
  0x3f   : > { %2710 = shalt.err (!%p2707_p9)
}
  0x40   : > { %s2711_s21 = scalar_lea.vmem %s3099_s24, 1024  ;;  %p2719_p0 = scmp.lt.s32.totalorder %s3099_s24, %s3099_s24 }
  0x41   : > { %p2712_p11 = scmp.ne.s32.totalorder %s3099_s24, %s2711_s21  ;;  %p2720_p2 = scmp.lt.s32.totalorder %s2711_s21, %s2711_s21 }
  0x43   : > { %p2714_p12 = pnand %p2712_p11, %p3109_p10  ;;  %p2721_p3 = por %p2720_p2, %p2719_p0 }
  0x45   : > { %p2715_p13 = pneg %p2714_p12 }
  0x47   : > { %p2722_p7 = pnand %p2721_p3, %p2715_p13 }
  0x49   : > { %2725 = shalt.err (!%p2722_p7)
}
  0x4a   : > { %s3871_s25 = smov 64   ;;  %s3872_s10 = smov 4  }
  0x4b   : > { %2565 = dma.hbm_to_vmem [thread:$0]  (!%p3095_p8), %s3891_s1, 1024, %s3099_s24, [#allocation7], %s3871_s25, %s3871_s25, %s3872_s10  }
  0x4c   : > { %s3155_s28 = sadd.s32 1, %s2978_s16   ;;  %s75_s11 = sadd.s32 1, %s2974_s15 }
  0x4d   : > { %3892 = sst [smem:[#allocation24_spill]] %s3155_s28  ;;  %s72_s29 = ssub.s32 %s2978_s16, %s3155_s28 }
  0x4e   : > { %p73_p1 = scmp.eq.s32.totalorder %s72_s29, 0  ;;  %p82_p4 = scmp.ne.s32.totalorder %s2974_s15, %s2970_s14 }
  0x4f   : > { %p83_p5 = scmp.eq.s32.totalorder %s2978_s16, 0  ;;  %p2583_p9 = scmp.lt.s32.totalorder %s2978_s16, 3 }
  0x50   : > { %s3164_s12 = scalar_select %p73_p1, %s2974_s15, %s75_s11  }
  0x51   : > { %p84_p6 = por %p83_p5, %p82_p4  ;;  %s343_s13 = sand.u32 1, %s2978_s16  }
  0x52   : > { %3893 = sst [smem:[#allocation25_spill]] %s3164_s12  ;;  %s3870_s21 = sand.u32 1, %s2974_s15  }
  0x53   : > { %s2115_s20 = sshll.u32 %s3870_s21, 7  ;;  %s2214_s23 = sshll.u32 %s2978_s16, 11 }
  0x54   : > { %s3894_s2 = sld [smem:[#allocation28_spill]]  ;;  %s347_s27 = scalar_lea.vmem [#allocation8], %s2115_s20 }
  0x55   : > { %s354_s29 = sshll.u32 %s347_s27, 4  ;;  %p3179_p11 = pnand %p2583_p9, %p84_p6  ;;  %s3177_s29 = int_to_ptr.vmem [resolvable:$true] %s354_s29 }
  0x56   : > { %s2986_s21 = smov [#allocation10]   ;;  %s3185_s0 = scalar_lea.sflag [#allocation4], %s343_s13 }
  0x57   : > { %s3895_s11 = scalar_select %p3179_p11, 1, 0 }
  0x58   : > { %s3183_s25 = sshll.u32 %s2986_s21, 4  ;;  %p3877_p13 = pneg %p3179_p11  ;;  %s311_s25 = int_to_ptr.vmem [resolvable:$true] %s3183_s25 }
  0x5a   : > { %s3175_s24 = scalar_lea.hbm %s3894_s2, %s2214_s23  ;;  %s2731_s27 = scalar_lea.hbm %s3894_s2, 6144 }
  0x5b   : > { %s2726_s23 = scalar_lea.hbm %s3175_s24, 2048  ;;  %p2732_p3 = scmp.lt.u32.totalorder %s3175_s24, %s3894_s2 }
  0x5c   : > { %p2727_p12 = scmp.ne.s32.totalorder %s3175_s24, %s2726_s23  ;;  %p2733_p7 = scmp.lt.u32.totalorder %s2731_s27, %s2726_s23 }
  0x5d   : > { %p2735_p4 = scmp.lt.u32.totalorder %s2726_s23, %s3175_s24 }
  0x5e   : > { %p2729_p0 = pnand %p3877_p13, %p2727_p12  ;;  %p2734_p1 = por %p2733_p7, %p2732_p3 }
  0x60   : > { %p2730_p2 = pneg %p2729_p0  ;;  %p2736_p5 = por %p2735_p4, %p2734_p1 }
  0x62   : > { %p2737_p6 = pnand %p2736_p5, %p2730_p2 }
  0x64   : > { %2740 = shalt.err (!%p2737_p6)
}
  0x65   : > { %s2741_s13 = scalar_lea.vmem %s3177_s29, 2048  ;;  %s2987_s21 = smov [#allocation8]  }
  0x66   : > { %p2742_p9 = scmp.ne.s32.totalorder %s3177_s29, %s2741_s13  ;;  %s2746_s20 = sshll.u32 %s2987_s21, 4  ;;  %s2747_s20 = int_to_ptr.vmem [resolvable:$false] %s2746_s20 }
  0x67   : > { %s2748_s1 = scalar_lea.vmem %s2747_s20, 4096  ;;  %p2749_p8 = scmp.lt.s32.totalorder %s3177_s29, %s2747_s20 }
  0x68   : > { %p2744_p12 = pnand %p2742_p9, %p3877_p13  ;;  %p2750_p3 = scmp.lt.s32.totalorder %s2748_s1, %s2741_s13 }
  0x6a   : > { %p2745_p0 = pneg %p2744_p12  ;;  %p2751_p7 = por %p2750_p3, %p2749_p8 }
  0x6c   : > { %p2752_p1 = pnand %p2751_p7, %p2745_p0 }
  0x6e   : > { %2755 = shalt.err (!%p2752_p1)
}
  0x6f   : > { %s3896_s10 = smov 4   ;;  %s3897_s23 = smov 64  }
  0x70   : > { %2575 = dma.hbm_to_vmem [thread:$0]  (!%p3179_p11), %s3175_s24, 2048, %s3177_s29, %s3185_s0, %s3897_s23, %s3897_s23, %s3896_s10  }
  0x71   : > { %s2988_s26 = smov [#allocation11]   ;;  %s2756_s13 = scalar_lea.hbm %s3855_s4, 2048 }
  0x72   : > { %s326_s27 = sshll.u32 %s2988_s26, 4  ;;  %p2757_p8 = scmp.ne.s32.totalorder %s3855_s4, %s2756_s13  ;;  %s327_s27 = int_to_ptr.vmem [resolvable:$true] %s326_s27 }
  0x73   : > { %p2763_p5 = scmp.lt.u32.totalorder %s2756_s13, %s3855_s4 }
  0x74   : > { %p2759_p2 = pnand %p2757_p8, %p3109_p10 }
  0x76   : > { %p2760_p4 = pneg %p2759_p2 }
  0x78   : > { %p2765_p6 = pnand %p2763_p5, %p2760_p4 }
  0x7a   : > { %2768 = shalt.err (!%p2765_p6)
}
  0x7b   : > { %s2769_s24 = scalar_lea.vmem %s311_s25, 2048  ;;  %p2777_p3 = scmp.lt.s32.totalorder %s311_s25, %s311_s25 }
  0x7c   : > { %p2770_p9 = scmp.ne.s32.totalorder %s311_s25, %s2769_s24  ;;  %p2778_p7 = scmp.lt.s32.totalorder %s2769_s24, %s2769_s24 }
  0x7e   : > { %p2772_p12 = pnand %p2770_p9, %p3109_p10  ;;  %p2779_p1 = por %p2778_p7, %p2777_p3 }
  0x80   : > { %p2773_p0 = pneg %p2772_p12 }
  0x82   : > { %p2780_p13 = pnand %p2779_p1, %p2773_p0 }
  0x84   : > { %2783 = shalt.err (!%p2780_p13)
}
  0x85   : > { %p3898_p8 = scmp.ne.s32.totalorder %s3888_s22, 0  ;;  %s3899_s2 = smov 8  }
  0x86   : > { %s3900_s29 = smov 128   ;;  %s3901_s10 = sand.u32 1, %s2974_s15  }
  0x87   : > { %2568 = dma.hbm_to_vmem [thread:$0]  (!%p3898_p8), %s3855_s4, 2048, %s311_s25, [#allocation7], %s3900_s29, %s3900_s29, %s3899_s2  }
  0x88   : > { %s2118_s23 = sshll.u32 %s3901_s10, 2  ;;  %s2784_s20 = scalar_lea.hbm %s3857_s6, 2048 }
  0x89   : > { %p2785_p13 = scmp.ne.s32.totalorder %s3857_s6, %s2784_s20  ;;  %p2791_p5 = scmp.lt.u32.totalorder %s2784_s20, %s3857_s6 }
  0x8b   : > { %p2787_p2 = pnand %p2785_p13, %p3109_p10 }
  0x8d   : > { %p2788_p4 = pneg %p2787_p2 }
  0x8f   : > { %p2793_p6 = pnand %p2791_p5, %p2788_p4 }
  0x91   : > { %2796 = shalt.err (!%p2793_p6)
}
  0x92   : > { %s2797_s25 = scalar_lea.vmem %s327_s27, 2048  ;;  %p2805_p3 = scmp.lt.s32.totalorder %s327_s27, %s327_s27 }
  0x93   : > { %p2798_p9 = scmp.ne.s32.totalorder %s327_s27, %s2797_s25  ;;  %p2806_p7 = scmp.lt.s32.totalorder %s2797_s25, %s2797_s25 }
  0x95   : > { %p2800_p12 = pnand %p2798_p9, %p3109_p10  ;;  %p2807_p1 = por %p2806_p7, %p2805_p3 }
  0x97   : > { %p2801_p0 = pneg %p2800_p12 }
  0x99   : > { %p2808_p11 = pnand %p2807_p1, %p2801_p0 }
  0x9b   : > { %2811 = shalt.err (!%p2808_p11)
}
  0x9c   : > { %2571 = dma.hbm_to_vmem [thread:$0]  (!%p3898_p8), %s3857_s6, 2048, %s327_s27, [#allocation12], %s3900_s29, %s3900_s29, %s3899_s2  }
  0x9d   : > { %s2119_s12 = sshll.u32 %s2978_s16, 6  ;;  %s368_s22 = scalar_lea.vmem [#allocation9], %s2118_s23 }
  0x9e   : > { %s3265_s26 = scalar_lea.hbm %s3854_s3, %s2119_s12  ;;  %s375_s21 = sshll.u32 %s368_s22, 4  ;;  %s376_s21 = int_to_ptr.vmem [resolvable:$true] %s375_s21 }
  0x9f   : > { %s2812_s20 = scalar_lea.hbm %s3265_s26, 64  ;;  %p3902_p11 = scmp.ne.s32.totalorder %s3895_s11, 0 }
  0xa0   : > { %p2813_p10 = scmp.ne.s32.totalorder %s3265_s26, %s2812_s20  ;;  %s2817_s2 = scalar_lea.hbm %s3854_s3, 192 }
  0xa1   : > { %p3903_p13 = pneg %p3902_p11  ;;  %p2818_p8 = scmp.lt.u32.totalorder %s3265_s26, %s3854_s3 }
  0xa2   : > { %p2819_p5 = scmp.lt.u32.totalorder %s2817_s2, %s2812_s20  ;;  %p2821_p9 = scmp.lt.u32.totalorder %s2812_s20, %s3265_s26 }
  0xa3   : > { %p2815_p2 = pnand %p2813_p10, %p3903_p13 }
  0xa4   : > { %p2820_p6 = por %p2819_p5, %p2818_p8 }
  0xa5   : > { %p2816_p4 = pneg %p2815_p2 }
  0xa6   : > { %p2822_p12 = por %p2821_p9, %p2820_p6 }
  0xa8   : > { %p2823_p0 = pnand %p2822_p12, %p2816_p4 }
  0xaa   : > { %2826 = shalt.err (!%p2823_p0)
}
  0xab   : > { %s2827_s23 = scalar_lea.vmem %s376_s21, 64  ;;  %p3904_p7 = pmov %p3903_p13 }
  0xac   : > { %p2828_p3 = scmp.ne.s32.totalorder %s376_s21, %s2827_s23  ;;  %s2989_s1 = smov [#allocation9]  }
  0xad   : > { %s2832_s24 = sshll.u32 %s2989_s1, 4  ;;  %s2833_s24 = int_to_ptr.vmem [resolvable:$false] %s2832_s24 }
  0xae   : > { %p2830_p1 = pnand %p2828_p3, %p3904_p7  ;;  %s2834_s25 = scalar_lea.vmem %s2833_s24, 128 }
  0xaf   : > { %p2835_p13 = scmp.lt.s32.totalorder %s376_s21, %s2833_s24  ;;  %p2836_p2 = scmp.lt.s32.totalorder %s2834_s25, %s2827_s23 }
  0xb0   : > { %p2831_p10 = pneg %p2830_p1 }
  0xb1   : > { %p2837_p5 = por %p2836_p2, %p2835_p13 }
  0xb3   : > { %p2838_p8 = pnand %p2837_p5, %p2831_p10 }
  0xb5   : > { %2841 = shalt.err (!%p2838_p8)
}
  0xb6   : > { %2578 = dma.hbm_to_vmem [thread:$0]  (!%p3902_p11), %s3265_s26, 64, %s376_s21, %s3185_s0  }
  0xb7   : > { %p3905_p4 = scmp.ne.s32.totalorder %s3887_s19, 0 }
  0xb8   : > { %p3906_p6 = scmp.eq.s32.totalorder (!%p3905_p4), %s3074_s17, 0 }
  0xb9   : > { %384 = sbr.rel (%p3905_p4) target bundleno = 1945 (0x799), region = 52 }
  0xc0   : > { %2937 = dma.done.wait (%p3906_p6), [#allocation4], 2048   ;;  %p3907_p9 = pmov %p3906_p6 }
  0xc1   : > { %p3908_p12 = pmov %p3906_p6 }
  0xc2   : > { %2939 = vsyncadd (%p3907_p9), [#allocation4], 4294965248 }
  0xc3   : > { %2941 = dma.done.wait (%p3908_p12), [#allocation7], 1024   ;;  %p3909_p0 = pmov %p3906_p6 }
  0xc4   : > { %s394_s11 = sand.u32 1, %s3074_s17   ;;  %s396_s0 = sand.u32 1, %s2970_s14  }
  0xc5   : > { %2943 = vsyncadd (%p3909_p0), [#allocation7], 4294966272  ;;  %s2123_s8 = sshll.u32 %s396_s0, 7  ;;  %s395_s19 = scalar_lea.sflag [#allocation4], %s394_s11 }
  0xc6   : > { %s3299_s28 = scalar_lea.vmem [#allocation8], %s2123_s8  ;;  %p3910_p11 = scmp.ne.s32.totalorder %s3886_s18, 0 }
  0xc8   : > { %2945 = dma.done.wait (%p3910_p11), %s395_s19, 2112  }
  0xc9   : > { %2947 = vsyncadd (%p3910_p11), %s395_s19, 4294965184  ;;  %s2124_s12 = sshll.u32 %s396_s0, 2  ;;  %p3911_p3 = pmov %p3909_p0 }
  0xca   : > { %s3305_s30 = scalar_lea.vmem [#allocation9], %s2124_s12 }
  0xcb   : > { %2949 = dma.done.wait (%p3911_p3), [#allocation7], 2048   ;;  %p3912_p7 = pmov %p3909_p0 }
  0xcc   : > { %p3913_p1 = pmov %p3909_p0 }
  0xcd   : > { %2951 = vsyncadd (%p3912_p7), [#allocation7], 4294965248 }
  0xce   : > { %2953 = dma.done.wait (%p3913_p1), [#allocation12], 2048   ;;  %p3914_p10 = pmov %p3909_p0 }
  0xcf   : > { %p3915_p13 = scmp.ne.s32.totalorder %s3074_s17, 0 }
  0xd0   : > { %2955 = vsyncadd (%p3914_p10), [#allocation12], 4294965248  ;;  %v457_v0 = vld [vmem:[#allocation3] sm:$0xff] (!%p3915_p13)  ;;  %v458_v1 = vld [vmem:[#allocation3 + $0x8] sm:$0xff] (!%p3915_p13) }
  0xd1   : > { %456 = sbr.rel (%p3915_p13) target bundleno = 217 (0xd9), region = 80  ;;  %v459_v2 = vld [vmem:[#allocation3 + $0x10] sm:$0xff] (!%p3915_p13)  ;;  %473 = vst [vmem:[#allocation2] sm:$0xff] (!%p3915_p13), %v457_v0  ;;  %474 = vst [vmem:[#allocation2 + $0x8] sm:$0xff] (!%p3915_p13), %v458_v1  ;;  %v460_v3 = vld [vmem:[#allocation3 + $0x18] sm:$0xff] (!%p3915_p13) }
  0xd2   : > { %475 = vst [vmem:[#allocation2 + $0x10] sm:$0xff] (!%p3915_p13), %v459_v2  ;;  %v461_v4 = vld [vmem:[#allocation3 + $0x20] sm:$0xff] (!%p3915_p13)  ;;  %v462_v5 = vld [vmem:[#allocation3 + $0x28] sm:$0xff] (!%p3915_p13)  ;;  %476 = vst [vmem:[#allocation2 + $0x18] sm:$0xff] (!%p3915_p13), %v460_v3 }
  0xd3   : > { %477 = vst [vmem:[#allocation2 + $0x20] sm:$0xff] (!%p3915_p13), %v461_v4  ;;  %478 = vst [vmem:[#allocation2 + $0x28] sm:$0xff] (!%p3915_p13), %v462_v5  ;;  %v463_v6 = vld [vmem:[#allocation3 + $0x30] sm:$0xff] (!%p3915_p13)  ;;  %v464_v7 = vld [vmem:[#allocation3 + $0x38] sm:$0xff] (!%p3915_p13) }
  0xd4   : > { %v465_v8 = vld [vmem:[#allocation3 + $0x40] sm:$0xff] (!%p3915_p13)  ;;  %479 = vst [vmem:[#allocation2 + $0x30] sm:$0xff] (!%p3915_p13), %v463_v6  ;;  %480 = vst [vmem:[#allocation2 + $0x38] sm:$0xff] (!%p3915_p13), %v464_v7  ;;  %v466_v9 = vld [vmem:[#allocation3 + $0x48] sm:$0xff] (!%p3915_p13) }
  0xd5   : > { %481 = vst [vmem:[#allocation2 + $0x40] sm:$0xff] (!%p3915_p13), %v465_v8  ;;  %v467_v10 = vld [vmem:[#allocation3 + $0x50] sm:$0xff] (!%p3915_p13)  ;;  %v468_v11 = vld [vmem:[#allocation3 + $0x58] sm:$0xff] (!%p3915_p13)  ;;  %482 = vst [vmem:[#allocation2 + $0x48] sm:$0xff] (!%p3915_p13), %v466_v9 }
  0xd6   : > { %483 = vst [vmem:[#allocation2 + $0x50] sm:$0xff] (!%p3915_p13), %v467_v10  ;;  %484 = vst [vmem:[#allocation2 + $0x58] sm:$0xff] (!%p3915_p13), %v468_v11  ;;  %v469_v12 = vld [vmem:[#allocation3 + $0x60] sm:$0xff] (!%p3915_p13)  ;;  %v470_v13 = vld [vmem:[#allocation3 + $0x68] sm:$0xff] (!%p3915_p13) }
  0xd7   : > { %v471_v14 = vld [vmem:[#allocation3 + $0x70] sm:$0xff] (!%p3915_p13)  ;;  %485 = vst [vmem:[#allocation2 + $0x60] sm:$0xff] (!%p3915_p13), %v469_v12  ;;  %486 = vst [vmem:[#allocation2 + $0x68] sm:$0xff] (!%p3915_p13), %v470_v13  ;;  %v472_v15 = vld [vmem:[#allocation3 + $0x78] sm:$0xff] (!%p3915_p13) }
  0xd8   : > { %487 = vst [vmem:[#allocation2 + $0x70] sm:$0xff] %v471_v14  ;;  %488 = vst [vmem:[#allocation2 + $0x78] sm:$0xff] %v472_v15 }
  0xd9 PF: > { %v538_v16 = vld [vmem:[#allocation2] sm:$0xff]  ;;  %v539_v17 = vld [vmem:[#allocation2 + $0x8] sm:$0xff]  ;;  %v2990_v21 = vmov 0.0   ;;  %v2654_v42 = vld [vmem:[%s3299_s28 + $0x10] sm:$0xff]   ;;  %p1259_p2 = scmp.lt.s32.totalorder %s3074_s17, 2  ;;  %p2172_p5 = scmp.ne.s32.totalorder %s3074_s17, 2 }
  0xda   : > { %v540_v18 = vld [vmem:[#allocation2 + $0x10] sm:$0xff]  ;;  %v554_v19 = vpack.c.bf16 %v539_v17, %v538_v16  ;;  %v541_v20 = vld [vmem:[#allocation2 + $0x18] sm:$0xff]  ;;  %v2644_v36 = vld [vmem:[#allocation6] sm:$0xff]  }
  0xdb   : > { %1345 = vst [vmem:[#allocation2 + $0x10] sm:$0xff] %v2990_v21  ;;  %v542_v22 = vld [vmem:[#allocation2 + $0x20] sm:$0xff]  ;;  %v543_v23 = vld [vmem:[#allocation2 + $0x28] sm:$0xff]  ;;  %v555_v24 = vpack.c.bf16 %v541_v20, %v540_v18  ;;  %1346 = vst [vmem:[#allocation2 + $0x18] sm:$0xff] %v2990_v21  ;;  %2313 = vmatprep.mubr.bf16.mxu0 %v2644_v36  ;;  %s1308_s18 = scalar_select %p1259_p2, 1, 0 }
  0xdc   : > { %1347 = vst [vmem:[#allocation2 + $0x20] sm:$0xff] %v2990_v21  ;;  %1348 = vst [vmem:[#allocation2 + $0x28] sm:$0xff] %v2990_v21  ;;  %v544_v25 = vld [vmem:[#allocation2 + $0x30] sm:$0xff]  ;;  %v545_v26 = vld [vmem:[#allocation2 + $0x38] sm:$0xff]  ;;  %2297 = vmatprep.subr.bf16.mxu0 %v554_v19  ;;  %v556_v34 = vpack.c.bf16 %v543_v23, %v542_v22 }
  0xdd   : > { %v546_v27 = vld [vmem:[#allocation2 + $0x40] sm:$0xff]  ;;  %1349 = vst [vmem:[#allocation2 + $0x30] sm:$0xff] %v2990_v21  ;;  %1350 = vst [vmem:[#allocation2 + $0x38] sm:$0xff] %v2990_v21  ;;  %v547_v28 = vld [vmem:[#allocation2 + $0x48] sm:$0xff]  ;;  %2298 = vmatpush3.bf16.msra.mxu0 %v554_v19  ;;  %v557_v37 = vpack.c.bf16 %v545_v26, %v544_v25 }
  0xde   : > { %1351 = vst [vmem:[#allocation2 + $0x40] sm:$0xff] %v2990_v21  ;;  %v548_v29 = vld [vmem:[#allocation2 + $0x50] sm:$0xff]  ;;  %v549_v30 = vld [vmem:[#allocation2 + $0x58] sm:$0xff]  ;;  %1352 = vst [vmem:[#allocation2 + $0x48] sm:$0xff] %v2990_v21  ;;  %2299 = vmatprep.subr.bf16.mxu0 %v555_v24  ;;  %v558_v38 = vpack.c.bf16 %v547_v28, %v546_v27 }
  0xdf   : > { %1353 = vst [vmem:[#allocation2 + $0x50] sm:$0xff] %v2990_v21  ;;  %1354 = vst [vmem:[#allocation2 + $0x58] sm:$0xff] %v2990_v21  ;;  %v550_v31 = vld [vmem:[#allocation2 + $0x60] sm:$0xff]  ;;  %v551_v32 = vld [vmem:[#allocation2 + $0x68] sm:$0xff]  ;;  %v559_v41 = vpack.c.bf16 %v549_v30, %v548_v29 }
  0xe0   : > { %v552_v33 = vld [vmem:[#allocation2 + $0x70] sm:$0xff]  ;;  %1355 = vst [vmem:[#allocation2 + $0x60] sm:$0xff] %v2990_v21  ;;  %1356 = vst [vmem:[#allocation2 + $0x68] sm:$0xff] %v2990_v21  ;;  %v553_v35 = vld [vmem:[#allocation2 + $0x78] sm:$0xff]  ;;  %v560_v44 = vpack.c.bf16 %v551_v32, %v550_v31 }
  0xe1   : > { %1357 = vst [vmem:[#allocation2 + $0x70] sm:$0xff] %v2990_v21  ;;  %1358 = vst [vmem:[#allocation2 + $0x78] sm:$0xff] %v2990_v21  ;;  %2300 = vmatpush3.bf16.msra.mxu0 %v555_v24  ;;  %v2652_v39 = vld [vmem:[%s3299_s28] sm:$0xff]   ;;  %v2653_v40 = vld [vmem:[%s3299_s28 + $0x8] sm:$0xff]   ;;  %v561_v45 = vpack.c.bf16 %v553_v35, %v552_v33 }
  0xe2   : > { %2301 = vmatprep.subr.bf16.mxu0 %v556_v34  ;;  %2329 = vmatprep.subr.bf16.mxu1 %v2652_v39  ;;  %v2655_v43 = vld [vmem:[%s3299_s28 + $0x18] sm:$0xff]   ;;  %v2656_v46 = vld [vmem:[%s3299_s28 + $0x20] sm:$0xff]   ;;  %v2657_v47 = vld [vmem:[%s3299_s28 + $0x28] sm:$0xff]  }
  0xe3   : > { %2330 = vmatpush3.bf16.msra.mxu1 %v2652_v39  ;;  %v2645_v48 = vld [vmem:[#allocation6 + $0x8] sm:$0xff]   ;;  %v2646_v49 = vld [vmem:[#allocation6 + $0x10] sm:$0xff]   ;;  %v2647_v51 = vld [vmem:[#allocation6 + $0x18] sm:$0xff]  }
  0xe4   : > { %2331 = vmatprep.subr.bf16.mxu1 %v2653_v40  ;;  %v2658_v50 = vld [vmem:[%s3299_s28 + $0x30] sm:$0xff]   ;;  %v2648_v52 = vld [vmem:[#allocation6 + $0x20] sm:$0xff]   ;;  %v2649_v53 = vld [vmem:[#allocation6 + $0x28] sm:$0xff]  }
  0xe5   : > { %2302 = vmatpush3.bf16.msra.mxu0 %v556_v34  ;;  %v2650_v54 = vld [vmem:[#allocation6 + $0x30] sm:$0xff]   ;;  %v2651_v55 = vld [vmem:[#allocation6 + $0x38] sm:$0xff]   ;;  %v2660_v57 = vld [vmem:[%s3299_s28 + $0x40] sm:$0xff]  }
  0xe6   : > { %2303 = vmatprep.subr.bf16.mxu0 %v557_v37  ;;  %v2659_v56 = vld [vmem:[%s3299_s28 + $0x38] sm:$0xff]   ;;  %v2661_v58 = vld [vmem:[%s3299_s28 + $0x48] sm:$0xff]   ;;  %v2662_v59 = vld [vmem:[%s3299_s28 + $0x50] sm:$0xff]  }
  0xe7   : > { %2332 = vmatpush3.bf16.msra.mxu1 %v2653_v40  ;;  %v2663_v60 = vld [vmem:[%s3299_s28 + $0x58] sm:$0xff]   ;;  %v2664_v61 = vld [vmem:[%s3299_s28 + $0x60] sm:$0xff]   ;;  %v2665_v62 = vld [vmem:[%s3299_s28 + $0x68] sm:$0xff]  }
  0xe8   : > { %2333 = vmatprep.subr.bf16.mxu1 %v2654_v42  ;;  %v2666_v23 = vld [vmem:[%s3299_s28 + $0x70] sm:$0xff]   ;;  %v2667_v24 = vld [vmem:[%s3299_s28 + $0x78] sm:$0xff]   ;;  %v3334_v25 = vld [vmem:[%s3305_s30] ss:$0 sm:$0xff] }
  0xe9   : > { %2304 = vmatpush3.bf16.msra.mxu0 %v557_v37 }
  0xea   : > { %2305 = vmatprep.subr.bf16.mxu0 %v558_v38 }
  0xeb   : > { %2334 = vmatpush3.bf16.msra.mxu1 %v2654_v42 }
  0xec   : > { %2335 = vmatprep.subr.bf16.mxu1 %v2655_v43 }
  0xed   : > { %2306 = vmatpush3.bf16.msra.mxu0 %v558_v38 }
  0xee   : > { %2307 = vmatprep.subr.bf16.mxu0 %v559_v41 }
  0xef   : > { %2336 = vmatpush3.bf16.msra.mxu1 %v2655_v43 }
  0xf0   : > { %2337 = vmatprep.subr.bf16.mxu1 %v2656_v46 }
  0xf1   : > { %2308 = vmatpush3.bf16.msra.mxu0 %v559_v41 }
  0xf2   : > { %2309 = vmatprep.subr.bf16.mxu0 %v560_v44 }
  0xf3   : > { %2338 = vmatpush3.bf16.msra.mxu1 %v2656_v46 }
  0xf4   : > { %2339 = vmatprep.subr.bf16.mxu1 %v2657_v47 }
  0xf5   : > { %2310 = vmatpush3.bf16.msra.mxu0 %v560_v44 }
  0xf6   : > { %2311 = vmatprep.subr.bf16.mxu0 %v561_v45 }
  0xf7   : > { %2340 = vmatpush3.bf16.msra.mxu1 %v2657_v47 }
  0xf8   : > { %2341 = vmatprep.subr.bf16.mxu1 %v2658_v50 }
  0xf9   : > { %2312 = vmatpush3.bf16.msra.mxu0 %v561_v45 }
  0xfa   : > { %2361 = vmatprep.subr.bf16.mxu0 %v2660_v57 }
  0xfb   : > { %2342 = vmatpush3.bf16.msra.mxu1 %v2658_v50 }
  0xfc   : > { %2314 = vmatmul.mubr.bf16.vlgmr.msra.gmra.mrb[0].mxu0 %v2645_v48  ;;  %2343 = vmatprep.subr.bf16.mxu1 %v2659_v56 }
  0xfd   : > { %2317 = vmatprep.mubr.bf16.mxu0 %v2646_v49  ;;  %2362 = vmatpush3.bf16.msra.mxu0 %v2660_v57 }
  0xfe   : > { %2363 = vmatprep.subr.bf16.mxu0 %v2661_v58 }
  0xff   : > { %2344 = vmatpush3.bf16.msra.mxu1 %v2659_v56 }
 0x100   : > { %2511 = vmatprep.subr.bf16.mxu1 %v2660_v57 }
 0x101   : > { %2364 = vmatpush3.bf16.msra.mxu0 %v2661_v58 }
 0x102   : > { %2365 = vmatprep.subr.bf16.mxu0 %v2662_v59 }
 0x104   : > { %2318 = vmatmul.mubr.bf16.gmra.mrb[4].mxu0 %v2647_v51 }
 0x105   : > { %2321 = vmatprep.mubr.bf16.mxu0 %v2648_v52  ;;  %2366 = vmatpush3.bf16.msra.mxu0 %v2662_v59 }
 0x106   : > { %2367 = vmatprep.subr.bf16.mxu0 %v2663_v60 }
 0x109   : > { %2368 = vmatpush3.bf16.msra.mxu0 %v2663_v60 }
 0x10a   : > { %2369 = vmatprep.subr.bf16.mxu0 %v2664_v61 }
 0x10c   : > { %2322 = vmatmul.mubr.bf16.gmra.mrb[8].mxu0 %v2649_v53 }
 0x10d   : > { %2325 = vmatprep.mubr.bf16.mxu0 %v2650_v54  ;;  %2370 = vmatpush3.bf16.msra.mxu0 %v2664_v61 }
 0x10e   : > { %2371 = vmatprep.subr.bf16.mxu0 %v2665_v62 }
 0x111   : > { %2372 = vmatpush3.bf16.msra.mxu0 %v2665_v62 }
 0x112   : > { %2373 = vmatprep.subr.bf16.mxu0 %v2666_v23 }
 0x114   : > { %2326 = vmatmul.mubr.bf16.gmra.mrb[12].mxu0 %v2651_v55 }
 0x115   : > { %2374 = vmatpush3.bf16.msra.mxu0 %v2666_v23 }
 0x116   : > { %2375 = vmatprep.subr.bf16.mxu0 %v2667_v24 }
 0x119   : > { %2376 = vmatpush3.bf16.msra.mxu0 %v2667_v24 }
 0x1cf   : > { %v2315_v63 = vpop.f32.mrb[0].mxu0 }
 0x1d0   : > { %v644_v0 = vpop.f32.mrb[1].mxu0 }
 0x1d1   : > { %v2316_v1 = vpop.f32.mrb[2].mxu0 }
 0x1d2   : > { %v712_v2 = vpack.c.bf16 %v2316_v1, %v2315_v63  ;;  %v647_v3 = vpop.f32.mrb[3].mxu0 }
 0x1d3   : > { %v711_v4 = vpack.c.bf16 %v647_v3, %v644_v0 }
 0x1d5   : > { %2345 = vmatprep.mubr.bf16.mxu1 %v711_v4 }
 0x1d6   : > { %2346 = vmatmul.mubr.bf16.vlgmr.msra.gmra.mrb[0].mxu1 %v712_v2 }
 0x1d7   : > { %v2319_v5 = vpop.f32.mrb[4].mxu0  ;;  %2519 = vmatpush3.bf16.msra.mxu1 %v2660_v57 }
 0x1d8   : > { %v660_v6 = vpop.f32.mrb[5].mxu0  ;;  %2512 = vmatprep.subr.bf16.mxu1 %v2661_v58 }
 0x1d9   : > { %v2320_v7 = vpop.f32.mrb[6].mxu0 }
 0x1da   : > { %v714_v8 = vpack.c.bf16 %v2320_v7, %v2319_v5  ;;  %v663_v9 = vpop.f32.mrb[7].mxu0 }
 0x1db   : > { %v713_v10 = vpack.c.bf16 %v663_v9, %v660_v6  ;;  %2520 = vmatpush3.bf16.msra.mxu1 %v2661_v58 }
 0x1dc   : > { %2513 = vmatprep.subr.bf16.mxu1 %v2662_v59 }
 0x1dd   : > { %2349 = vmatprep.mubr.bf16.mxu1 %v713_v10 }
 0x1de   : > { %2350 = vmatmul.mubr.bf16.gmra.mrb[4].mxu1 %v714_v8 }
 0x1df   : > { %v2323_v11 = vpop.f32.mrb[8].mxu0  ;;  %2521 = vmatpush3.bf16.msra.mxu1 %v2662_v59 }
 0x1e0   : > { %v676_v12 = vpop.f32.mrb[9].mxu0  ;;  %2514 = vmatprep.subr.bf16.mxu1 %v2663_v60 }
 0x1e1   : > { %v2324_v13 = vpop.f32.mrb[10].mxu0 }
 0x1e2   : > { %v716_v14 = vpack.c.bf16 %v2324_v13, %v2323_v11  ;;  %v679_v15 = vpop.f32.mrb[11].mxu0 }
 0x1e3   : > { %v715_v16 = vpack.c.bf16 %v679_v15, %v676_v12  ;;  %2522 = vmatpush3.bf16.msra.mxu1 %v2663_v60 }
 0x1e4   : > { %2515 = vmatprep.subr.bf16.mxu1 %v2664_v61 }
 0x1e5   : > { %2353 = vmatprep.mubr.bf16.mxu1 %v715_v16 }
 0x1e6   : > { %2354 = vmatmul.mubr.bf16.gmra.mrb[8].mxu1 %v716_v14 }
 0x1e7   : > { %v2327_v17 = vpop.f32.mrb[12].mxu0  ;;  %2523 = vmatpush3.bf16.msra.mxu1 %v2664_v61 }
 0x1e8   : > { %v692_v18 = vpop.f32.mrb[13].mxu0  ;;  %2516 = vmatprep.subr.bf16.mxu1 %v2665_v62 }
 0x1e9   : > { %v2328_v19 = vpop.f32.mrb[14].mxu0 }
 0x1ea   : > { %v718_v20 = vpack.c.bf16 %v2328_v19, %v2327_v17  ;;  %v695_v21 = vpop.f32.mrb[15].mxu0 }
 0x1eb   : > { %v717_v22 = vpack.c.bf16 %v695_v21, %v692_v18  ;;  %2524 = vmatpush3.bf16.msra.mxu1 %v2665_v62 }
 0x1ec   : > { %2517 = vmatprep.subr.bf16.mxu1 %v2666_v23 }
 0x1ed   : > { %2357 = vmatprep.mubr.bf16.mxu1 %v717_v22 }
 0x1ee   : > { %2358 = vmatmul.mubr.bf16.gmra.mrb[12].mxu1 %v718_v20 }
 0x1ef   : > { %2525 = vmatpush3.bf16.msra.mxu1 %v2666_v23 }
 0x1f0   : > { %2518 = vmatprep.subr.bf16.mxu1 %v2667_v24 }
 0x1f3   : > { %2526 = vmatpush3.bf16.msra.mxu1 %v2667_v24 }
 0x2a9   : > { %v2347_v26 = vpop.f32.mrb[0].mxu1 }
 0x2aa   : > { %v830_v27 = vadd.f32 %v2347_v26, %v3334_v25  ;;  %v821_v28 = vpop.f32.mrb[1].mxu1 }
 0x2ab   : > { %v822_v29 = vadd.f32 %v3334_v25, %v821_v28  ;;  %v2348_v30 = vpop.f32.mrb[2].mxu1 }
 0x2ac   : > { %v902_v31 = vmul.f32 0.01, %v830_v27  ;;  %v833_v32 = vadd.f32 %v2348_v30, %v3334_v25  ;;  %v824_v33 = vpop.f32.mrb[3].mxu1  ;;  %vm886_vm0 = vcmp.gt.f32.partialorder %v830_v27, 0.0 }
 0x2ad   : > { %v900_v34 = vmul.f32 0.01, %v822_v29  ;;  %v825_v35 = vadd.f32 %v3334_v25, %v824_v33  ;;  %vm884_vm1 = vcmp.gt.f32.partialorder %v822_v29, 0.0 }
 0x2ae   : > { %vm887_vm2 = vcmp.gt.f32.partialorder %v833_v32, 0.0  ;;  %v903_v36 = vmul.f32 0.01, %v833_v32  ;;  %v918_v38 = vsel %vm886_vm0, %v830_v27, %v902_v31 }
 0x2af   : > { %vm885_vm3 = vcmp.gt.f32.partialorder %v825_v35, 0.0  ;;  %v901_v37 = vmul.f32 0.01, %v825_v35  ;;  %v916_v41 = vsel %vm884_vm1, %v822_v29, %v900_v34 }
 0x2b0   : > { %v919_v39 = vsel %vm887_vm2, %v833_v32, %v903_v36 }
 0x2b1   : > { %v933_v40 = vpack.c.bf16 %v919_v39, %v918_v38  ;;  %v917_v42 = vsel %vm885_vm3, %v825_v35, %v901_v37  ;;  %v2351_v43 = vpop.f32.mrb[4].mxu1  ;;  %v2161_v35 = vld [vmem:[%s3305_s30 + $0x1] ss:$0 sm:$0xff] }
 0x2b2   : > { %v932_v44 = vpack.c.bf16 %v917_v42, %v916_v41  ;;  %v846_v45 = vadd.f32 %v2351_v43, %v3334_v25  ;;  %v837_v46 = vpop.f32.mrb[5].mxu1 }
 0x2b3   : > { %v838_v47 = vadd.f32 %v3334_v25, %v837_v46  ;;  %v2352_v48 = vpop.f32.mrb[6].mxu1 }
 0x2b4   : > { %2377 = vmatprep.mubr.bf16.mxu0 %v932_v44  ;;  %vm890_vm4 = vcmp.gt.f32.partialorder %v846_v45, 0.0  ;;  %v906_v49 = vmul.f32 0.01, %v846_v45  ;;  %v849_v50 = vadd.f32 %v2352_v48, %v3334_v25  ;;  %v840_v51 = vpop.f32.mrb[7].mxu1 }
 0x2b5   : > { %2378 = vmatmul.mubr.bf16.vlgmr.msra.gmra.mrb[16].mxu0 %v933_v40  ;;  %vm888_vm5 = vcmp.gt.f32.partialorder %v838_v47, 0.0  ;;  %v904_v52 = vmul.f32 0.01, %v838_v47  ;;  %v841_v53 = vadd.f32 %v3334_v25, %v840_v51 }
 0x2b6   : > { %vm891_vm6 = vcmp.gt.f32.partialorder %v849_v50, 0.0  ;;  %v907_v54 = vmul.f32 0.01, %v849_v50  ;;  %v922_v55 = vsel %vm890_vm4, %v846_v45, %v906_v49 }
 0x2b7   : > { %vm889_vm7 = vcmp.gt.f32.partialorder %v841_v53, 0.0  ;;  %v905_v56 = vmul.f32 0.01, %v841_v53  ;;  %v920_v57 = vsel %vm888_vm5, %v838_v47, %v904_v52 }
 0x2b8   : > { %v923_v58 = vsel %vm891_vm6, %v849_v50, %v907_v54 }
 0x2b9   : > { %v2355_v59 = vpop.f32.mrb[8].mxu1  ;;  %v921_v60 = vsel %vm889_vm7, %v841_v53, %v905_v56  ;;  %v935_v61 = vpack.c.bf16 %v923_v58, %v922_v55 }
 0x2ba   : > { %v862_v62 = vadd.f32 %v2355_v59, %v3334_v25  ;;  %v853_v63 = vpop.f32.mrb[9].mxu1  ;;  %v934_v0 = vpack.c.bf16 %v921_v60, %v920_v57 }
 0x2bb   : > { %v854_v1 = vadd.f32 %v3334_v25, %v853_v63  ;;  %v2356_v2 = vpop.f32.mrb[10].mxu1 }
 0x2bc   : > { %vm894_vm8 = vcmp.gt.f32.partialorder %v862_v62, 0.0  ;;  %v910_v3 = vmul.f32 0.01, %v862_v62  ;;  %v865_v4 = vadd.f32 %v2356_v2, %v3334_v25  ;;  %v856_v5 = vpop.f32.mrb[11].mxu1  ;;  %2381 = vmatprep.mubr.bf16.mxu0 %v934_v0 }
 0x2bd   : > { %vm892_vm9 = vcmp.gt.f32.partialorder %v854_v1, 0.0  ;;  %v908_v6 = vmul.f32 0.01, %v854_v1  ;;  %v857_v7 = vadd.f32 %v3334_v25, %v856_v5  ;;  %2382 = vmatmul.mubr.bf16.gmra.mrb[20].mxu0 %v935_v61 }
 0x2be   : > { %v926_v8 = vsel %vm894_vm8, %v862_v62, %v910_v3  ;;  %vm895_vm10 = vcmp.gt.f32.partialorder %v865_v4, 0.0  ;;  %v911_v9 = vmul.f32 0.01, %v865_v4 }
 0x2bf   : > { %vm893_vm11 = vcmp.gt.f32.partialorder %v857_v7, 0.0  ;;  %v909_v10 = vmul.f32 0.01, %v857_v7  ;;  %v924_v11 = vsel %vm892_vm9, %v854_v1, %v908_v6 }
 0x2c0   : > { %v927_v12 = vsel %vm895_vm10, %v865_v4, %v911_v9 }
 0x2c1   : > { %v937_v13 = vpack.c.bf16 %v927_v12, %v926_v8  ;;  %v2359_v14 = vpop.f32.mrb[12].mxu1  ;;  %v925_v15 = vsel %vm893_vm11, %v857_v7, %v909_v10 }
 0x2c2   : > { %v878_v16 = vadd.f32 %v2359_v14, %v3334_v25  ;;  %v869_v17 = vpop.f32.mrb[13].mxu1  ;;  %v936_v18 = vpack.c.bf16 %v925_v15, %v924_v11  ;;  %v2170_v14 = vld [vmem:[%s3305_s30 + $0x2] ss:$0 sm:$0xff] }
 0x2c3   : > { %v870_v19 = vadd.f32 %v3334_v25, %v869_v17  ;;  %v2360_v20 = vpop.f32.mrb[14].mxu1  ;;  %v2171_v17 = vld [vmem:[%s3305_s30 + $0x3] ss:$0 sm:$0xff] }
 0x2c4   : > { %vm898_vm12 = vcmp.gt.f32.partialorder %v878_v16, 0.0  ;;  %v914_v21 = vmul.f32 0.01, %v878_v16  ;;  %v881_v22 = vadd.f32 %v2360_v20, %v3334_v25  ;;  %v872_v23 = vpop.f32.mrb[15].mxu1  ;;  %2385 = vmatprep.mubr.bf16.mxu1 %v936_v18  ;;  %v1309_v20 = vstv %s1308_s18 }
 0x2c5   : > { %vm896_vm13 = vcmp.gt.f32.partialorder %v870_v19, 0.0  ;;  %v912_v24 = vmul.f32 0.01, %v870_v19  ;;  %v873_v26 = vadd.f32 %v3334_v25, %v872_v23  ;;  %2386 = vmatmul.mubr.bf16.vlgmr.msra.gmra.mrb[16].mxu1 %v937_v13  ;;  %vm1310_vm0 = vcmp.eq.s32.totalorder %v1309_v20, 1 }
 0x2c6   : > { %vm899_vm14 = vcmp.gt.f32.partialorder %v881_v22, 0.0  ;;  %v915_v27 = vmul.f32 0.01, %v881_v22  ;;  %v930_v28 = vsel %vm898_vm12, %v878_v16, %v914_v21 }
 0x2c7   : > { %vm897_vm15 = vcmp.gt.f32.partialorder %v873_v26, 0.0  ;;  %v913_v29 = vmul.f32 0.01, %v873_v26  ;;  %v928_v30 = vsel %vm896_vm13, %v870_v19, %v912_v24 }
 0x2c8   : > { %v931_v31 = vsel %vm899_vm14, %v881_v22, %v915_v27 }
 0x2c9   : > { %v929_v32 = vsel %vm897_vm15, %v873_v26, %v913_v29  ;;  %v939_v33 = vpack.c.bf16 %v931_v31, %v930_v28  ;;  %v1395_v31 = vlaneseq (!%p2172_p5) }
 0x2ca   : > { %v938_v34 = vpack.c.bf16 %v929_v32, %v928_v30  ;;  %v1363_v30 = vld [vmem:[#allocation10] sm:$0xff] (!%p2172_p5)  ;;  %v1364_v32 = vld [vmem:[#allocation10 + $0x8] sm:$0xff] (!%p2172_p5) }
 0x2cc   : > { %2389 = vmatprep.mubr.bf16.mxu1 %v938_v34  ;;  %v3357_v34 = vand.u32 (!%p2172_p5), 127, %v1395_v31 }
 0x2cd   : > { %2390 = vmatmul.mubr.bf16.gmra.mrb[20].mxu1 %v939_v33 }
 0x2ce   : > { %vm1397_vm3 = vcmp.lt.s32.totalorder (!%p2172_p5), %v3357_v34, 32 }
 0x388   : > { %v2379_v36 = vpop.f32.mrb[16].mxu0 }
 0x389   : > { %v1043_v37 = vpop.f32.mrb[17].mxu0 }
 0x38a   : > { %v1044_v38 = vadd.f32 %v2161_v35, %v1043_v37  ;;  %v2380_v39 = vpop.f32.mrb[18].mxu0  ;;  %v1366_v37 = vld [vmem:[#allocation10 + $0x18] sm:$0xff] (!%p2172_p5) }
 0x38b   : > { %v1046_v40 = vpop.f32.mrb[19].mxu0 }
 0x38c   : > { %v1047_v25 = vadd.f32 %v2161_v35, %v1046_v40  ;;  %v1143_v41 = vmul.f32 %v1044_v38, %v1044_v38  ;;  %v1365_v35 = vld [vmem:[#allocation10 + $0x10] sm:$0xff] (!%p2172_p5) }
 0x38d   : > { %v1400_v39 = vsel (!%p2172_p5), %vm1397_vm3, %v1365_v35, -inf }
 0x38e   : > { %v1122_v42 = vadd.f32 %v1047_v25, %v1044_v38  ;;  %v1144_v43 = vmul.f32 %v1047_v25, %v1047_v25  ;;  %1418 = vmax.xlane.f32.xlu1 (!%p2172_p5), %v1400_v39 }
 0x390   : > { %v1137_v44 = vrot.slane %v1122_v42, 4  ;;  %v1159_v45 = vadd.f32 %v1144_v43, %v1143_v41  ;;  %v2383_v46 = vpop.f32.mrb[20].mxu0  ;;  %v1367_v41 = vld [vmem:[#allocation10 + $0x20] sm:$0xff] (!%p2172_p5) }
 0x391   : > { %v1059_v47 = vpop.f32.mrb[21].mxu0  ;;  %v1402_v43 = vsel (!%p2172_p5), %vm1397_vm3, %v1367_v41, -inf  ;;  %v1370_v46 = vld [vmem:[#allocation10 + $0x38] sm:$0xff] (!%p2172_p5) }
 0x392   : > { %v1138_v48 = vadd.f32 %v1137_v44, %v1122_v42  ;;  %v1174_v49 = vrot.slane %v1159_v45, 4  ;;  %v2384_v50 = vpop.f32.mrb[22].mxu0  ;;  %v1368_v42 = vld [vmem:[#allocation10 + $0x28] sm:$0xff] (!%p2172_p5) }
 0x393   : > { %v1062_v51 = vpop.f32.mrb[23].mxu0  ;;  %v3372_v44 = vsel (!%p2172_p5), %vm1397_vm3, %v1368_v42, -inf  ;;  %v1372_v50 = vld [vmem:[#allocation10 + $0x48] sm:$0xff] (!%p2172_p5) }
 0x394   : > { %v1139_v52 = vrot.slane %v1138_v48, 2  ;;  %v1175_v53 = vadd.f32 %v1174_v49, %v1159_v45  ;;  %v1369_v45 = vld [vmem:[#allocation10 + $0x30] sm:$0xff] (!%p2172_p5)  ;;  %v1371_v49 = vld [vmem:[#allocation10 + $0x40] sm:$0xff] (!%p2172_p5) }
 0x395   : > { %v3377_v47 = vsel (!%p2172_p5), %vm1397_vm3, %v1369_v45, -inf  ;;  %v3387_v51 = vsel (!%p2172_p5), %vm1397_vm3, %v1371_v49, -inf }
 0x396   : > { %v1140_v54 = vadd.f32 %v1139_v52, %v1138_v48  ;;  %v1176_v55 = vrot.slane %v1175_v53, 2  ;;  %v3381_v48 = vsel (!%p2172_p5), %vm1397_vm3, %v1370_v46, -inf  ;;  %v3391_v52 = vsel (!%p2172_p5), %vm1397_vm3, %v1372_v50, -inf }
 0x398   : > { %v1141_v56 = vrot.slane %v1140_v54, 1  ;;  %v1177_v57 = vadd.f32 %v1176_v55, %v1175_v53  ;;  %v2387_v58 = vpop.f32.mrb[16].mxu1  ;;  %v1373_v53 = vld [vmem:[#allocation10 + $0x50] sm:$0xff] (!%p2172_p5) }
 0x399   : > { %v1075_v59 = vpop.f32.mrb[17].mxu1  ;;  %v3397_v55 = vsel (!%p2172_p5), %vm1397_vm3, %v1373_v53, -inf  ;;  %v1376_v58 = vld [vmem:[#allocation10 + $0x68] sm:$0xff] (!%p2172_p5) }
 0x39a   : > { %v1142_v60 = vadd.f32 %v1141_v56, %v1140_v54  ;;  %v1178_v61 = vrot.slane %v1177_v57, 1  ;;  %v2388_v62 = vpop.f32.mrb[18].mxu1  ;;  %v1374_v54 = vld [vmem:[#allocation10 + $0x58] sm:$0xff] (!%p2172_p5) }
 0x39b   : > { %v1078_v63 = vpop.f32.mrb[19].mxu1  ;;  %v3401_v56 = vsel (!%p2172_p5), %vm1397_vm3, %v1374_v54, -inf  ;;  %v1378_v62 = vld [vmem:[#allocation10 + $0x78] sm:$0xff] (!%p2172_p5) }
 0x39c   : > { %v1179_v0 = vadd.f32 %v1178_v61, %v1177_v57  ;;  %v1180_v1 = vmul.f32 0.0625, %v1142_v60  ;;  %v1375_v57 = vld [vmem:[#allocation10 + $0x60] sm:$0xff] (!%p2172_p5)  ;;  %v3411_v60 = vsel (!%p2172_p5), %vm1397_vm3, %v1376_v58, -inf  ;;  %v1377_v61 = vld [vmem:[#allocation10 + $0x70] sm:$0xff] (!%p2172_p5) }
 0x39d   : > { %v3407_v59 = vsel (!%p2172_p5), %vm1397_vm3, %v1375_v57, -inf  ;;  %v3417_v63 = vsel (!%p2172_p5), %vm1397_vm3, %v1377_v61, -inf }
 0x39e   : > { %v1181_v2 = vmul.f32 0.0625, %v1179_v0  ;;  %v1182_v3 = vmul.f32 %v1180_v1, %v1180_v1  ;;  %v1185_v4 = vsub.f32 %v1044_v38, %v1180_v1  ;;  %v1186_v5 = vsub.f32 %v1047_v25, %v1180_v1 }
 0x39f   : > { %v1401_v25 = vsel (!%p2172_p5), %vm1397_vm3, %v1366_v37, -inf  ;;  %v3421_v0 = vsel (!%p2172_p5), %vm1397_vm3, %v1378_v62, -inf }
 0x3a0   : > { %v1183_v6 = vsub.f32 %v1181_v2, %v1182_v3  ;;  %v2391_v7 = vpop.f32.mrb[20].mxu1  ;;  %1420 = vmax.xlane.f32.xlu1 (!%p2172_p5), %v1401_v25 }
 0x3a1   : > { %v1091_v8 = vpop.f32.mrb[21].mxu1 }
 0x3a2   : > { %v1184_v9 = vmax.f32 %v1183_v6, 0.0  ;;  %v2392_v10 = vpop.f32.mrb[22].mxu1 }
 0x3a3   : > { %v1094_v11 = vpop.f32.mrb[23].mxu1 }
 0x3a4   : > { %v1201_v12 = vadd.f32 1e-05, %v1184_v9  ;;  %1424 = vmax.xlane.f32.xlu1 (!%p2172_p5), %v3372_v44 }
 0x3a6   : > { %2668 = vrsqrt.f32 %v1201_v12 }
 0x3a8   : > { %1428 = vmax.xlane.f32.xlu1 (!%p2172_p5), %v3381_v48 }
 0x3ac   : > { %1432 = vmax.xlane.f32.xlu1 (!%p2172_p5), %v3391_v52 }
 0x3b0   : > { %v2669_v13 = vpop.eup %2668  ;;  %1436 = vmax.xlane.f32.xlu1 (!%p2172_p5), %v3401_v56 }
 0x3b1   : > { %v1203_v15 = vmul.f32 %v2669_v13, %v1185_v4  ;;  %v1204_v16 = vmul.f32 %v2669_v13, %v1186_v5 }
 0x3b3   : > { %v1223_v18 = vmul.f32 %v2170_v14, %v1203_v15  ;;  %v1224_v19 = vmul.f32 %v2170_v14, %v1204_v16 }
 0x3b4   : > { %1440 = vmax.xlane.f32.xlu1 (!%p2172_p5), %v3411_v60 }
 0x3b5   : > { %v1243_v21 = vadd.f32 %v2171_v17, %v1223_v18  ;;  %v1244_v22 = vadd.f32 %v2171_v17, %v1224_v19  ;;  %1362 = sbr.rel (%p2172_p5) target bundleno = 1861 (0x745), region = 84 }
 0x3b7   : > { %vm1260_vm1 = vcmp.gt.f32.partialorder %v1243_v21, 0.0  ;;  %vm1261_vm2 = vcmp.gt.f32.partialorder %v1244_v22, 0.0  ;;  %v1276_v23 = vmul.f32 0.01, %v1243_v21  ;;  %v1277_v24 = vmul.f32 0.01, %v1244_v22 }
 0x3b8   : > { %1444 = vmax.xlane.f32.xlu1 (!%p2172_p5), %v3421_v0 }
 0x3b9   : > { %v1292_v26 = vsel %vm1260_vm1, %v1243_v21, %v1276_v23  ;;  %v1293_v27 = vsel %vm1261_vm2, %v1244_v22, %v1277_v24 }
 0x3ba   : > { %v1311_v28 = vsel %vm1310_vm0, %v1292_v26, %v1243_v21  ;;  %v1312_v29 = vsel %vm1310_vm0, %v1293_v27, %v1244_v22 }
 0x3bb   : > { %1343 = vst [vmem:[#allocation2] sm:$0xff] %v1311_v28  ;;  %1344 = vst [vmem:[#allocation2 + $0x8] sm:$0xff] %v1312_v29  ;;  %v1379_v33 = vadd.f32 (!%p2172_p5), %v1363_v30, %v1311_v28  ;;  %v1380_v36 = vadd.f32 (!%p2172_p5), %v1364_v32, %v1312_v29 }
 0x3bd   : > { %v1398_v38 = vsel %vm1397_vm3, %v1379_v33, -inf  ;;  %v1399_v40 = vsel %vm1397_vm3, %v1380_v36, -inf }
 0x3be   : > { %1414 = vmax.xlane.f32.xlu0 %v1398_v38 }
 0x3c2   : > { %1416 = vmax.xlane.f32.xlu0 %v1399_v40 }
 0x3c6   : > { %1422 = vmax.xlane.f32.xlu0 %v1402_v43 }
 0x3ca   : > { %1426 = vmax.xlane.f32.xlu0 %v3377_v47 }
 0x3ce   : > { %1430 = vmax.xlane.f32.xlu0 %v3387_v51 }
 0x3d2   : > { %1434 = vmax.xlane.f32.xlu0 %v3397_v55 }
 0x3d6   : > { %1438 = vmax.xlane.f32.xlu0 %v3407_v59 }
 0x3da   : > { %1442 = vmax.xlane.f32.xlu0 %v3417_v63 }
 0x41b   : > { %v1419_v2 = vpop.xlane.xlu1 %1418 }
 0x41c   : > { %vm1448_vm5 = vcmp.ge.f32.partialorder %v1400_v39, %v1419_v2 }
 0x41d   : > { %vm1464_vm7 = vmand %vm1448_vm5, %vm1397_vm3 }
 0x41e   : > { %v3433_v4 = vsel %vm1464_vm7, %v3357_v34, 128 }
 0x41f   : > { %v1523_v8 = vshra.s32 %v3433_v4, 16 }
 0x421   : > { %v3450_v14 = vcvt.s32.f32 %v1523_v8  ;;  %v1522_v8 = vand.u32 65535, %v3433_v4 }
 0x42d   : > { %v1421_v6 = vpop.xlane.xlu1 %1420 }
 0x42e   : > { %vm1449_vm9 = vcmp.ge.f32.partialorder %v1401_v25, %v1421_v6 }
 0x42f   : > { %vm1465_vm11 = vmand %vm1449_vm9, %vm1397_vm3 }
 0x430   : > { %v3447_v11 = vsel %vm1465_vm11, %v3357_v34, 128 }
 0x431   : > { %v1425_v13 = vpop.xlane.xlu1 %1424  ;;  %v1537_v16 = vshra.s32 %v3447_v11, 16 }
 0x432   : > { %vm1451_vm13 = vcmp.ge.f32.partialorder %v3372_v44, %v1425_v13 }
 0x433   : > { %vm1467_vm15 = vmand %vm1451_vm13, %vm1397_vm3  ;;  %v3469_v22 = vcvt.s32.f32 %v1537_v16 }
 0x434   : > { %v3465_v19 = vsel %vm1467_vm15, %v3357_v34, 128 }
 0x435   : > { %v1429_v21 = vpop.xlane.xlu1 %1428  ;;  %v1565_v24 = vshra.s32 %v3465_v19, 16 }
 0x436   : > { %vm1453_vm1 = vcmp.ge.f32.partialorder %v3381_v48, %v1429_v21 }
 0x437   : > { %v3489_v31 = vcvt.s32.f32 %v1565_v24 }
 0x439   : > { %v1433_v30 = vpop.xlane.xlu1 %1432 }
 0x43d   : > { %v1437_v39 = vpop.xlane.xlu1 %1436 }
 0x441   : > { %v1441_v46 = vpop.xlane.xlu1 %1440 }
 0x445   : > { %v1445_v54 = vpop.xlane.xlu1 %1444 }
 0x44b   : > { %v1415_v1 = vpop.xlane.xlu0 %1414 }
 0x44c   : > { %vm1446_vm4 = vcmp.ge.f32.partialorder %v1398_v38, %v1415_v1 }
 0x44d   : > { %vm1462_vm6 = vmand %vm1446_vm4, %vm1397_vm3 }
 0x44e   : > { %v3428_v3 = vsel %vm1462_vm6, %v3357_v34, 128  ;;  %vm1469_vm4 = vmand %vm1453_vm1, %vm1397_vm3  ;;  %vm1455_vm6 = vcmp.ge.f32.partialorder %v3391_v52, %v1433_v30 }
 0x44f   : > { %v1417_v5 = vpop.xlane.xlu0 %1416  ;;  %v1495_v7 = vshra.s32 %v3428_v3, 16  ;;  %v3485_v28 = vsel %vm1469_vm4, %v3357_v34, 128  ;;  %v1494_v2 = vand.u32 65535, %v3428_v3  ;;  %v1536_v3 = vand.u32 65535, %v3447_v11 }
 0x450   : > { %vm1447_vm8 = vcmp.ge.f32.partialorder %v1399_v40, %v1417_v5  ;;  %v1593_v33 = vshra.s32 %v3485_v28, 16  ;;  %v1564_v11 = vand.u32 65535, %v3465_v19  ;;  %v1592_v19 = vand.u32 65535, %v3485_v28 }
 0x451   : > { %vm1463_vm10 = vmand %vm1447_vm8, %vm1397_vm3  ;;  %v3439_v9 = vcvt.s32.f32 %v1495_v7  ;;  %v1496_v6 = vcvt.s32.f32 %v1494_v2  ;;  %v1538_v24 = vcvt.s32.f32 %v1536_v3 }
 0x452   : > { %v3442_v10 = vsel %vm1463_vm10, %v3357_v34, 128  ;;  %vm1471_vm8 = vmand %vm1455_vm6, %vm1397_vm3  ;;  %v3509_v40 = vcvt.s32.f32 %v1593_v33  ;;  %vm1457_vm10 = vcmp.ge.f32.partialorder %v3401_v56, %v1437_v39  ;;  %v1566_v33 = vcvt.s32.f32 %v1564_v11  ;;  %v1861_v11 = vld [vmem:[#allocation11 + $0x38] sm:$0xff] }
 0x453   : > { %1498 = vmin.xlane.f32.xlu0 %v3439_v9  ;;  %v1423_v12 = vpop.xlane.xlu0 %1422  ;;  %v1509_v15 = vshra.s32 %v3442_v10, 16  ;;  %v3505_v37 = vsel %vm1471_vm8, %v3357_v34, 128  ;;  %v1508_v7 = vand.u32 65535, %v3442_v10 }
 0x454   : > { %vm1450_vm12 = vcmp.ge.f32.partialorder %v1402_v43, %v1423_v12  ;;  %v1621_v41 = vshra.s32 %v3505_v37, 16  ;;  %v1620_v28 = vand.u32 65535, %v3505_v37 }
 0x455   : > { %vm1466_vm14 = vmand %vm1450_vm12, %vm1397_vm3  ;;  %v3457_v17 = vcvt.s32.f32 %v1509_v15  ;;  %v1510_v16 = vcvt.s32.f32 %v1508_v7 }
 0x456   : > { %v3460_v18 = vsel %vm1466_vm14, %v3357_v34, 128  ;;  %vm1473_vm12 = vmand %vm1457_vm10, %vm1397_vm3  ;;  %vm1459_vm14 = vcmp.ge.f32.partialorder %v3411_v60, %v1441_v46 }
 0x457   : > { %1526 = vmin.xlane.f32.xlu0 %v3450_v14  ;;  %1512 = vmin.xlane.f32.xlu1 %v3457_v17  ;;  %v1427_v20 = vpop.xlane.xlu0 %1426  ;;  %v1551_v23 = vshra.s32 %v3460_v18, 16  ;;  %v3525_v44 = vsel %vm1473_vm12, %v3357_v34, 128  ;;  %v1550_v21 = vand.u32 65535, %v3460_v18 }
 0x458   : > { %vm1452_vm0 = vcmp.ge.f32.partialorder %v3377_v47, %v1427_v20  ;;  %v3529_v47 = vcvt.s32.f32 %v1621_v41  ;;  %v1649_v49 = vshra.s32 %v3525_v44, 16  ;;  %v1524_v20 = vcvt.s32.f32 %v1522_v8 }
 0x459   : > { %vm1468_vm2 = vmand %vm1452_vm0, %vm1397_vm3  ;;  %v3477_v26 = vcvt.s32.f32 %v1551_v23  ;;  %v1594_v41 = vcvt.s32.f32 %v1592_v19  ;;  %v1648_v37 = vand.u32 65535, %v3525_v44  ;;  %v2991_v8 = vmov 0.0|0.0   ;;  %v1865_v19 = vld [vmem:[#allocation11 + $0x58] sm:$0xff] }
 0x45a   : > { %v3480_v27 = vsel %vm1468_vm2, %v3357_v34, 128  ;;  %vm1475_vm0 = vmand %vm1459_vm14, %vm1397_vm3  ;;  %vm1461_vm2 = vcmp.ge.f32.partialorder %v3421_v0, %v1445_v54  ;;  %2463 = vmatprep.subr.bf16.mxu0 %v2991_v8  ;;  %2487 = vmatprep.subr.bf16.mxu1 %v2991_v8 }
 0x45b   : > { %1540 = vmin.xlane.f32.xlu1 %v3469_v22  ;;  %1554 = vmin.xlane.f32.xlu0 %v3477_v26  ;;  %v1431_v29 = vpop.xlane.xlu0 %1430  ;;  %v1579_v32 = vshra.s32 %v3480_v27, 16  ;;  %v3545_v52 = vsel %vm1475_vm0, %v3357_v34, 128  ;;  %v1578_v18 = vand.u32 65535, %v3480_v27 }
 0x45c   : > { %vm1454_vm5 = vcmp.ge.f32.partialorder %v3387_v51, %v1431_v29  ;;  %v1677_v57 = vshra.s32 %v3545_v52, 16  ;;  %v1552_v29 = vcvt.s32.f32 %v1550_v21  ;;  %v1676_v44 = vand.u32 65535, %v3545_v52  ;;  %v1857_v21 = vld [vmem:[#allocation11 + $0x18] sm:$0xff] }
 0x45d   : > { %vm1470_vm7 = vmand %vm1454_vm5, %vm1397_vm3  ;;  %v3497_v35 = vcvt.s32.f32 %v1579_v32 }
 0x45e   : > { %v3500_v36 = vsel %vm1470_vm7, %v3357_v34, 128  ;;  %vm1477_vm5 = vmand %vm1461_vm2, %vm1397_vm3  ;;  %v3569_v61 = vcvt.s32.f32 %v1677_v57  ;;  %v1650_v57 = vcvt.s32.f32 %v1648_v37 }
 0x45f   : > { %1568 = vmin.xlane.f32.xlu1 %v3489_v31  ;;  %1582 = vmin.xlane.f32.xlu0 %v3497_v35  ;;  %v1435_v38 = vpop.xlane.xlu0 %1434  ;;  %v1607_v25 = vshra.s32 %v3500_v36, 16  ;;  %v3565_v60 = vsel %vm1477_vm5, %v3357_v34, 128  ;;  %v1606_v27 = vand.u32 65535, %v3500_v36 }
 0x460   : > { %vm1456_vm9 = vcmp.ge.f32.partialorder %v3397_v55, %v1435_v38  ;;  %v3549_v55 = vcvt.s32.f32 %v1649_v49  ;;  %v1580_v38 = vcvt.s32.f32 %v1578_v18  ;;  %v1622_v49 = vcvt.s32.f32 %v1620_v28  ;;  %v1869_v28 = vld [vmem:[#allocation11 + $0x78] sm:$0xff] }
 0x461   : > { %vm1472_vm11 = vmand %vm1456_vm9, %vm1397_vm3  ;;  %v3517_v42 = vcvt.s32.f32 %v1607_v25  ;;  %v1704_v52 = vand.u32 65535, %v3565_v60 }
 0x462   : > { %v3520_v43 = vsel %vm1472_vm11, %v3357_v34, 128 }
 0x463   : > { %1596 = vmin.xlane.f32.xlu1 %v3509_v40  ;;  %1610 = vmin.xlane.f32.xlu0 %v3517_v42  ;;  %v1439_v45 = vpop.xlane.xlu0 %1438  ;;  %v1635_v48 = vshra.s32 %v3520_v43, 16  ;;  %v1634_v36 = vand.u32 65535, %v3520_v43 }
 0x464   : > { %vm1458_vm13 = vcmp.ge.f32.partialorder %v3407_v59, %v1439_v45  ;;  %v1608_v45 = vcvt.s32.f32 %v1606_v27 }
 0x465   : > { %vm1474_vm15 = vmand %vm1458_vm13, %vm1397_vm3  ;;  %v3537_v50 = vcvt.s32.f32 %v1635_v48 }
 0x466   : > { %v3540_v51 = vsel %vm1474_vm15, %v3357_v34, 128 }
 0x467   : > { %1624 = vmin.xlane.f32.xlu1 %v3529_v47  ;;  %1638 = vmin.xlane.f32.xlu0 %v3537_v50  ;;  %v1443_v53 = vpop.xlane.xlu0 %1442  ;;  %v1663_v56 = vshra.s32 %v3540_v51, 16  ;;  %v1662_v43 = vand.u32 65535, %v3540_v51 }
 0x468   : > { %vm1460_vm1 = vcmp.ge.f32.partialorder %v3417_v63, %v1443_v53  ;;  %v1705_v63 = vshra.s32 %v3565_v60, 16  ;;  %v1636_v53 = vcvt.s32.f32 %v1634_v36 }
 0x469   : > { %vm1476_vm4 = vmand %vm1460_vm1, %vm1397_vm3  ;;  %v3557_v58 = vcvt.s32.f32 %v1663_v56 }
 0x46a   : > { %v3560_v59 = vsel %vm1476_vm4, %v3357_v34, 128  ;;  %v3577_v1 = vcvt.s32.f32 %v1705_v63 }
 0x46b   : > { %1652 = vmin.xlane.f32.xlu1 %v3549_v55  ;;  %1666 = vmin.xlane.f32.xlu0 %v3557_v58  ;;  %v1691_v62 = vshra.s32 %v3560_v59, 16  ;;  %v1690_v51 = vand.u32 65535, %v3560_v59 }
 0x46d   : > { %v3573_v0 = vcvt.s32.f32 %v1691_v62  ;;  %v1664_v62 = vcvt.s32.f32 %v1662_v43  ;;  %v1692_v7 = vcvt.s32.f32 %v1690_v51 }
 0x46f   : > { %1680 = vmin.xlane.f32.xlu1 %v3569_v61  ;;  %1694 = vmin.xlane.f32.xlu0 %v3573_v0 }
 0x473   : > { %1708 = vmin.xlane.f32.xlu1 %v3577_v1 }
 0x4e0   : > { %v3581_v5 = vpop.xlane.xlu0 %1498 }
 0x4e1   : > { %vm1500_vm3 = vcmp.eq.f32.partialorder %v3439_v9, %v3581_v5 }
 0x4e2   : > { %v1501_v12 = vsel %vm1500_vm3, %v1496_v6, inf  ;;  %v1678_v6 = vcvt.s32.f32 %v1676_v44  ;;  %vm2992_vm3 = vmmov 0  }
 0x4e3   : > { %1502 = vmin.xlane.f32.xlu0 %v1501_v12  ;;  %v1706_v12 = vcvt.s32.f32 %v1704_v52 }
 0x4e4   : > { %v3587_v13 = vpop.xlane.xlu1 %1512  ;;  %v3589_v15 = vpop.xlane.xlu0 %1526 }
 0x4e5   : > { %vm1514_vm6 = vcmp.eq.f32.partialorder %v3457_v17, %v3587_v13  ;;  %vm1528_vm7 = vcmp.eq.f32.partialorder %v3450_v14, %v3589_v15  ;;  %v1533_v37 = vcvt.f32.s32 %v3589_v15 }
 0x4e6   : > { %v1515_v4 = vsel %vm1514_vm6, %v1510_v16, inf  ;;  %v1529_v9 = vsel %vm1528_vm7, %v1524_v20, inf  ;;  %v2993_v16 = vmov 0.0   ;;  %v1856_v20 = vld [vmem:[#allocation11 + $0x10] sm:$0xff] }
 0x4e7   : > { %1516 = vmin.xlane.f32.xlu1 %v1515_v4  ;;  %1530 = vmin.xlane.f32.xlu0 %v1529_v9  ;;  %v2491_v4 = vpack.c.bf16 %v1857_v21, %v1856_v20  ;;  %v1858_v9 = vld [vmem:[#allocation11 + $0x20] sm:$0xff] }
 0x4e8   : > { %v3597_v10 = vpop.xlane.xlu1 %1540  ;;  %v3599_v23 = vpop.xlane.xlu0 %1554  ;;  %2425 = vmatprep.mubr.msk.f32.mxu0 %vm2992_vm3, %v2993_v16  ;;  %2460 = vmatprep.mubr.msk.f32.mxu1 %vm2992_vm3, %v2993_v16 }
 0x4e9   : > { %vm1542_vm8 = vcmp.eq.f32.partialorder %v3469_v22, %v3597_v10  ;;  %vm1556_vm9 = vcmp.eq.f32.partialorder %v3477_v26, %v3599_v23 }
 0x4ea   : > { %v1543_v14 = vsel %vm1542_vm8, %v1538_v24, inf  ;;  %v1557_v17 = vsel %vm1556_vm9, %v1552_v29, inf  ;;  %v1859_v24 = vld [vmem:[#allocation11 + $0x28] sm:$0xff]  ;;  %v1860_v29 = vld [vmem:[#allocation11 + $0x30] sm:$0xff] }
 0x4eb   : > { %1544 = vmin.xlane.f32.xlu1 %v1543_v14  ;;  %1558 = vmin.xlane.f32.xlu0 %v1557_v17  ;;  %v2497_v18 = vpack.c.bf16 %v1861_v11, %v1860_v29  ;;  %v1862_v14 = vld [vmem:[#allocation11 + $0x40] sm:$0xff]  ;;  %v1863_v17 = vld [vmem:[#allocation11 + $0x48] sm:$0xff] }
 0x4ec   : > { %v3607_v30 = vpop.xlane.xlu1 %1568  ;;  %v3609_v32 = vpop.xlane.xlu0 %1582 }
 0x4ed   : > { %vm1570_vm10 = vcmp.eq.f32.partialorder %v3489_v31, %v3607_v30  ;;  %vm1584_vm11 = vcmp.eq.f32.partialorder %v3497_v35, %v3609_v32  ;;  %v1575_v52 = vcvt.f32.s32 %v3607_v30 }
 0x4ee   : > { %v1571_v22 = vsel %vm1570_vm10, %v1566_v33, inf  ;;  %v1585_v26 = vsel %vm1584_vm11, %v1580_v38, inf  ;;  %v2500_v33 = vpack.c.bf16 %v1863_v17, %v1862_v14  ;;  %v1864_v38 = vld [vmem:[#allocation11 + $0x50] sm:$0xff] }
 0x4ef   : > { %1572 = vmin.xlane.f32.xlu1 %v1571_v22  ;;  %1586 = vmin.xlane.f32.xlu0 %v1585_v26  ;;  %v2503_v27 = vpack.c.bf16 %v1865_v19, %v1864_v38  ;;  %v1866_v22 = vld [vmem:[#allocation11 + $0x60] sm:$0xff]  ;;  %v1867_v26 = vld [vmem:[#allocation11 + $0x68] sm:$0xff] }
 0x4f0   : > { %v3617_v39 = vpop.xlane.xlu1 %1596  ;;  %v3619_v25 = vpop.xlane.xlu0 %1610 }
 0x4f1   : > { %vm1598_vm12 = vcmp.eq.f32.partialorder %v3509_v40, %v3617_v39  ;;  %vm1612_vm13 = vcmp.eq.f32.partialorder %v3517_v42, %v3619_v25 }
 0x4f2   : > { %v1599_v31 = vsel %vm1598_vm12, %v1594_v41, inf  ;;  %v1613_v35 = vsel %vm1612_vm13, %v1608_v45, inf  ;;  %v2506_v41 = vpack.c.bf16 %v1867_v26, %v1866_v22  ;;  %v1868_v45 = vld [vmem:[#allocation11 + $0x70] sm:$0xff] }
 0x4f3   : > { %1600 = vmin.xlane.f32.xlu1 %v1599_v31  ;;  %1614 = vmin.xlane.f32.xlu0 %v1613_v35  ;;  %v2509_v36 = vpack.c.bf16 %v1869_v28, %v1868_v45  ;;  %v1505_v31 = vcvt.f32.s32 %v3581_v5  ;;  %v1519_v35 = vcvt.f32.s32 %v3587_v13 }
 0x4f4   : > { %v3627_v46 = vpop.xlane.xlu1 %1624  ;;  %v3629_v48 = vpop.xlane.xlu0 %1638 }
 0x4f5   : > { %vm1626_vm14 = vcmp.eq.f32.partialorder %v3529_v47, %v3627_v46  ;;  %vm1640_vm15 = vcmp.eq.f32.partialorder %v3537_v50, %v3629_v48  ;;  %v1631_v38 = vcvt.f32.s32 %v3627_v46  ;;  %v1645_v19 = vcvt.f32.s32 %v3629_v48 }
 0x4f6   : > { %v1627_v40 = vsel %vm1626_vm14, %v1622_v49, inf  ;;  %v1641_v42 = vsel %vm1640_vm15, %v1636_v53, inf  ;;  %v1506_v53 = vshll.u32 %v1505_v31, 16 }
 0x4f7   : > { %1628 = vmin.xlane.f32.xlu1 %v1627_v40  ;;  %1642 = vmin.xlane.f32.xlu0 %v1641_v42  ;;  %v1547_v40 = vcvt.f32.s32 %v3597_v10  ;;  %v1646_v31 = vshll.u32 %v1645_v19, 16 }
 0x4f8   : > { %v3637_v54 = vpop.xlane.xlu1 %1652  ;;  %v3639_v56 = vpop.xlane.xlu0 %1666 }
 0x4f9   : > { %vm1654_vm0 = vcmp.eq.f32.partialorder %v3549_v55, %v3637_v54  ;;  %vm1668_vm1 = vcmp.eq.f32.partialorder %v3557_v58, %v3639_v56  ;;  %v1548_v13 = vshll.u32 %v1547_v40, 16 }
 0x4fa   : > { %v1655_v47 = vsel %vm1654_vm0, %v1650_v57, inf  ;;  %v1669_v50 = vsel %vm1668_vm1, %v1664_v62, inf  ;;  %v1520_v57 = vshll.u32 %v1519_v35, 16  ;;  %v1561_v62 = vcvt.f32.s32 %v3599_v23 }
 0x4fb   : > { %1656 = vmin.xlane.f32.xlu1 %v1655_v47  ;;  %1670 = vmin.xlane.f32.xlu0 %v1669_v50  ;;  %v1534_v47 = vshll.u32 %v1533_v37, 16  ;;  %v1589_v23 = vcvt.f32.s32 %v3609_v32  ;;  %v2994_v32 = vmov 1.0|1.0   ;;  %v1659_v35 = vcvt.f32.s32 %v3637_v54 }
 0x4fc   : > { %v3647_v63 = vpop.xlane.xlu1 %1680  ;;  %v3649_v2 = vpop.xlane.xlu0 %1694  ;;  %v1562_v10 = vshll.u32 %v1561_v62, 16 }
 0x4fd   : > { %vm1682_vm2 = vcmp.eq.f32.partialorder %v3569_v61, %v3647_v63  ;;  %vm1696_vm4 = vcmp.eq.f32.partialorder %v3573_v0, %v3649_v2  ;;  %v1854_v61 = vld [vmem:[#allocation11] sm:$0xff]  ;;  %v1855_v0 = vld [vmem:[#allocation11 + $0x8] sm:$0xff]  ;;  %v1590_v21 = vshll.u32 %v1589_v23, 16  ;;  %v1660_v62 = vshll.u32 %v1659_v35, 16 }
 0x4fe   : > { %v1683_v55 = vsel %vm1682_vm2, %v1678_v6, inf  ;;  %v1697_v58 = vsel %vm1696_vm4, %v1692_v7, inf  ;;  %v2488_v3 = vpack.c.bf16 %v1855_v0, %v1854_v61 }
 0x4ff   : > { %1684 = vmin.xlane.f32.xlu1 %v1683_v55  ;;  %1698 = vmin.xlane.f32.xlu0 %v1697_v58 }
 0x500   : > { %v3658_v59 = vpop.xlane.xlu1 %1708  ;;  %2489 = vmatpush3.bf16.msra.mxu1 %v2488_v3  ;;  %v1576_v3 = vshll.u32 %v1575_v52, 16 }
 0x501   : > { %vm1710_vm5 = vcmp.eq.f32.partialorder %v3577_v1, %v3658_v59  ;;  %2490 = vmatprep.subr.bf16.mxu1 %v2991_v8  ;;  %v2494_v1 = vpack.c.bf16 %v1859_v24, %v1858_v9  ;;  %v1617_v9 = vcvt.f32.s32 %v3619_v25  ;;  %v1715_v23 = vcvt.f32.s32 %v3658_v59 }
 0x502   : > { %v1711_v60 = vsel %vm1710_vm5, %v1706_v12, inf }
 0x503   : > { %1712 = vmin.xlane.f32.xlu1 %v1711_v60 }
 0x504   : > { %2492 = vmatpush3.bf16.msra.mxu1 %v2491_v4  ;;  %v1603_v4 = vcvt.f32.s32 %v3617_v39 }
 0x505   : > { %2493 = vmatprep.subr.bf16.mxu1 %v2991_v8 }
 0x506   : > { %v1604_v17 = vshll.u32 %v1603_v4, 16 }
 0x508   : > { %2495 = vmatpush3.bf16.msra.mxu1 %v2494_v1 }
 0x509   : > { %2496 = vmatprep.subr.bf16.mxu1 %v2991_v8 }
 0x50c   : > { %2498 = vmatpush3.bf16.msra.mxu1 %v2497_v18 }
 0x50d   : > { %2499 = vmatprep.subr.bf16.mxu1 %v2991_v8 }
 0x510   : > { %2501 = vmatpush3.bf16.msra.mxu1 %v2500_v33  ;;  %v1618_v33 = vshll.u32 %v1617_v9, 16 }
 0x511   : > { %2502 = vmatprep.subr.bf16.mxu1 %v2991_v8 }
 0x514   : > { %2504 = vmatpush3.bf16.msra.mxu1 %v2503_v27 }
 0x515   : > { %2505 = vmatprep.subr.bf16.mxu1 %v2991_v8 }
 0x518   : > { %2507 = vmatpush3.bf16.msra.mxu1 %v2506_v41 }
 0x519   : > { %2508 = vmatprep.subr.bf16.mxu1 %v2991_v8 }
 0x51c   : > { %2510 = vmatpush3.bf16.msra.mxu1 %v2509_v36  ;;  %v1632_v36 = vshll.u32 %v1631_v38, 16 }
 0x570   : > { %v1503_v49 = vpop.xlane.xlu0 %1502 }
 0x571   : > { %v1504_v43 = vcvt.f32.s32 %v1503_v49  ;;  %v1673_v49 = vcvt.f32.s32 %v3639_v56 }
 0x573   : > { %v1507_v42 = vadd.s32 %v1506_v53, %v1504_v43 }
 0x574   : > { %v1517_v44 = vpop.xlane.xlu1 %1516  ;;  %v1531_v51 = vpop.xlane.xlu0 %1530 }
 0x575   : > { %v1518_v50 = vcvt.f32.s32 %v1517_v44  ;;  %v1532_v6 = vcvt.f32.s32 %v1531_v51  ;;  %vm1718_vm6 = vcmp.eq.s32.totalorder %v3357_v34, %v1507_v42  ;;  %v1674_v44 = vshll.u32 %v1673_v49, 16 }
 0x576   : > { %v2173_v5 = vsel %vm1718_vm6, 1.0, %v2993_v16  ;;  %v1687_v51 = vcvt.f32.s32 %v3647_v63 }
 0x577   : > { %v1521_v15 = vadd.s32 %v1520_v57, %v1518_v50  ;;  %v1535_v7 = vadd.s32 %v1534_v47, %v1532_v6  ;;  %1766 = vst [vmem:[#allocation14] sm:$0xff] %v2173_v5  ;;  %v1701_v47 = vcvt.f32.s32 %v3649_v2 }
 0x578   : > { %v1545_v55 = vpop.xlane.xlu1 %1544  ;;  %v1559_v58 = vpop.xlane.xlu0 %1558 }
 0x579   : > { %v1546_v12 = vcvt.f32.s32 %v1545_v55  ;;  %v1560_v60 = vcvt.f32.s32 %v1559_v58  ;;  %vm1719_vm7 = vcmp.eq.s32.totalorder %v3357_v34, %v1521_v15  ;;  %vm1720_vm8 = vcmp.eq.s32.totalorder %v3357_v34, %v1535_v7 }
 0x57a   : > { %v2174_v61 = vsel %vm1719_vm7, 1.0, %v2993_v16  ;;  %vm2464_vm9 = vmpackc.low %vm1719_vm7, %vm1718_vm6  ;;  %v2175_v0 = vsel %vm1720_vm8, 1.0, %v2993_v16  ;;  %v1702_v52 = vshll.u32 %v1701_v47, 16 }
 0x57b   : > { %v1549_v30 = vadd.s32 %v1548_v13, %v1546_v12  ;;  %v1563_v20 = vadd.s32 %v1562_v10, %v1560_v60  ;;  %1767 = vst [vmem:[#allocation14 + $0x8] sm:$0xff] %v2174_v61  ;;  %2465 = vmatpush3.bf16.msk.msra.mxu0 %vm2464_vm9, %v2994_v32  ;;  %1768 = vst [vmem:[#allocation14 + $0x10] sm:$0xff] %v2175_v0  ;;  %v1688_v10 = vshll.u32 %v1687_v51, 16 }
 0x57c   : > { %v1573_v24 = vpop.xlane.xlu1 %1572  ;;  %v1587_v1 = vpop.xlane.xlu0 %1586  ;;  %2466 = vmatprep.subr.bf16.mxu0 %v2991_v8 }
 0x57d   : > { %v1574_v29 = vcvt.f32.s32 %v1573_v24  ;;  %v1588_v11 = vcvt.f32.s32 %v1587_v1  ;;  %vm1721_vm10 = vcmp.eq.s32.totalorder %v3357_v34, %v1549_v30  ;;  %vm1722_vm11 = vcmp.eq.s32.totalorder %v3357_v34, %v1563_v20 }
 0x57e   : > { %v2176_v18 = vsel %vm1721_vm10, 1.0, %v2993_v16  ;;  %vm2467_vm12 = vmpackc.low %vm1721_vm10, %vm1720_vm8  ;;  %v2177_v39 = vsel %vm1722_vm11, 1.0, %v2993_v16 }
 0x57f   : > { %v1577_v25 = vadd.s32 %v1576_v3, %v1574_v29  ;;  %v1591_v14 = vadd.s32 %v1590_v21, %v1588_v11  ;;  %1769 = vst [vmem:[#allocation14 + $0x18] sm:$0xff] %v2176_v18  ;;  %2468 = vmatpush3.bf16.msk.msra.mxu0 %vm2467_vm12, %v2994_v32  ;;  %1770 = vst [vmem:[#allocation14 + $0x20] sm:$0xff] %v2177_v39  ;;  %v1716_v3 = vshll.u32 %v1715_v23, 16  ;;  %v1782_v29 = vld [vmem:[%s3856_s5] sm:$0x3] }
 0x580   : > { %v1601_v27 = vpop.xlane.xlu1 %1600  ;;  %v1615_v22 = vpop.xlane.xlu0 %1614  ;;  %2469 = vmatprep.subr.bf16.mxu0 %v2991_v8 }
 0x581   : > { %v1602_v26 = vcvt.f32.s32 %v1601_v27  ;;  %v1616_v41 = vcvt.f32.s32 %v1615_v22  ;;  %vm1723_vm13 = vcmp.eq.s32.totalorder %v3357_v34, %v1577_v25  ;;  %vm1724_vm14 = vcmp.eq.s32.totalorder %v3357_v34, %v1591_v14 }
 0x582   : > { %v2178_v45 = vsel %vm1723_vm13, 1.0, %v2993_v16  ;;  %vm2470_vm15 = vmpackc.low %vm1723_vm13, %vm1722_vm11  ;;  %v2179_v46 = vsel %vm1724_vm14, 1.0, %v2993_v16 }
 0x583   : > { %v1605_v48 = vadd.s32 %v1604_v17, %v1602_v26  ;;  %v1619_v28 = vadd.s32 %v1618_v33, %v1616_v41  ;;  %1771 = vst [vmem:[#allocation14 + $0x28] sm:$0xff] %v2178_v45  ;;  %2471 = vmatpush3.bf16.msk.msra.mxu0 %vm2470_vm15, %v2994_v32  ;;  %1772 = vst [vmem:[#allocation14 + $0x30] sm:$0xff] %v2179_v46 }
 0x584   : > { %v1629_v53 = vpop.xlane.xlu1 %1628  ;;  %v1643_v37 = vpop.xlane.xlu0 %1642  ;;  %2472 = vmatprep.subr.bf16.mxu0 %v2991_v8 }
 0x585   : > { %v1630_v43 = vcvt.f32.s32 %v1629_v53  ;;  %v1644_v40 = vcvt.f32.s32 %v1643_v37  ;;  %vm1725_vm0 = vcmp.eq.s32.totalorder %v3357_v34, %v1605_v48  ;;  %vm1726_vm1 = vcmp.eq.s32.totalorder %v3357_v34, %v1619_v28 }
 0x586   : > { %v2180_v42 = vsel %vm1725_vm0, 1.0, %v2993_v16  ;;  %vm2473_vm2 = vmpackc.low %vm1725_vm0, %vm1724_vm14  ;;  %v2181_v54 = vsel %vm1726_vm1, 1.0, %v2993_v16 }
 0x587   : > { %v1633_v56 = vadd.s32 %v1632_v36, %v1630_v43  ;;  %v1647_v57 = vadd.s32 %v1646_v31, %v1644_v40  ;;  %1773 = vst [vmem:[#allocation14 + $0x38] sm:$0xff] %v2180_v42  ;;  %2474 = vmatpush3.bf16.msk.msra.mxu0 %vm2473_vm2, %v2994_v32  ;;  %1774 = vst [vmem:[#allocation14 + $0x40] sm:$0xff] %v2181_v54 }
 0x588   : > { %v1657_v50 = vpop.xlane.xlu1 %1656  ;;  %v1671_v6 = vpop.xlane.xlu0 %1670  ;;  %2475 = vmatprep.subr.bf16.mxu0 %v2991_v8 }
 0x589   : > { %v1658_v5 = vcvt.f32.s32 %v1657_v50  ;;  %v1672_v13 = vcvt.f32.s32 %v1671_v6  ;;  %vm1727_vm4 = vcmp.eq.s32.totalorder %v3357_v34, %v1633_v56  ;;  %vm1728_vm5 = vcmp.eq.s32.totalorder %v3357_v34, %v1647_v57 }
 0x58a   : > { %v2182_v15 = vsel %vm1727_vm4, 1.0, %v2993_v16  ;;  %vm2476_vm3 = vmpackc.low %vm1727_vm4, %vm1726_vm1  ;;  %v2183_v63 = vsel %vm1728_vm5, 1.0, %v2993_v16 }
 0x58b   : > { %v1661_v2 = vadd.s32 %v1660_v62, %v1658_v5  ;;  %v1675_v7 = vadd.s32 %v1674_v44, %v1672_v13  ;;  %1775 = vst [vmem:[#allocation14 + $0x48] sm:$0xff] %v2182_v15  ;;  %2477 = vmatpush3.bf16.msk.msra.mxu0 %vm2476_vm3, %v2994_v32  ;;  %1776 = vst [vmem:[#allocation14 + $0x50] sm:$0xff] %v2183_v63 }
 0x58c   : > { %v1685_v55 = vpop.xlane.xlu1 %1684  ;;  %v1699_v58 = vpop.xlane.xlu0 %1698  ;;  %2478 = vmatprep.subr.bf16.mxu0 %v2991_v8 }
 0x58d   : > { %v1686_v12 = vcvt.f32.s32 %v1685_v55  ;;  %v1700_v60 = vcvt.f32.s32 %v1699_v58  ;;  %vm1729_vm6 = vcmp.eq.s32.totalorder %v3357_v34, %v1661_v2  ;;  %vm1730_vm7 = vcmp.eq.s32.totalorder %v3357_v34, %v1675_v7 }
 0x58e   : > { %v2184_v61 = vsel %vm1729_vm6, 1.0, %v2993_v16  ;;  %vm2479_vm8 = vmpackc.low %vm1729_vm6, %vm1728_vm5  ;;  %v2185_v0 = vsel %vm1730_vm7, 1.0, %v2993_v16 }
 0x58f   : > { %v1689_v59 = vadd.s32 %v1688_v10, %v1686_v12  ;;  %v1703_v30 = vadd.s32 %v1702_v52, %v1700_v60  ;;  %1777 = vst [vmem:[#allocation14 + $0x58] sm:$0xff] %v2184_v61  ;;  %2480 = vmatpush3.bf16.msk.msra.mxu0 %vm2479_vm8, %v2994_v32  ;;  %1778 = vst [vmem:[#allocation14 + $0x60] sm:$0xff] %v2185_v0 }
 0x590   : > { %v1713_v20 = vpop.xlane.xlu1 %1712  ;;  %2481 = vmatprep.subr.bf16.mxu0 %v2991_v8 }
 0x591   : > { %vm1732_vm9 = vcmp.eq.s32.totalorder %v3357_v34, %v1703_v30  ;;  %v1714_v21 = vcvt.f32.s32 %v1713_v20  ;;  %vm1731_vm10 = vcmp.eq.s32.totalorder %v3357_v34, %v1689_v59 }
 0x592   : > { %v2187_v4 = vsel %vm1732_vm9, 1.0, %v2993_v16  ;;  %v2186_v9 = vsel %vm1731_vm10, 1.0, %v2993_v16  ;;  %vm2482_vm11 = vmpackc.low %vm1731_vm10, %vm1730_vm7 }
 0x593   : > { %1780 = vst [vmem:[#allocation14 + $0x70] sm:$0xff] %v2187_v4  ;;  %v1717_v24 = vadd.s32 %v1716_v3, %v1714_v21  ;;  %1779 = vst [vmem:[#allocation14 + $0x68] sm:$0xff] %v2186_v9  ;;  %2483 = vmatpush3.bf16.msk.msra.mxu0 %vm2482_vm11, %v2994_v32 }
 0x594   : > { %2484 = vmatprep.subr.bf16.mxu0 %v2991_v8  ;;  %v2205_v8 = vld [vmem:[%s3858_s7] ss:$0 sm:$0xff] }
 0x595   : > { %vm1733_vm12 = vcmp.eq.s32.totalorder %v3357_v34, %v1717_v24 }
 0x596   : > { %v2188_v1 = vsel %vm1733_vm12, 1.0, %v2993_v16  ;;  %vm2485_vm13 = vmpackc.low %vm1733_vm12, %vm1732_vm9 }
 0x597   : > { %1781 = vst [vmem:[#allocation14 + $0x78] sm:$0xff] %v2188_v1  ;;  %2486 = vmatpush3.bf16.msk.msra.mxu0 %vm2485_vm13, %v2994_v32 }
 0x59a   : > { %2426 = vmatmul.mubr.f32.vlgmr.msra.gmra.mrb[0].mxu0 %v1782_v29 }
 0x66d   : > { %v1849_v11 = vpop.f32.mrb[0].mxu0 }
 0x66e   : > { %1853 = vst [vmem:[#allocation16] sm:$0x3] %v1849_v11  ;;  %v2427_v18 = vpop.f32.mrb[1].mxu0  ;;  %2461 = vmatmul.mubr.f32.vlgmr.msra.gmra.mrb[0].mxu1 %v1849_v11 }
 0x741   : > { %v1943_v34 = vpop.f32.mrb[0].mxu1 }
 0x742   : > { %v1944_v39 = vadd.f32 %v2205_v8, %v1943_v34  ;;  %v2462_v16 = vpop.f32.mrb[1].mxu1 }
 0x744   : > { %1947 = vst [vmem:[#allocation13] sm:$0x3] %v1944_v39 }
 0x745 PF: > { %p2588_p8 = scmp.eq.s32.totalorder %s3074_s17, 2  ;;  %s2995_s20 = smov [#allocation14]  }
 0x746   : > { %s1965_s27 = sshll.u32 %s2995_s20, 4  ;;  %s1966_s27 = int_to_ptr.vmem [resolvable:$true] %s1965_s27 }
 0x747   : > { %s2842_s16 = scalar_lea.vmem %s1966_s27, 2048  ;;  %p2849_p12 = scmp.lt.s32.totalorder %s1966_s27, %s1966_s27 }
 0x748   : > { %p2843_p4 = scmp.ne.s32.totalorder %s1966_s27, %s2842_s16  ;;  %p2850_p0 = scmp.lt.s32.totalorder %s2842_s16, %s2842_s16 }
 0x74a   : > { %p2844_p6 = pnand %p2843_p4, %p2588_p8  ;;  %p2851_p11 = por %p2850_p0, %p2849_p12 }
 0x74c   : > { %p2845_p9 = pneg %p2844_p6 }
 0x74e   : > { %p2852_p3 = pnand %p2851_p11, %p2845_p9 }
 0x750   : > { %2855 = shalt.err (!%p2852_p3)
}
 0x751   : > { %s2856_s13 = scalar_lea.hbm %s3860_s9, 2048 }
 0x752   : > { %p2857_p7 = scmp.ne.s32.totalorder %s3860_s9, %s2856_s13  ;;  %p2862_p13 = scmp.lt.u32.totalorder %s2856_s13, %s3860_s9 }
 0x754   : > { %p2858_p1 = pnand %p2857_p7, %p2588_p8 }
 0x756   : > { %p2859_p10 = pneg %p2858_p1 }
 0x758   : > { %p2864_p2 = pnand %p2862_p13, %p2859_p10 }
 0x75a   : > { %2867 = shalt.err (!%p2864_p2)
}
 0x75b   : > { %s2996_s11 = smov 128   ;;  %s2997_s0 = smov 8  }
 0x75c   : > { %2550 = dma.vmem_to_hbm [thread:$0]  (%p2588_p8), %s1966_s27, 2048, %s3860_s9, [#allocation15], %s2996_s11, %s2996_s11, %s2997_s0  }
 0x75d   : > { %s2998_s28 = smov [#allocation13]   ;;  %s2999_s30 = smov [#allocation16]  }
 0x75e   : > { %s1955_s12 = sshll.u32 %s2998_s28, 4  ;;  %s1979_s18 = sshll.u32 %s2999_s30, 4  ;;  %s1956_s12 = int_to_ptr.vmem [resolvable:$true] %s1955_s12  ;;  %s3787_s18 = int_to_ptr.vmem [resolvable:$true] %s1979_s18 }
 0x75f   : > { %s2868_s10 = scalar_lea.vmem %s1956_s12, 32  ;;  %p2875_p9 = scmp.lt.s32.totalorder %s1956_s12, %s1956_s12 }
 0x760   : > { %p2869_p5 = scmp.ne.s32.totalorder %s1956_s12, %s2868_s10  ;;  %p2876_p12 = scmp.lt.s32.totalorder %s2868_s10, %s2868_s10 }
 0x762   : > { %p2870_p4 = pnand %p2869_p5, %p2588_p8  ;;  %p2877_p0 = por %p2876_p12, %p2875_p9 }
 0x764   : > { %p2871_p6 = pneg %p2870_p4 }
 0x766   : > { %p2878_p11 = pnand %p2877_p0, %p2871_p6 }
 0x768   : > { %2881 = shalt.err (!%p2878_p11)
}
 0x769   : > { %s3916_s21 = sld [smem:[#allocation29_spill]] }
 0x76f   : > { %s2882_s20 = scalar_lea.hbm %s3916_s21, 32 }
 0x770   : > { %p2883_p3 = scmp.ne.s32.totalorder %s3916_s21, %s2882_s20  ;;  %p2888_p10 = scmp.lt.u32.totalorder %s2882_s20, %s3916_s21 }
 0x772   : > { %p2884_p7 = pnand %p2883_p3, %p2588_p8 }
 0x774   : > { %p2885_p1 = pneg %p2884_p7 }
 0x776   : > { %p2890_p13 = pnand %p2888_p10, %p2885_p1 }
 0x778   : > { %2893 = shalt.err (!%p2890_p13)
}
 0x779   : > { %2548 = dma.vmem_to_hbm [thread:$0]  (%p2588_p8), %s1956_s12, 32, %s3916_s21, [#allocation5]  }
 0x77a   : > { %s2894_s1 = scalar_lea.vmem %s3787_s18, 32  ;;  %p2901_p6 = scmp.lt.s32.totalorder %s3787_s18, %s3787_s18 }
 0x77b   : > { %p2895_p2 = scmp.ne.s32.totalorder %s3787_s18, %s2894_s1  ;;  %p2902_p9 = scmp.lt.s32.totalorder %s2894_s1, %s2894_s1 }
 0x77d   : > { %p2896_p5 = pnand %p2895_p2, %p2588_p8  ;;  %p2903_p12 = por %p2902_p9, %p2901_p6 }
 0x77f   : > { %p2897_p4 = pneg %p2896_p5 }
 0x781   : > { %p2904_p0 = pnand %p2903_p12, %p2897_p4 }
 0x783   : > { %2907 = shalt.err (!%p2904_p0)
}
 0x784   : > { %s3917_s11 = sld [smem:[#allocation30_spill]] }
 0x78a   : > { %s2908_s0 = scalar_lea.hbm %s3917_s11, 32 }
 0x78b   : > { %p2909_p11 = scmp.ne.s32.totalorder %s3917_s11, %s2908_s0  ;;  %p2914_p1 = scmp.lt.u32.totalorder %s2908_s0, %s3917_s11 }
 0x78d   : > { %p2910_p3 = pnand %p2909_p11, %p2588_p8 }
 0x78f   : > { %p2911_p7 = pneg %p2910_p3 }
 0x791   : > { %p2916_p10 = pnand %p2914_p1, %p2911_p7 }
 0x793   : > { %2919 = shalt.err (!%p2916_p10)
}
 0x794   : > { %2552 = dma.vmem_to_hbm [thread:$0]  (%p2588_p8), %s3787_s18, 32, %s3917_s11, [#allocation15]  }
 0x795   : > { %2957 = dma.done.wait (%p2588_p8), [#allocation5], 32  }
 0x796   : > { %2959 = vsyncadd (%p2588_p8), [#allocation5], 4294967264 }
 0x797   : > { %2961 = dma.done.wait (%p2588_p8), [#allocation15], 2080  }
 0x798   : > { %2963 = vsyncadd (%p2588_p8), [#allocation15], 4294965216 }
 0x799 PF: > { %s3918_s16 = sld [smem:[#allocation24_spill]]  ;;  %s3919_s26 = sld [smem:[#allocation25_spill]] }
 0x79a   : > { %s3920_s13 = smov %s2970_s14  ;;  %s3921_s14 = smov %s2974_s15 }
 0x79f   : > { %p23_p13 = scmp.ge.s32.totalorder %s3918_s16, 5   ;;  %s3922_s15 = smov %s3919_s26 }
 0x7a1   :  { %25 = sbr.rel (!%p23_p13) target bundleno = 12 (0xc), region = 140 }
 0x7a8   :  { %2000 = vsyncpa [#allocation4], 1 }
 0x7a9   :  { %2002 = vsyncpa [#allocation4 + $0x1], 1 }
 0x7aa   :  { %2003 = vsyncpa [#allocation7], 1 }
 0x7ab   :  { %2004 = vsyncpa [#allocation12], 1 }
 0x7ac   :  { %2005 = vsyncpa [#allocation5], 1 }
 0x7ad   :  { %2007 = vsyncpa [#allocation5 + $0x1], 1 }
 0x7ae   :  { %2008 = vsyncpa [#allocation15], 1 }

</bundles_post_ra>
